<compile_context>
chip_gen: v7x
topology: tpu7x:2x2x1
jax: 0.10.0
libtpu: 0.0.40
codegen_flags: <defaults>
</compile_context>

<pallas_src>
import functools

import jax
import jax.numpy as jnp
from jax.experimental import pallas as pl
from jax.experimental.pallas import tpu as pltpu


# ----------------------------- helpers (plain python / jax) -----------------------------

def make_divisible(v, divisor=8, min_value=None):
    if min_value is None:
        min_value = divisor
    new_v = max(min_value, int(v + divisor / 2) // divisor * divisor)
    if new_v < 0.9 * v:
        new_v += divisor
    return new_v


def _hswish(v):
    # x * relu6(x + 3) / 6
    return v * jnp.clip(v + 3.0, 0.0, 6.0) / 6.0


def _hsigmoid(v):
    # relu6(x + 3) / 6
    return jnp.clip(v + 3.0, 0.0, 6.0) / 6.0


def _round_up(v, m):
    return (v + m - 1) // m * m


# ------------------------------------ Pallas kernel -------------------------------------

def _inverted_residual_kernel(x_ref, w_exp_ref, b_exp_ref, w_dw_ref, b_dw_ref,
                              w_se1t_ref, b_se1_ref, w_se2_ref, b_se2_ref,
                              w_proj_ref, b_proj_ref, out_ref,
                              *, H, W, K, dilation, use_res, use_hs):
    HW = H * W
    Cexp = w_dw_ref.shape[-1]
    ctr = (K - 1) // 2

    act = _hswish if use_hs else (lambda v: jnp.maximum(v, 0.0))

    x = x_ref[0]                                        # (HW, CinP) f32, channels zero-padded

    # ---- expand: 1x1 conv (+ folded BN) + activation --------------------------------------
    # bf16 operands on the MXU, f32 accumulation; padded channels are zero on both operands.
    e = jnp.dot(x.astype(jnp.bfloat16), w_exp_ref[...],
                preferred_element_type=jnp.float32) + b_exp_ref[...]
    e = act(e)                                          # (HW, Cexp) f32

    # ---- depthwise KxK conv (+ folded BN) + activation ------------------------------------
    # No padded VMEM scratch: tap (kh, kw) = one pltpu.roll of the flattened H*W axis by
    # dh*W + dw (XLU), a border mask, and a fused multiply-add (VPU).  Accumulator starts
    # from the folded-BN bias instead of zeros.
    hw_idx = jax.lax.broadcasted_iota(jnp.int32, (HW, 1), 0)
    if (W & (W - 1)) == 0:                              # power-of-two W: bit ops, no vector div
        h_idx = jnp.right_shift(hw_idx, W.bit_length() - 1)
        w_idx = jnp.bitwise_and(hw_idx, W - 1)
    else:
        h_idx = hw_idx // W
        w_idx = hw_idx % W

    acc = jnp.broadcast_to(b_dw_ref[...], (HW, Cexp))
    for kh in range(K):
        for kw in range(K):
            dh = (kh - ctr) * dilation
            dw_ = (kw - ctr) * dilation
            off = dh * W + dw_
            t = e if off == 0 else pltpu.roll(e, shift=(-off) % HW, axis=0)
            valid = None
            if dh > 0:
                valid = h_idx < (H - dh)
            elif dh < 0:
                valid = h_idx >= (-dh)
            if dw_ > 0:
                c = w_idx < (W - dw_)
                valid = c if valid is None else jnp.logical_and(valid, c)
            elif dw_ < 0:
                c = w_idx >= (-dw_)
                valid = c if valid is None else jnp.logical_and(valid, c)
            if valid is not None:
                t = jnp.where(valid, t, 0.0)
            acc = acc + t * w_dw_ref[kh * K + kw:kh * K + kw + 1, :]
    dw = act(acc)                                       # (HW, Cexp) f32

    # ---- squeeze-excitation: global pool + 2 tiny FCs on the VPU (no single-row MXU push) --
    pooled = jnp.mean(dw, axis=0, keepdims=True)                                  # (1, Cexp)
    s1 = jnp.sum(w_se1t_ref[...] * pooled, axis=1, keepdims=True) + b_se1_ref[...]
    s1 = jnp.maximum(s1, 0.0)                                                     # (Csq, 1)
    s2 = jnp.sum(w_se2_ref[...] * s1, axis=0, keepdims=True) + b_se2_ref[...]     # (1, Cexp)
    dw = dw * _hsigmoid(s2)

    # ---- project: 1x1 conv (+ folded BN), identity activation; optional residual -----------
    p = jnp.dot(dw.astype(jnp.bfloat16), w_proj_ref[...],
                preferred_element_type=jnp.float32) + b_proj_ref[...]             # (HW, CoutP)
    if use_res:
        p = p + x                                       # padded channels are zero on both sides

    out_ref[0] = p.astype(out_ref.dtype)                # full-width, unmasked 128-lane stores


# ------------------------------------- wrapper -------------------------------------------

def inverted_residual(x_nhwc, p, *, kernel, dilation, use_res, use_hs):
    N, H, W, Cin = x_nhwc.shape
    Cexp = p["w_exp"].shape[1]
    Csq = p["w_se1"].shape[1]
    Cout = p["w_proj"].shape[1]
    K = kernel
    HW = H * W
    CinP = _round_up(Cin, 128)                 # lane-dense input loads
    CoutP = _round_up(Cout, 128)               # lane-dense, unmasked output stores
    if use_res:
        assert CinP == CoutP

    # ---- wrapper-side layout plumbing (plain XLA, outside the kernel) ----
    x_flat = x_nhwc.astype(jnp.float32).reshape(N, HW, Cin)
    x_pad = jnp.pad(x_flat, ((0, 0), (0, 0), (0, CinP - Cin)))
    w_exp = jnp.pad(p["w_exp"], ((0, CinP - Cin), (0, 0))).astype(jnp.bfloat16)    # (CinP, Cexp)
    b_exp = p["b_exp"].astype(jnp.float32)                                         # (1, Cexp)
    w_dw = p["w_dw"].reshape(K * K, Cexp).astype(jnp.float32)                      # (K*K, Cexp)
    b_dw = p["b_dw"].astype(jnp.float32)                                           # (1, Cexp)
    w_se1_t = jnp.transpose(p["w_se1"]).astype(jnp.float32)                        # (Csq, Cexp)
    b_se1 = p["b_se1"].reshape(Csq, 1).astype(jnp.float32)
    w_se2 = p["w_se2"].astype(jnp.float32)                                         # (Csq, Cexp)
    b_se2 = p["b_se2"].reshape(1, Cexp).astype(jnp.float32)
    w_proj = jnp.pad(p["w_proj"], ((0, 0), (0, CoutP - Cout))).astype(jnp.bfloat16)
    b_proj = jnp.pad(p["b_proj"], ((0, 0), (0, CoutP - Cout))).astype(jnp.float32)

    kern = functools.partial(_inverted_residual_kernel, H=H, W=W, K=K,
                             dilation=dilation, use_res=use_res, use_hs=use_hs)

    grid_spec = pltpu.PrefetchScalarGridSpec(
        num_scalar_prefetch=0,
        grid=(N,),                             # one program / batch element ("parallel":
        in_specs=[                             # both v7x TCs; cheap serial loop on v5e/v6e)
            pl.BlockSpec((1, HW, CinP), lambda n: (n, 0, 0)),
            pl.BlockSpec((CinP, Cexp), lambda n: (0, 0)),
            pl.BlockSpec((1, Cexp), lambda n: (0, 0)),
            pl.BlockSpec((K * K, Cexp), lambda n: (0, 0)),
            pl.BlockSpec((1, Cexp), lambda n: (0, 0)),
            pl.BlockSpec((Csq, Cexp), lambda n: (0, 0)),
            pl.BlockSpec((Csq, 1), lambda n: (0, 0)),
            pl.BlockSpec((Csq, Cexp), lambda n: (0, 0)),
            pl.BlockSpec((1, Cexp), lambda n: (0, 0)),
            pl.BlockSpec((Cexp, CoutP), lambda n: (0, 0)),
            pl.BlockSpec((1, CoutP), lambda n: (0, 0)),
        ],
        out_specs=pl.BlockSpec((1, HW, CoutP), lambda n: (n, 0, 0)),
    )

    out_pad = pl.pallas_call(
        kern,
        out_shape=jax.ShapeDtypeStruct((N, HW, CoutP), jnp.float32),
        grid_spec=grid_spec,
        compiler_params=pltpu.CompilerParams(dimension_semantics=("parallel",)),
    )(x_pad, w_exp, b_exp, w_dw, b_dw, w_se1_t, b_se1, w_se2, b_se2, w_proj, b_proj)

    return out_pad[:, :, :Cout].reshape(N, H, W, Cout)


# --------------------------- deterministic parameter construction ------------------------

def init_params(key, cin, cexp, cout, k, csq, eps=1e-3):
    keys = jax.random.split(key, 10)

    def bn_params(kk, c):
        ks = jax.random.split(kk, 4)
        gamma = 1.0 + 0.1 * jax.random.normal(ks[0], (c,), jnp.float32)
        beta = 0.1 * jax.random.normal(ks[1], (c,), jnp.float32)
        mean = 0.05 * jax.random.normal(ks[2], (c,), jnp.float32)
        var = 1.0 + 0.1 * jax.random.uniform(ks[3], (c,), jnp.float32)
        return gamma, beta, mean, var

    def fold(w, bn):  # out-channels are the last dim of w
        gamma, beta, mean, var = bn
        scale = gamma / jnp.sqrt(var + eps)
        return w * scale, (beta - mean * scale).reshape(1, -1)

    w_exp, b_exp = fold(0.2 * jax.random.normal(keys[0], (cin, cexp), jnp.float32),
                        bn_params(keys[1], cexp))
    w_dw, b_dw = fold(0.2 * jax.random.normal(keys[2], (k, k, cexp), jnp.float32),
                      bn_params(keys[3], cexp))
    w_se1 = 0.2 * jax.random.normal(keys[4], (cexp, csq), jnp.float32)
    b_se1 = 0.1 * jax.random.normal(keys[5], (1, csq), jnp.float32)
    w_se2 = 0.2 * jax.random.normal(keys[6], (csq, cexp), jnp.float32)
    b_se2 = 0.1 * jax.random.normal(keys[7], (1, cexp), jnp.float32)
    w_proj, b_proj = fold(0.2 * jax.random.normal(keys[8], (cexp, cout), jnp.float32),
                          bn_params(keys[9], cout))
    return dict(w_exp=w_exp, b_exp=b_exp, w_dw=w_dw, b_dw=b_dw,
                w_se1=w_se1, b_se1=b_se1, w_se2=w_se2, b_se2=b_se2,
                w_proj=w_proj, b_proj=b_proj)


# --------------------------------- pure-JAX reference ------------------------------------

def ref_forward(x, p, *, kernel, dilation, use_res, use_hs):
    act = _hswish if use_hs else (lambda v: jnp.maximum(v, 0.0))
    K = kernel
    pad = (K - 1) // 2 * dilation
    cexp = p["w_exp"].shape[1]

    e = act(jnp.einsum("nhwc,ce->nhwe", x, p["w_exp"]) + p["b_exp"].reshape(1, 1, 1, -1))
    dwc = jax.lax.conv_general_dilated(
        e, p["w_dw"].reshape(K, K, 1, cexp), window_strides=(1, 1),
        padding=[(pad, pad), (pad, pad)], rhs_dilation=(dilation, dilation),
        dimension_numbers=("NHWC", "HWIO", "NHWC"), feature_group_count=cexp)
    dw = act(dwc + p["b_dw"].reshape(1, 1, 1, -1))
    pooled = jnp.mean(dw, axis=(1, 2))
    s = jnp.maximum(pooled @ p["w_se1"] + p["b_se1"], 0.0)
    s = _hsigmoid(s @ p["w_se2"] + p["b_se2"])
    dw = dw * s[:, None, None, :]
    out = jnp.einsum("nhwc,co->nhwo", dw, p["w_proj"]) + p["b_proj"].reshape(1, 1, 1, -1)
    if use_res:
        out = out + x
    return out


# ----------------------------------------- main ------------------------------------------

if __name__ == "__main__":
    # InvertedResidualConfig(inChannels=16, kernel=3, expandedChannels=32, outChannels=16,
    #                        useSE=True, activation='HS', stride=1, dilation=1, widthMult=1.0)
    Cin = make_divisible(16)
    Cexp = make_divisible(32)
    Cout = make_divisible(16)
    Csq = make_divisible(Cexp // 4)
    K, stride, dilation = 3, 1, 1
    use_hs = True
    use_res = (stride == 1 and Cin == Cout)

    N, H, W = 2, 16, 16

    key = jax.random.PRNGKey(0)
    kx, kp = jax.random.split(key)
    x_nchw = jax.random.normal(kx, (N, Cin, H, W), jnp.float32)   # PyTorch NCHW input
    x = jnp.transpose(x_nchw, (0, 2, 3, 1))                       # -> NHWC for the kernel

    params = init_params(kp, Cin, Cexp, Cout, K, Csq)

    out = inverted_residual(x, params, kernel=K, dilation=dilation,
                            use_res=use_res, use_hs=use_hs)
    out = jax.block_until_ready(out)

    ref = ref_forward(x, params, kernel=K, dilation=dilation,
                      use_res=use_res, use_hs=use_hs)
    assert out.shape == (N, H, W, Cout)
    max_err = float(jnp.max(jnp.abs(out - ref)))
    if max_err > 5e-2:
        raise AssertionError(f"Pallas kernel mismatch vs JAX reference: max abs err {max_err}")

    print("KERNEL_OK")
</pallas_src>

<mosaic_0001>
module attributes {stable_mosaic.version = 11 : i64} {
  func.func @_inverted_residual_kernel(%arg0: i32, %arg1: memref<1x256x128xf32, #tpu.memory_space<vmem>>, %arg2: memref<128x32xbf16, #tpu.memory_space<vmem>>, %arg3: memref<1x32xf32, #tpu.memory_space<vmem>>, %arg4: memref<9x32xf32, #tpu.memory_space<vmem>>, %arg5: memref<1x32xf32, #tpu.memory_space<vmem>>, %arg6: memref<8x32xf32, #tpu.memory_space<vmem>>, %arg7: memref<8x1xf32, #tpu.memory_space<vmem>>, %arg8: memref<8x32xf32, #tpu.memory_space<vmem>>, %arg9: memref<1x32xf32, #tpu.memory_space<vmem>>, %arg10: memref<32x128xbf16, #tpu.memory_space<vmem>>, %arg11: memref<1x128xf32, #tpu.memory_space<vmem>>, %arg12: memref<1x256x128xf32, #tpu.memory_space<vmem>>) attributes {dimension_semantics = [#tpu.dimension_semantics<parallel>], iteration_bounds = array<i64: 2>, scalar_prefetch = 0 : i64, scratch_operands = 0 : i64, tpu.core_type = #tpu.core_type<tc>, window_params = [{transform_indices = @transform_0, window_bounds = array<i64: 1, 256, 128>}, {pipeline_mode = #tpu.pipeline_mode<synchronous>, transform_indices = @transform_1, window_bounds = array<i64: 128, 32>}, {pipeline_mode = #tpu.pipeline_mode<synchronous>, transform_indices = @transform_2, window_bounds = array<i64: 1, 32>}, {pipeline_mode = #tpu.pipeline_mode<synchronous>, transform_indices = @transform_3, window_bounds = array<i64: 9, 32>}, {pipeline_mode = #tpu.pipeline_mode<synchronous>, transform_indices = @transform_4, window_bounds = array<i64: 1, 32>}, {pipeline_mode = #tpu.pipeline_mode<synchronous>, transform_indices = @transform_5, window_bounds = array<i64: 8, 32>}, {pipeline_mode = #tpu.pipeline_mode<synchronous>, transform_indices = @transform_6, window_bounds = array<i64: 8, 1>}, {pipeline_mode = #tpu.pipeline_mode<synchronous>, transform_indices = @transform_7, window_bounds = array<i64: 8, 32>}, {pipeline_mode = #tpu.pipeline_mode<synchronous>, transform_indices = @transform_8, window_bounds = array<i64: 1, 32>}, {pipeline_mode = #tpu.pipeline_mode<synchronous>, transform_indices = @transform_9, window_bounds = array<i64: 32, 128>}, {pipeline_mode = #tpu.pipeline_mode<synchronous>, transform_indices = @transform_10, window_bounds = array<i64: 1, 128>}, {transform_indices = @transform_11, window_bounds = array<i64: 1, 256, 128>}]} {
    %c0 = arith.constant 0 : index
    %c0_0 = arith.constant 0 : index
    %c0_1 = arith.constant 0 : index
    %0 = vector.load %arg1[%c0, %c0_0, %c0_1] : memref<1x256x128xf32, #tpu.memory_space<vmem>>, vector<1x256x128xf32>
    %1 = vector.shape_cast %0 : vector<1x256x128xf32> to vector<256x128xf32>
    %2 = arith.truncf %1 : vector<256x128xf32> to vector<256x128xbf16>
    %c0_2 = arith.constant 0 : index
    %c0_3 = arith.constant 0 : index
    %3 = vector.load %arg2[%c0_2, %c0_3] : memref<128x32xbf16, #tpu.memory_space<vmem>>, vector<128x32xbf16>
    %cst = arith.constant dense<0.000000e+00> : vector<256x32xf32>
    %4 = tpu.matmul %2, %3, %cst {dimension_numbers = #tpu.dot_dimension_numbers<[1], [0], [0], [1], [0, 0, 1, 1], [], []>} : vector<256x128xbf16>, vector<128x32xbf16>, vector<256x32xf32> -> vector<256x32xf32>
    %c0_4 = arith.constant 0 : index
    %c0_5 = arith.constant 0 : index
    %5 = vector.load %arg3[%c0_4, %c0_5] : memref<1x32xf32, #tpu.memory_space<vmem>>, vector<1x32xf32>
    %6 = vector.broadcast %5 : vector<1x32xf32> to vector<256x32xf32>
    %7 = arith.addf %4, %6 : vector<256x32xf32>
    %cst_6 = arith.constant 3.000000e+00 : f32
    %8 = vector.broadcast %cst_6 : f32 to vector<256x32xf32>
    %9 = arith.addf %7, %8 : vector<256x32xf32>
    %cst_7 = arith.constant 0.000000e+00 : f32
    %cst_8 = arith.constant 6.000000e+00 : f32
    %10 = vector.broadcast %cst_7 : f32 to vector<256x32xf32>
    %11 = arith.maximumf %10, %9 : vector<256x32xf32>
    %12 = vector.broadcast %cst_8 : f32 to vector<256x32xf32>
    %13 = arith.minimumf %12, %11 : vector<256x32xf32>
    %14 = arith.mulf %7, %13 : vector<256x32xf32>
    %cst_9 = arith.constant 6.000000e+00 : f32
    %15 = vector.broadcast %cst_9 : f32 to vector<256x32xf32>
    %16 = arith.divf %14, %15 : vector<256x32xf32>
    %17 = tpu.iota {dimensions = array<i32: 0>} : vector<256x1xi32>
    %c4_i32 = arith.constant 4 : i32
    %18 = vector.broadcast %c4_i32 : i32 to vector<256x1xi32>
    %19 = arith.shrsi %17, %18 : vector<256x1xi32>
    %c15_i32 = arith.constant 15 : i32
    %20 = vector.broadcast %c15_i32 : i32 to vector<256x1xi32>
    %21 = arith.andi %17, %20 : vector<256x1xi32>
    %c0_10 = arith.constant 0 : index
    %c0_11 = arith.constant 0 : index
    %22 = vector.load %arg5[%c0_10, %c0_11] : memref<1x32xf32, #tpu.memory_space<vmem>>, vector<1x32xf32>
    %23 = vector.shape_cast %22 : vector<1x32xf32> to vector<1x32xf32>
    %24 = vector.broadcast %23 : vector<1x32xf32> to vector<256x32xf32>
    %c17_i32 = arith.constant 17 : i32
    %25 = tpu.dynamic_rotate %16 by %c17_i32 dim 0 : vector<256x32xf32>, i32 -> vector<256x32xf32>
    %c1_i32 = arith.constant 1 : i32
    %26 = vector.broadcast %c1_i32 : i32 to vector<256x1xi32>
    %27 = arith.cmpi sge, %19, %26 : vector<256x1xi32>
    %c1_i32_12 = arith.constant 1 : i32
    %28 = vector.broadcast %c1_i32_12 : i32 to vector<256x1xi32>
    %29 = arith.cmpi sge, %21, %28 : vector<256x1xi32>
    %30 = arith.andi %27, %29 : vector<256x1xi1>
    %cst_13 = arith.constant 0.000000e+00 : f32
    %31 = vector.shape_cast %30 : vector<256x1xi1> to vector<256x1xi1>
    %32 = vector.broadcast %31 : vector<256x1xi1> to vector<256x32xi1>
    %33 = vector.broadcast %cst_13 : f32 to vector<256x32xf32>
    %34 = arith.select %32, %25, %33 : vector<256x32xi1>, vector<256x32xf32>
    %c0_14 = arith.constant 0 : index
    %c0_15 = arith.constant 0 : index
    %35 = vector.load %arg4[%c0_14, %c0_15] : memref<9x32xf32, #tpu.memory_space<vmem>>, vector<1x32xf32>
    %36 = vector.broadcast %35 : vector<1x32xf32> to vector<256x32xf32>
    %37 = arith.mulf %34, %36 : vector<256x32xf32>
    %38 = arith.addf %24, %37 : vector<256x32xf32>
    %c16_i32 = arith.constant 16 : i32
    %39 = tpu.dynamic_rotate %16 by %c16_i32 dim 0 : vector<256x32xf32>, i32 -> vector<256x32xf32>
    %c1_i32_16 = arith.constant 1 : i32
    %40 = vector.broadcast %c1_i32_16 : i32 to vector<256x1xi32>
    %41 = arith.cmpi sge, %19, %40 : vector<256x1xi32>
    %cst_17 = arith.constant 0.000000e+00 : f32
    %42 = vector.shape_cast %41 : vector<256x1xi1> to vector<256x1xi1>
    %43 = vector.broadcast %42 : vector<256x1xi1> to vector<256x32xi1>
    %44 = vector.broadcast %cst_17 : f32 to vector<256x32xf32>
    %45 = arith.select %43, %39, %44 : vector<256x32xi1>, vector<256x32xf32>
    %c1 = arith.constant 1 : index
    %c0_18 = arith.constant 0 : index
    %46 = vector.load %arg4[%c1, %c0_18] : memref<9x32xf32, #tpu.memory_space<vmem>>, vector<1x32xf32>
    %47 = vector.broadcast %46 : vector<1x32xf32> to vector<256x32xf32>
    %48 = arith.mulf %45, %47 : vector<256x32xf32>
    %49 = arith.addf %38, %48 : vector<256x32xf32>
    %c15_i32_19 = arith.constant 15 : i32
    %50 = tpu.dynamic_rotate %16 by %c15_i32_19 dim 0 : vector<256x32xf32>, i32 -> vector<256x32xf32>
    %c1_i32_20 = arith.constant 1 : i32
    %51 = vector.broadcast %c1_i32_20 : i32 to vector<256x1xi32>
    %52 = arith.cmpi sge, %19, %51 : vector<256x1xi32>
    %c15_i32_21 = arith.constant 15 : i32
    %53 = vector.broadcast %c15_i32_21 : i32 to vector<256x1xi32>
    %54 = arith.cmpi slt, %21, %53 : vector<256x1xi32>
    %55 = arith.andi %52, %54 : vector<256x1xi1>
    %cst_22 = arith.constant 0.000000e+00 : f32
    %56 = vector.shape_cast %55 : vector<256x1xi1> to vector<256x1xi1>
    %57 = vector.broadcast %56 : vector<256x1xi1> to vector<256x32xi1>
    %58 = vector.broadcast %cst_22 : f32 to vector<256x32xf32>
    %59 = arith.select %57, %50, %58 : vector<256x32xi1>, vector<256x32xf32>
    %c2 = arith.constant 2 : index
    %c0_23 = arith.constant 0 : index
    %60 = vector.load %arg4[%c2, %c0_23] : memref<9x32xf32, #tpu.memory_space<vmem>>, vector<1x32xf32>
    %61 = vector.broadcast %60 : vector<1x32xf32> to vector<256x32xf32>
    %62 = arith.mulf %59, %61 : vector<256x32xf32>
    %63 = arith.addf %49, %62 : vector<256x32xf32>
    %c1_i32_24 = arith.constant 1 : i32
    %64 = tpu.dynamic_rotate %16 by %c1_i32_24 dim 0 : vector<256x32xf32>, i32 -> vector<256x32xf32>
    %c1_i32_25 = arith.constant 1 : i32
    %65 = vector.broadcast %c1_i32_25 : i32 to vector<256x1xi32>
    %66 = arith.cmpi sge, %21, %65 : vector<256x1xi32>
    %cst_26 = arith.constant 0.000000e+00 : f32
    %67 = vector.shape_cast %66 : vector<256x1xi1> to vector<256x1xi1>
    %68 = vector.broadcast %67 : vector<256x1xi1> to vector<256x32xi1>
    %69 = vector.broadcast %cst_26 : f32 to vector<256x32xf32>
    %70 = arith.select %68, %64, %69 : vector<256x32xi1>, vector<256x32xf32>
    %c3 = arith.constant 3 : index
    %c0_27 = arith.constant 0 : index
    %71 = vector.load %arg4[%c3, %c0_27] : memref<9x32xf32, #tpu.memory_space<vmem>>, vector<1x32xf32>
    %72 = vector.broadcast %71 : vector<1x32xf32> to vector<256x32xf32>
    %73 = arith.mulf %70, %72 : vector<256x32xf32>
    %74 = arith.addf %63, %73 : vector<256x32xf32>
    %c4 = arith.constant 4 : index
    %c0_28 = arith.constant 0 : index
    %75 = vector.load %arg4[%c4, %c0_28] : memref<9x32xf32, #tpu.memory_space<vmem>>, vector<1x32xf32>
    %76 = vector.broadcast %75 : vector<1x32xf32> to vector<256x32xf32>
    %77 = arith.mulf %16, %76 : vector<256x32xf32>
    %78 = arith.addf %74, %77 : vector<256x32xf32>
    %c255_i32 = arith.constant 255 : i32
    %79 = tpu.dynamic_rotate %16 by %c255_i32 dim 0 : vector<256x32xf32>, i32 -> vector<256x32xf32>
    %c15_i32_29 = arith.constant 15 : i32
    %80 = vector.broadcast %c15_i32_29 : i32 to vector<256x1xi32>
    %81 = arith.cmpi slt, %21, %80 : vector<256x1xi32>
    %cst_30 = arith.constant 0.000000e+00 : f32
    %82 = vector.shape_cast %81 : vector<256x1xi1> to vector<256x1xi1>
    %83 = vector.broadcast %82 : vector<256x1xi1> to vector<256x32xi1>
    %84 = vector.broadcast %cst_30 : f32 to vector<256x32xf32>
    %85 = arith.select %83, %79, %84 : vector<256x32xi1>, vector<256x32xf32>
    %c5 = arith.constant 5 : index
    %c0_31 = arith.constant 0 : index
    %86 = vector.load %arg4[%c5, %c0_31] : memref<9x32xf32, #tpu.memory_space<vmem>>, vector<1x32xf32>
    %87 = vector.broadcast %86 : vector<1x32xf32> to vector<256x32xf32>
    %88 = arith.mulf %85, %87 : vector<256x32xf32>
    %89 = arith.addf %78, %88 : vector<256x32xf32>
    %c241_i32 = arith.constant 241 : i32
    %90 = tpu.dynamic_rotate %16 by %c241_i32 dim 0 : vector<256x32xf32>, i32 -> vector<256x32xf32>
    %c15_i32_32 = arith.constant 15 : i32
    %91 = vector.broadcast %c15_i32_32 : i32 to vector<256x1xi32>
    %92 = arith.cmpi slt, %19, %91 : vector<256x1xi32>
    %c1_i32_33 = arith.constant 1 : i32
    %93 = vector.broadcast %c1_i32_33 : i32 to vector<256x1xi32>
    %94 = arith.cmpi sge, %21, %93 : vector<256x1xi32>
    %95 = arith.andi %92, %94 : vector<256x1xi1>
    %cst_34 = arith.constant 0.000000e+00 : f32
    %96 = vector.shape_cast %95 : vector<256x1xi1> to vector<256x1xi1>
    %97 = vector.broadcast %96 : vector<256x1xi1> to vector<256x32xi1>
    %98 = vector.broadcast %cst_34 : f32 to vector<256x32xf32>
    %99 = arith.select %97, %90, %98 : vector<256x32xi1>, vector<256x32xf32>
    %c6 = arith.constant 6 : index
    %c0_35 = arith.constant 0 : index
    %100 = vector.load %arg4[%c6, %c0_35] : memref<9x32xf32, #tpu.memory_space<vmem>>, vector<1x32xf32>
    %101 = vector.broadcast %100 : vector<1x32xf32> to vector<256x32xf32>
    %102 = arith.mulf %99, %101 : vector<256x32xf32>
    %103 = arith.addf %89, %102 : vector<256x32xf32>
    %c240_i32 = arith.constant 240 : i32
    %104 = tpu.dynamic_rotate %16 by %c240_i32 dim 0 : vector<256x32xf32>, i32 -> vector<256x32xf32>
    %c15_i32_36 = arith.constant 15 : i32
    %105 = vector.broadcast %c15_i32_36 : i32 to vector<256x1xi32>
    %106 = arith.cmpi slt, %19, %105 : vector<256x1xi32>
    %cst_37 = arith.constant 0.000000e+00 : f32
    %107 = vector.shape_cast %106 : vector<256x1xi1> to vector<256x1xi1>
    %108 = vector.broadcast %107 : vector<256x1xi1> to vector<256x32xi1>
    %109 = vector.broadcast %cst_37 : f32 to vector<256x32xf32>
    %110 = arith.select %108, %104, %109 : vector<256x32xi1>, vector<256x32xf32>
    %c7 = arith.constant 7 : index
    %c0_38 = arith.constant 0 : index
    %111 = vector.load %arg4[%c7, %c0_38] : memref<9x32xf32, #tpu.memory_space<vmem>>, vector<1x32xf32>
    %112 = vector.broadcast %111 : vector<1x32xf32> to vector<256x32xf32>
    %113 = arith.mulf %110, %112 : vector<256x32xf32>
    %114 = arith.addf %103, %113 : vector<256x32xf32>
    %c239_i32 = arith.constant 239 : i32
    %115 = tpu.dynamic_rotate %16 by %c239_i32 dim 0 : vector<256x32xf32>, i32 -> vector<256x32xf32>
    %c15_i32_39 = arith.constant 15 : i32
    %116 = vector.broadcast %c15_i32_39 : i32 to vector<256x1xi32>
    %117 = arith.cmpi slt, %19, %116 : vector<256x1xi32>
    %c15_i32_40 = arith.constant 15 : i32
    %118 = vector.broadcast %c15_i32_40 : i32 to vector<256x1xi32>
    %119 = arith.cmpi slt, %21, %118 : vector<256x1xi32>
    %120 = arith.andi %117, %119 : vector<256x1xi1>
    %cst_41 = arith.constant 0.000000e+00 : f32
    %121 = vector.shape_cast %120 : vector<256x1xi1> to vector<256x1xi1>
    %122 = vector.broadcast %121 : vector<256x1xi1> to vector<256x32xi1>
    %123 = vector.broadcast %cst_41 : f32 to vector<256x32xf32>
    %124 = arith.select %122, %115, %123 : vector<256x32xi1>, vector<256x32xf32>
    %c8 = arith.constant 8 : index
    %c0_42 = arith.constant 0 : index
    %125 = vector.load %arg4[%c8, %c0_42] : memref<9x32xf32, #tpu.memory_space<vmem>>, vector<1x32xf32>
    %126 = vector.broadcast %125 : vector<1x32xf32> to vector<256x32xf32>
    %127 = arith.mulf %124, %126 : vector<256x32xf32>
    %128 = arith.addf %114, %127 : vector<256x32xf32>
    %cst_43 = arith.constant 3.000000e+00 : f32
    %129 = vector.broadcast %cst_43 : f32 to vector<256x32xf32>
    %130 = arith.addf %128, %129 : vector<256x32xf32>
    %cst_44 = arith.constant 0.000000e+00 : f32
    %cst_45 = arith.constant 6.000000e+00 : f32
    %131 = vector.broadcast %cst_44 : f32 to vector<256x32xf32>
    %132 = arith.maximumf %131, %130 : vector<256x32xf32>
    %133 = vector.broadcast %cst_45 : f32 to vector<256x32xf32>
    %134 = arith.minimumf %133, %132 : vector<256x32xf32>
    %135 = arith.mulf %128, %134 : vector<256x32xf32>
    %cst_46 = arith.constant 6.000000e+00 : f32
    %136 = vector.broadcast %cst_46 : f32 to vector<256x32xf32>
    %137 = arith.divf %135, %136 : vector<256x32xf32>
    %cst_47 = arith.constant dense<0.000000e+00> : vector<32xf32>
    %138 = vector.multi_reduction <add>, %137, %cst_47 [0] : vector<256x32xf32> to vector<32xf32>
    %139 = vector.shape_cast %138 : vector<32xf32> to vector<1x32xf32>
    %cst_48 = arith.constant 2.560000e+02 : f32
    %140 = vector.broadcast %cst_48 : f32 to vector<1x32xf32>
    %141 = arith.divf %139, %140 : vector<1x32xf32>
    %c0_49 = arith.constant 0 : index
    %c0_50 = arith.constant 0 : index
    %142 = vector.load %arg6[%c0_49, %c0_50] : memref<8x32xf32, #tpu.memory_space<vmem>>, vector<8x32xf32>
    %143 = vector.broadcast %141 : vector<1x32xf32> to vector<8x32xf32>
    %144 = arith.mulf %142, %143 : vector<8x32xf32>
    %cst_51 = arith.constant dense<0.000000e+00> : vector<8xf32>
    %145 = vector.multi_reduction <add>, %144, %cst_51 [1] : vector<8x32xf32> to vector<8xf32>
    %146 = vector.shape_cast %145 : vector<8xf32> to vector<8x1xf32>
    %c0_52 = arith.constant 0 : index
    %c0_53 = arith.constant 0 : index
    %147 = vector.load %arg7[%c0_52, %c0_53] : memref<8x1xf32, #tpu.memory_space<vmem>>, vector<8x1xf32>
    %148 = arith.addf %146, %147 : vector<8x1xf32>
    %cst_54 = arith.constant 0.000000e+00 : f32
    %149 = vector.broadcast %cst_54 : f32 to vector<8x1xf32>
    %150 = arith.maximumf %148, %149 : vector<8x1xf32>
    %c0_55 = arith.constant 0 : index
    %c0_56 = arith.constant 0 : index
    %151 = vector.load %arg8[%c0_55, %c0_56] : memref<8x32xf32, #tpu.memory_space<vmem>>, vector<8x32xf32>
    %152 = vector.broadcast %150 : vector<8x1xf32> to vector<8x32xf32>
    %153 = arith.mulf %151, %152 : vector<8x32xf32>
    %cst_57 = arith.constant dense<0.000000e+00> : vector<32xf32>
    %154 = vector.multi_reduction <add>, %153, %cst_57 [0] : vector<8x32xf32> to vector<32xf32>
    %155 = vector.shape_cast %154 : vector<32xf32> to vector<1x32xf32>
    %c0_58 = arith.constant 0 : index
    %c0_59 = arith.constant 0 : index
    %156 = vector.load %arg9[%c0_58, %c0_59] : memref<1x32xf32, #tpu.memory_space<vmem>>, vector<1x32xf32>
    %157 = arith.addf %155, %156 : vector<1x32xf32>
    %cst_60 = arith.constant 3.000000e+00 : f32
    %158 = vector.broadcast %cst_60 : f32 to vector<1x32xf32>
    %159 = arith.addf %157, %158 : vector<1x32xf32>
    %cst_61 = arith.constant 0.000000e+00 : f32
    %cst_62 = arith.constant 6.000000e+00 : f32
    %160 = vector.broadcast %cst_61 : f32 to vector<1x32xf32>
    %161 = arith.maximumf %160, %159 : vector<1x32xf32>
    %162 = vector.broadcast %cst_62 : f32 to vector<1x32xf32>
    %163 = arith.minimumf %162, %161 : vector<1x32xf32>
    %cst_63 = arith.constant 6.000000e+00 : f32
    %164 = vector.broadcast %cst_63 : f32 to vector<1x32xf32>
    %165 = arith.divf %163, %164 : vector<1x32xf32>
    %166 = vector.broadcast %165 : vector<1x32xf32> to vector<256x32xf32>
    %167 = arith.mulf %137, %166 : vector<256x32xf32>
    %168 = arith.truncf %167 : vector<256x32xf32> to vector<256x32xbf16>
    %c0_64 = arith.constant 0 : index
    %c0_65 = arith.constant 0 : index
    %169 = vector.load %arg10[%c0_64, %c0_65] : memref<32x128xbf16, #tpu.memory_space<vmem>>, vector<32x128xbf16>
    %cst_66 = arith.constant dense<0.000000e+00> : vector<256x128xf32>
    %170 = tpu.matmul %168, %169, %cst_66 {dimension_numbers = #tpu.dot_dimension_numbers<[1], [0], [0], [1], [0, 0, 1, 1], [], []>} : vector<256x32xbf16>, vector<32x128xbf16>, vector<256x128xf32> -> vector<256x128xf32>
    %c0_67 = arith.constant 0 : index
    %c0_68 = arith.constant 0 : index
    %171 = vector.load %arg11[%c0_67, %c0_68] : memref<1x128xf32, #tpu.memory_space<vmem>>, vector<1x128xf32>
    %172 = vector.broadcast %171 : vector<1x128xf32> to vector<256x128xf32>
    %173 = arith.addf %170, %172 : vector<256x128xf32>
    %174 = arith.addf %173, %1 : vector<256x128xf32>
    %c0_69 = arith.constant 0 : index
    %c0_70 = arith.constant 0 : index
    %c0_71 = arith.constant 0 : index
    %175 = vector.load %arg12[%c0_69, %c0_70, %c0_71] : memref<1x256x128xf32, #tpu.memory_space<vmem>>, vector<1x256x128xf32>
    %176 = vector.shape_cast %175 : vector<1x256x128xf32> to vector<256x128xf32>
    %177 = vector.shape_cast %174 : vector<256x128xf32> to vector<1x256x128xf32>
    tpu.vector_store %arg12[%c0_69, %c0_70, %c0_71], %177 {strides = array<i32>} : memref<1x256x128xf32, #tpu.memory_space<vmem>>, vector<1x256x128xf32>,
    return
  }
  func.func @transform_0(%arg0: i32) -> (i32, i32, i32) {
    %c0_i32 = arith.constant 0 : i32
    %c0_i32_0 = arith.constant 0 : i32
    %c0_i32_1 = arith.constant 0 : i32
    return %arg0, %c0_i32, %c0_i32_0 : i32, i32, i32
  }
  func.func @transform_1(%arg0: i32) -> (i32, i32) {
    %c0_i32 = arith.constant 0 : i32
    %c0_i32_0 = arith.constant 0 : i32
    %c0_i32_1 = arith.constant 0 : i32
    return %c0_i32, %c0_i32_0 : i32, i32
  }
  func.func @transform_2(%arg0: i32) -> (i32, i32) {
    %c0_i32 = arith.constant 0 : i32
    %c0_i32_0 = arith.constant 0 : i32
    %c0_i32_1 = arith.constant 0 : i32
    return %c0_i32, %c0_i32_0 : i32, i32
  }
  func.func @transform_3(%arg0: i32) -> (i32, i32) {
    %c0_i32 = arith.constant 0 : i32
    %c0_i32_0 = arith.constant 0 : i32
    %c0_i32_1 = arith.constant 0 : i32
    return %c0_i32, %c0_i32_0 : i32, i32
  }
  func.func @transform_4(%arg0: i32) -> (i32, i32) {
    %c0_i32 = arith.constant 0 : i32
    %c0_i32_0 = arith.constant 0 : i32
    %c0_i32_1 = arith.constant 0 : i32
    return %c0_i32, %c0_i32_0 : i32, i32
  }
  func.func @transform_5(%arg0: i32) -> (i32, i32) {
    %c0_i32 = arith.constant 0 : i32
    %c0_i32_0 = arith.constant 0 : i32
    %c0_i32_1 = arith.constant 0 : i32
    return %c0_i32, %c0_i32_0 : i32, i32
  }
  func.func @transform_6(%arg0: i32) -> (i32, i32) {
    %c0_i32 = arith.constant 0 : i32
    %c0_i32_0 = arith.constant 0 : i32
    %c0_i32_1 = arith.constant 0 : i32
    return %c0_i32, %c0_i32_0 : i32, i32
  }
  func.func @transform_7(%arg0: i32) -> (i32, i32) {
    %c0_i32 = arith.constant 0 : i32
    %c0_i32_0 = arith.constant 0 : i32
    %c0_i32_1 = arith.constant 0 : i32
    return %c0_i32, %c0_i32_0 : i32, i32
  }
  func.func @transform_8(%arg0: i32) -> (i32, i32) {
    %c0_i32 = arith.constant 0 : i32
    %c0_i32_0 = arith.constant 0 : i32
    %c0_i32_1 = arith.constant 0 : i32
    return %c0_i32, %c0_i32_0 : i32, i32
  }
  func.func @transform_9(%arg0: i32) -> (i32, i32) {
    %c0_i32 = arith.constant 0 : i32
    %c0_i32_0 = arith.constant 0 : i32
    %c0_i32_1 = arith.constant 0 : i32
    return %c0_i32, %c0_i32_0 : i32, i32
  }
  func.func @transform_10(%arg0: i32) -> (i32, i32) {
    %c0_i32 = arith.constant 0 : i32
    %c0_i32_0 = arith.constant 0 : i32
    %c0_i32_1 = arith.constant 0 : i32
    return %c0_i32, %c0_i32_0 : i32, i32
  }
  func.func @transform_11(%arg0: i32) -> (i32, i32, i32) {
    %c0_i32 = arith.constant 0 : i32
    %c0_i32_0 = arith.constant 0 : i32
    %c0_i32_1 = arith.constant 0 : i32
    return %arg0, %c0_i32, %c0_i32_0 : i32, i32, i32
  }
}

</mosaic_0001>

<bundles_post_ra>
// kernel: tpu_custom_call.1
= control target key start
LH: loop header
LB: loop body
LE: loop exit
PB: predicated region body
PF: predicated region fallthrough
CT: control target
= control target key end

     0   :  { %16 = vsyncpa [#allocation3], 0  ;;  %s7501_s0 = inlined_call_operand.hbm [shape: f32[2,256,128], index: 0, kind: input, shape index: {}]   ;;  %s7502_s1 = inlined_call_operand.vmem [shape: bf16[128,32], index: 1, kind: input, shape index: {}]   ;;  %s7503_s2 = inlined_call_operand.vmem [shape: f32[1,32], index: 2, kind: input, shape index: {}]   ;;  %s7504_s3 = inlined_call_operand.vmem [shape: f32[9,32], index: 3, kind: input, shape index: {}]   ;;  %s7505_s4 = inlined_call_operand.vmem [shape: f32[1,32], index: 4, kind: input, shape index: {}]   ;;  %s7506_s5 = inlined_call_operand.vmem [shape: f32[8,32], index: 5, kind: input, shape index: {}]   ;;  %s7507_s6 = inlined_call_operand.vmem [shape: f32[8,1], index: 6, kind: input, shape index: {}]   ;;  %s7508_s7 = inlined_call_operand.vmem [shape: f32[8,32], index: 7, kind: input, shape index: {}]   ;;  %s7509_s8 = inlined_call_operand.vmem [shape: f32[1,32], index: 8, kind: input, shape index: {}]   ;;  %s7510_s9 = inlined_call_operand.vmem [shape: bf16[32,128], index: 9, kind: input, shape index: {}]   ;;  %s7511_s10 = inlined_call_operand.vmem [shape: f32[1,128], index: 10, kind: input, shape index: {}]   ;;  %s7512_s11 = inlined_call_operand.hbm [shape: f32[2,256,128], index: 11, kind: output, shape index: {}]  }
   0x1   :  { %18 = vsyncpa [#allocation3 + $0x1], 0 }
   0x2   :  { %19 = vsyncpa [#allocation4], 0 }
   0x3   :  { %21 = vsyncpa [#allocation4 + $0x1], 0  ;;  %s3882_s17 = smov 0   ;;  %s3884_s18 = smov 0  }
   0x4   :  { %s3886_s19 = smov 0   ;;  %s3888_s20 = smov 0  }
   0x5 LB: > { %7722 = sst [smem:[#allocation8_spill]] %s3809_s19  ;;  %s3903_s21 = sadd.s32 4294967295, %s3813_s20   ;;  %s3813_s20 = sphi %s3888_s20, %s8358_s20   ;;  %s3809_s19 = sphi %s3886_s19, %s8355_s19   ;;  %s3805_s18 = sphi %s3884_s18, %s8357_s18   ;;  %s3801_s17 = sphi %s3882_s17, %s8356_s17  }
   0x6   : > { %s3421_s22 = sadd.s32 4294967294, %s3813_s20   ;;  %s3907_s23 = sadd.s32 1, %s3813_s20  }
   0x7   : > { %s34_s24 = sadd.s32 1, %s3809_s19  ;;  %s31_s25 = ssub.s32 %s3813_s20, %s3907_s23 }
   0x8   : > { %p41_p0 = scmp.ne.s32.totalorder %s3809_s19, %s3805_s18  ;;  %p32_p1 = scmp.eq.s32.totalorder %s31_s25, 0 }
   0x9   : > { %p42_p2 = scmp.eq.s32.totalorder %s3813_s20, 0  ;;  %p47_p3 = scmp.ne.s32.totalorder %s3805_s18, %s3801_s17 }
   0xa   : > { %p48_p4 = scmp.eq.s32.totalorder %s3903_s21, 0  ;;  %p281_p7 = scmp.eq.s32.totalorder %s3903_s21, 1 }
   0xb   : > { %s3919_s26 = scalar_select %p32_p1, %s3809_s19, %s34_s24  }
   0xc   : > { %p3921_p5 = por %p42_p2, %p41_p0  ;;  %p3925_p6 = por %p48_p4, %p47_p3 }
   0xd   : > { %7723 = sst [smem:[#allocation9_spill]] %s3919_s26  ;;  %p287_p8 = scmp.eq.s32.totalorder %s3421_s22, 1 }
   0xe   : > { %p3613_p10 = scmp.lt.s32.totalorder %s3813_s20, 2  ;;  %p3932_p11 = por %p281_p7, %p41_p0 }
   0xf   : > { %p3936_p12 = por %p287_p8, %p47_p3  ;;  %s337_s12 = sand.u32 1, %s3809_s19  }
  0x10   : > { %s7726_s29 = scalar_select %p3932_p11, 1, 0 }
  0x11   : > { %s7727_s30 = scalar_select %p3936_p12, 1, 0 }
  0x12   : > { %s3473_s13 = sshll.u32 %s3813_s20, 12  ;;  %s3424_s14 = sshll.u32 %s337_s12, 8 }
  0x13   : > { %s3945_s24 = scalar_lea.hbm %s7501_s0, %s3473_s13  ;;  %s341_s22 = scalar_lea.vmem [#allocation2], %s3424_s14 }
  0x14   : > { %s348_s25 = sshll.u32 %s341_s22, 4  ;;  %p3949_p13 = pnand %p3613_p10, %p3921_p5  ;;  %s3953_s25 = int_to_ptr.vmem [resolvable:$true] %s348_s25 }
  0x15   : > { %s3955_s19 = scalar_lea.sflag [#allocation3], %s337_s12  ;;  %s3717_s15 = scalar_lea.hbm %s3945_s24, 4096 }
  0x16   : > { %p3718_p0 = scmp.ne.s32.totalorder %s3945_s24, %s3717_s15  ;;  %p3719_p1 = pneg %p3949_p13 }
  0x17   : > { %s3722_s14 = scalar_lea.hbm %s7501_s0, 8192  ;;  %p3723_p4 = scmp.lt.u32.totalorder %s3945_s24, %s7501_s0 }
  0x18   : > { %p3720_p2 = pnand %p3719_p1, %p3718_p0  ;;  %p3724_p5 = scmp.lt.u32.totalorder %s3722_s14, %s3717_s15 }
  0x19   : > { %p3726_p8 = scmp.lt.u32.totalorder %s3717_s15, %s3945_s24 }
  0x1a   : > { %p3721_p3 = pneg %p3720_p2  ;;  %p3725_p7 = por %p3724_p5, %p3723_p4 }
  0x1c   : > { %p3727_p10 = por %p3726_p8, %p3725_p7 }
  0x1e   : > { %p3728_p9 = pnand %p3727_p10, %p3721_p3 }
  0x20   : > { %3731 = shalt.err (!%p3728_p9)
}
  0x21   : > { %s3732_s12 = scalar_lea.vmem %s3953_s25, 4096  ;;  %s3815_s13 = smov [#allocation2]  }
  0x22   : > { %p3733_p0 = scmp.ne.s32.totalorder %s3953_s25, %s3732_s12  ;;  %s3737_s27 = sshll.u32 %s3815_s13, 4  ;;  %s3738_s27 = int_to_ptr.vmem [resolvable:$false] %s3737_s27 }
  0x23   : > { %s3739_s16 = scalar_lea.vmem %s3738_s27, 8192  ;;  %p3740_p11 = scmp.lt.s32.totalorder %s3953_s25, %s3738_s27 }
  0x24   : > { %p3735_p2 = pnand %p3733_p0, %p3719_p1  ;;  %p3741_p4 = scmp.lt.s32.totalorder %s3739_s16, %s3732_s12 }
  0x26   : > { %p3736_p12 = pneg %p3735_p2  ;;  %p3742_p5 = por %p3741_p4, %p3740_p11 }
  0x28   : > { %p3743_p7 = pnand %p3742_p5, %p3736_p12 }
  0x2a   : > { %3746 = shalt.err (!%p3743_p7)
}
  0x2b   : > { %s3816_s15 = smov 128   ;;  %s3817_s14 = smov 8  }
  0x2c   : > { %3608 = dma.hbm_to_vmem [thread:$0]  (!%p3949_p13), %s3945_s24, 4096, %s3953_s25, %s3955_s19, %s3816_s15, %s3816_s15, %s3817_s14  }
  0x2d   : > { %p3427_p9 = scmp.ge.s32.totalorder %s3813_s20, 1  ;;  %p356_p1 = scmp.lt.s32.totalorder %s3813_s20, 3 }
  0x2f   : > { %p357_p3 = pnand %p3427_p9, %p356_p1 }
  0x31   : > { %360 = sbr.rel (%p357_p3) target bundleno = 1366 (0x556), region = 64 }
  0x38   : > { %s3986_s22 = sand.u32 1, %s3805_s18  }
  0x39   : > { %s3428_s12 = sshll.u32 %s3986_s22, 8  ;;  %s363_s13 = scalar_lea.sflag [#allocation3], %s3986_s22 }
  0x3a   : > { %s3992_s27 = scalar_lea.vmem [#allocation2], %s3428_s12 }
  0x3b   : > { %3792 = dma.done.wait (%p3925_p6), %s363_s13, 4096  }
  0x3c   : > { %3794 = vsyncadd (%p3925_p6), %s363_s13, 4294963200  ;;  %v3653_v0 = vld [vmem:[%s7502_s1] sm:$0xff]   ;;  %v3654_v1 = vld [vmem:[%s7502_s1 + $0x8] sm:$0xff]   ;;  %v847_v57 = vlaneseq  ;;  %s7358_s28 = scalar_lea.vmem [#allocation5], %s3428_s12  ;;  %s3474_s12 = sshll.u32 %s3903_s21, 12 }
  0x3d   : > { %3517 = vmatprep.subr.bf16.mxu0 %v3653_v0  ;;  %v3655_v2 = vld [vmem:[%s7502_s1 + $0x10] sm:$0xff]   ;;  %v3656_v3 = vld [vmem:[%s7502_s1 + $0x18] sm:$0xff]   ;;  %v406_v4 = vld [vmem:[%s3992_s27] sm:$0xff]  ;;  %s3348_s14 = sshll.u32 %s7358_s28, 4  ;;  %s7451_s21 = scalar_lea.hbm %s7512_s11, %s3474_s12  ;;  %s7453_s14 = int_to_ptr.vmem [resolvable:$true] %s3348_s14 }
  0x3e   : > { %3518 = vmatpush3.bf16.msra.mxu0 %v3653_v0  ;;  %v407_v5 = vld [vmem:[%s3992_s27 + $0x8] sm:$0xff]  ;;  %v3657_v7 = vld [vmem:[%s7502_s1 + $0x20] sm:$0xff]   ;;  %v3659_v9 = vld [vmem:[%s7502_s1 + $0x30] sm:$0xff]   ;;  %v4060_v61 = vshrl.u32 %v847_v57, 7  ;;  %s3335_s26 = scalar_lea.sflag [#allocation4], %s3986_s22  ;;  %s3747_s24 = scalar_lea.vmem %s7453_s14, 4096 }
  0x3f   : > { %3519 = vmatprep.subr.bf16.mxu0 %v3654_v1  ;;  %v438_v6 = vpack.c.bf16 %v407_v5, %v406_v4  ;;  %v3658_v8 = vld [vmem:[%s7502_s1 + $0x28] sm:$0xff]   ;;  %v3660_v10 = vld [vmem:[%s7502_s1 + $0x38] sm:$0xff]   ;;  %v408_v11 = vld [vmem:[%s3992_s27 + $0x10] sm:$0xff]  ;;  %p3748_p6 = scmp.ne.s32.totalorder %s7453_s14, %s3747_s24  ;;  %p8351_p11 = scmp.ne.s32.totalorder %s7726_s29, 0 }
  0x40   : > { %v409_v12 = vld [vmem:[%s3992_s27 + $0x18] sm:$0xff]  ;;  %v410_v13 = vld [vmem:[%s3992_s27 + $0x20] sm:$0xff]  ;;  %v411_v14 = vld [vmem:[%s3992_s27 + $0x28] sm:$0xff]  ;;  %7729 = vst [vmem:[#allocation10_spill] sm:$0xff] %v4060_v61  ;;  %vm7549_vm2 = vcmp.lt.s32.totalorder %v4060_v61, 1  ;;  %vm7559_vm4 = vcmp.lt.s32.totalorder %v4060_v61, 7 }
  0x41   : > { %3533 = vmatprep.mubr.bf16.mxu0 %v438_v6  ;;  %v439_v15 = vpack.c.bf16 %v409_v12, %v408_v11  ;;  %v440_v16 = vpack.c.bf16 %v411_v14, %v410_v13  ;;  %v412_v17 = vld [vmem:[%s3992_s27 + $0x30] sm:$0xff]  ;;  %v413_v18 = vld [vmem:[%s3992_s27 + $0x38] sm:$0xff]  ;;  %v414_v19 = vld [vmem:[%s3992_s27 + $0x40] sm:$0xff]  ;;  %v4069_v12 = vadd.s32 40, %v4060_v61  ;;  %v4072_v14 = vadd.s32 24, %v4060_v61  ;;  %p3749_p12 = pnand %p3748_p6, %p8351_p11  ;;  %s3819_s25 = smov [#allocation5]  }
  0x42   : > { %3520 = vmatpush3.bf16.msra.mxu0 %v3654_v1  ;;  %v415_v20 = vld [vmem:[%s3992_s27 + $0x48] sm:$0xff]  ;;  %v441_v21 = vpack.c.bf16 %v413_v18, %v412_v17  ;;  %v416_v23 = vld [vmem:[%s3992_s27 + $0x50] sm:$0xff]  ;;  %v417_v24 = vld [vmem:[%s3992_s27 + $0x58] sm:$0xff]  ;;  %s3751_s16 = sshll.u32 %s3819_s25, 4  ;;  %s3752_s16 = int_to_ptr.vmem [resolvable:$false] %s3751_s16 }
  0x43   : > { %3521 = vmatprep.subr.bf16.mxu0 %v3655_v2  ;;  %v442_v22 = vpack.c.bf16 %v415_v20, %v414_v19  ;;  %v418_v25 = vld [vmem:[%s3992_s27 + $0x60] sm:$0xff]  ;;  %v419_v26 = vld [vmem:[%s3992_s27 + $0x68] sm:$0xff]  ;;  %v443_v27 = vpack.c.bf16 %v417_v24, %v416_v23  ;;  %v420_v29 = vld [vmem:[%s3992_s27 + $0x70] sm:$0xff]  ;;  %v7522_v24 = vshra.s32 %v4069_v12, 4  ;;  %p3750_p13 = pneg %p3749_p12  ;;  %s3753_s15 = scalar_lea.vmem %s3752_s16, 8192 }
  0x44   : > { %v444_v28 = vpack.c.bf16 %v419_v26, %v418_v25  ;;  %v421_v30 = vld [vmem:[%s3992_s27 + $0x78] sm:$0xff]  ;;  %v422_v31 = vld [vmem:[%s3992_s27 + $0x80] sm:$0xff]  ;;  %v423_v32 = vld [vmem:[%s3992_s27 + $0x88] sm:$0xff]  ;;  %p3754_p8 = scmp.lt.s32.totalorder %s7453_s14, %s3752_s16  ;;  %p3755_p10 = scmp.lt.s32.totalorder %s3753_s15, %s3747_s24 }
  0x45   : > { %v445_v33 = vpack.c.bf16 %v421_v30, %v420_v29  ;;  %v446_v34 = vpack.c.bf16 %v423_v32, %v422_v31  ;;  %v424_v35 = vld [vmem:[%s3992_s27 + $0x90] sm:$0xff]  ;;  %v425_v36 = vld [vmem:[%s3992_s27 + $0x98] sm:$0xff]  ;;  %v426_v37 = vld [vmem:[%s3992_s27 + $0xa0] sm:$0xff]  ;;  %v915_v29 = vand.u32 15, %v4072_v14  ;;  %v4080_v31 = vadd.s32 64, %v4060_v61 }
  0x46   : > { %3522 = vmatpush3.bf16.msra.mxu0 %v3655_v2  ;;  %v427_v38 = vld [vmem:[%s3992_s27 + $0xa8] sm:$0xff]  ;;  %v447_v39 = vpack.c.bf16 %v425_v36, %v424_v35  ;;  %v428_v41 = vld [vmem:[%s3992_s27 + $0xb0] sm:$0xff]  ;;  %v429_v42 = vld [vmem:[%s3992_s27 + $0xb8] sm:$0xff]  ;;  %v917_v35 = vand.u32 15, %v4069_v12  ;;  %vm4098_vm3 = vcmp.ge.s32.totalorder %v7522_v24, 1  ;;  %p3756_p0 = por %p3755_p10, %p3754_p8 }
  0x47   : > { %3523 = vmatprep.subr.bf16.mxu0 %v3656_v3  ;;  %v448_v40 = vpack.c.bf16 %v427_v38, %v426_v37  ;;  %v430_v43 = vld [vmem:[%s3992_s27 + $0xc0] sm:$0xff]  ;;  %v431_v44 = vld [vmem:[%s3992_s27 + $0xc8] sm:$0xff]  ;;  %v449_v45 = vpack.c.bf16 %v429_v42, %v428_v41  ;;  %v432_v47 = vld [vmem:[%s3992_s27 + $0xd0] sm:$0xff]  ;;  %v4104_v37 = vadd.s32 48, %v4060_v61  ;;  %vm4116_vm6 = vcmp.lt.s32.totalorder %v915_v29, 15 }
  0x48   : > { %v450_v46 = vpack.c.bf16 %v431_v44, %v430_v43  ;;  %v433_v48 = vld [vmem:[%s3992_s27 + $0xd8] sm:$0xff]  ;;  %v434_v49 = vld [vmem:[%s3992_s27 + $0xe0] sm:$0xff]  ;;  %v435_v50 = vld [vmem:[%s3992_s27 + $0xe8] sm:$0xff]  ;;  %v4233_v29 = vadd.s32 56, %v4060_v61  ;;  %vm4256_vm9 = vcmp.lt.s32.totalorder %v917_v35, 15  ;;  %p3757_p2 = pnand %p3756_p0, %p3750_p13 }
  0x49   : > { %v451_v51 = vpack.c.bf16 %v433_v48, %v432_v47  ;;  %v452_v52 = vpack.c.bf16 %v435_v50, %v434_v49  ;;  %v436_v53 = vld [vmem:[%s3992_s27 + $0xf0] sm:$0xff]  ;;  %v437_v54 = vld [vmem:[%s3992_s27 + $0xf8] sm:$0xff]  ;;  %v4057_v56 = vld [vmem:[%s7503_s2] ss:$0 sm:$0xff]  ;;  %v918_v57 = vand.u32 15, %v4104_v37 }
  0x4a   : > { %3524 = vmatpush3.bf16.msra.mxu0 %v3656_v3  ;;  %v453_v55 = vpack.c.bf16 %v437_v54, %v436_v53  ;;  %v4125_v43 = vld [vmem:[%s7504_s3] ss:$0 sm:$0xff]  ;;  %7751 = vst [vmem:[#allocation22_spill] sm:$0xff] %v4233_v29 }
  0x4b   : > { %3525 = vmatprep.subr.bf16.mxu0 %v3657_v7  ;;  %7744 = vst [vmem:[#allocation15_spill] sm:$0xff] %v4125_v43  ;;  %vm4294_vm12 = vcmp.ge.s32.totalorder %v918_v57, 1  ;;  %v4307_v57 = vld [vmem:[%s7504_s3 + $0x4] ss:$0 sm:$0xff] }
  0x4c   : > { %7765 = vst [vmem:[#allocation28_spill] sm:$0xff] %v4307_v57 }
  0x4e   : > { %3526 = vmatpush3.bf16.msra.mxu0 %v3657_v7  ;;  %v4066_v7 = vadd.s32 32, %v4060_v61 }
  0x4f   : > { %3527 = vmatprep.subr.bf16.mxu0 %v3658_v8 }
  0x50   : > { %v7523_v20 = vshra.s32 %v4066_v7, 4 }
  0x52   : > { %3528 = vmatpush3.bf16.msra.mxu0 %v3658_v8  ;;  %vm4086_vm0 = vcmp.ge.s32.totalorder %v7523_v20, 1 }
  0x53   : > { %3529 = vmatprep.subr.bf16.mxu0 %v3659_v9 }
  0x56   : > { %3530 = vmatpush3.bf16.msra.mxu0 %v3659_v9 }
  0x57   : > { %3531 = vmatprep.subr.bf16.mxu0 %v3660_v10 }
  0x5a   : > { %3532 = vmatpush3.bf16.msra.mxu0 %v3660_v10 }
  0x5d   : > { %3534 = vmatmul.mubr.bf16.vlgmr.msra.gmra.mrb[0].mxu0 %v439_v15 }
  0x5e   : > { %3537 = vmatprep.mubr.bf16.mxu0 %v440_v16 }
  0x65   : > { %3538 = vmatmul.mubr.bf16.gmra.mrb[4].mxu0 %v441_v21  ;;  %v916_v21 = vand.u32 15, %v4066_v7 }
  0x66   : > { %3541 = vmatprep.mubr.bf16.mxu0 %v442_v22 }
  0x67   : > { %vm4090_vm1 = vcmp.ge.s32.totalorder %v916_v21, 1 }
  0x68   : > { %vm1084_vm7 = vmand %vm4086_vm0, %vm4090_vm1 }
  0x6d   : > { %3542 = vmatmul.mubr.bf16.gmra.mrb[8].mxu0 %v443_v27 }
  0x6e   : > { %3545 = vmatprep.mubr.bf16.mxu0 %v444_v28  ;;  %v7517_v28 = vshra.s32 %v4072_v14, 4 }
  0x70   : > { %vm4112_vm5 = vcmp.ge.s32.totalorder %v7517_v28, 1 }
  0x71   : > { %vm1542_vm8 = vmand %vm4112_vm5, %vm4116_vm6 }
  0x75   : > { %3546 = vmatmul.mubr.bf16.gmra.mrb[12].mxu0 %v445_v33 }
  0x76   : > { %3549 = vmatprep.mubr.bf16.mxu0 %v446_v34 }
  0x7d   : > { %3550 = vmatmul.mubr.bf16.gmra.mrb[16].mxu0 %v447_v39 }
  0x7e   : > { %3553 = vmatprep.mubr.bf16.mxu0 %v448_v40 }
  0x85   : > { %3554 = vmatmul.mubr.bf16.gmra.mrb[20].mxu0 %v449_v45  ;;  %v7518_v45 = vshra.s32 %v4080_v31, 4 }
  0x86   : > { %3557 = vmatprep.mubr.bf16.mxu0 %v450_v46 }
  0x87   : > { %vm4281_vm10 = vcmp.ge.s32.totalorder %v7518_v45, 1 }
  0x8d   : > { %3558 = vmatmul.mubr.bf16.gmra.mrb[24].mxu0 %v451_v51 }
  0x8e   : > { %3561 = vmatprep.mubr.bf16.mxu0 %v452_v52 }
  0x95   : > { %3562 = vmatmul.mubr.bf16.gmra.mrb[28].mxu0 %v453_v55  ;;  %v7521_v55 = vshra.s32 %v4104_v37, 4 }
  0x97   : > { %vm4290_vm11 = vcmp.ge.s32.totalorder %v7521_v55, 1 }
 0x130   : > { %v3535_v58 = vpop.f32.mrb[0].mxu0 }
 0x131   : > { %v568_v59 = vadd.f32 %v3535_v58, %v4057_v56  ;;  %v559_v60 = vpop.f32.mrb[1].mxu0 }
 0x132   : > { %v560_v62 = vadd.f32 %v4057_v56, %v559_v60  ;;  %v3536_v63 = vpop.f32.mrb[2].mxu0 }
 0x133   : > { %v688_v0 = vadd.f32 3.0, %v568_v59  ;;  %v571_v1 = vadd.f32 %v3536_v63, %v4057_v56  ;;  %v562_v2 = vpop.f32.mrb[3].mxu0  ;;  %v4164_v63 = vadd.s32 72, %v4060_v61 }
 0x134   : > { %v686_v3 = vadd.f32 3.0, %v560_v62  ;;  %v563_v4 = vadd.f32 %v4057_v56, %v562_v2  ;;  %v4176_v2 = vld [vmem:[%s7505_s4] ss:$0 sm:$0xff] }
 0x135   : > { %v720_v5 = vmax.f32 %v688_v0, 0.0  ;;  %v689_v6 = vadd.f32 3.0, %v571_v1  ;;  %7747 = vst [vmem:[#allocation18_spill] sm:$0xff] %v4176_v2 }
 0x136   : > { %v718_v8 = vmax.f32 %v686_v3, 0.0  ;;  %v687_v9 = vadd.f32 3.0, %v563_v4 }
 0x137   : > { %v752_v10 = vmin.f32 %v720_v5, 6.0  ;;  %v721_v11 = vmax.f32 %v689_v6, 0.0  ;;  %v4188_v6 = vld [vmem:[%s7504_s3 + $0x1] ss:$0 sm:$0xff] }
 0x138   : > { %v719_v13 = vmax.f32 %v687_v9, 0.0  ;;  %v3539_v15 = vpop.f32.mrb[4].mxu0  ;;  %v750_v16 = vmin.f32 %v718_v8, 6.0 }
 0x139   : > { %v753_v17 = vmin.f32 %v721_v11, 6.0  ;;  %v575_v18 = vpop.f32.mrb[5].mxu0  ;;  %v784_v19 = vmul.f32 %v752_v10, %v568_v59  ;;  %v4128_v44 = vadd.f32 %v3539_v15, %v4057_v56 }
 0x13a   : > { %v751_v22 = vmin.f32 %v719_v13, 6.0  ;;  %v3540_v23 = vpop.f32.mrb[6].mxu0  ;;  %v782_v30 = vmul.f32 %v750_v16, %v560_v62  ;;  %v4132_v46 = vadd.f32 %v4057_v56, %v575_v18 }
 0x13b   : > { %v578_v25 = vpop.f32.mrb[7].mxu0  ;;  %v785_v26 = vmul.f32 %v753_v17, %v571_v1  ;;  %v4082_v32 = vmul.f32 0.16666667, %v784_v19  ;;  %v4183_v5 = vadd.f32 %v3540_v23, %v4057_v56 }
 0x13c   : > { %v783_v27 = vmul.f32 %v751_v22, %v563_v4  ;;  %v4120_v42 = vmul.f32 0.16666667, %v782_v30  ;;  %v692_v4 = vadd.f32 3.0, %v4128_v44  ;;  %v690_v10 = vadd.f32 3.0, %v4132_v46 }
 0x13d   : > { %7730 = vst [vmem:[#allocation11_spill] sm:$0xff] %v4082_v32  ;;  %v4106_v38 = vmul.f32 0.16666667, %v785_v26  ;;  %v953_v48 = vrot.slane %v4082_v32, 7  ;;  %v1444_v49 = vrot.slane %v4082_v32, 1  ;;  %v4194_v11 = vadd.f32 %v4057_v56, %v578_v25 }
 0x13e   : > { %v4108_v39 = vmul.f32 0.16666667, %v783_v27  ;;  %7743 = vst [vmem:[#allocation14_spill] sm:$0xff] %v4120_v42  ;;  %v7516_v1 = vrot.slane %v4120_v42, 7  ;;  %v7515_v8 = vrot.slane %v4120_v42, 1  ;;  %v1345_v25 = vsel %vm4086_vm0, %v4082_v32, 0.0 }
 0x13f   : > { %7737 = vst [vmem:[#allocation12_spill] sm:$0xff] %v4106_v38  ;;  %v7520_v50 = vrot.slane %v4106_v38, 7  ;;  %v7519_v51 = vrot.slane %v4106_v38, 1  ;;  %v1346_v60 = vsel %vm4098_vm3, %v4106_v38, 0.0  ;;  %v1382_v45 = vmul.f32 %v4188_v6, %v1345_v25 }
 0x140   : > { %7738 = vst [vmem:[#allocation13_spill] sm:$0xff] %v4108_v39  ;;  %v4134_v47 = vpop.f32.mrb[8].mxu0  ;;  %v952_v53 = vrot.slane %v4108_v39, 7  ;;  %v1383_v13 = vmul.f32 %v4188_v6, %v1346_v60  ;;  %v1344_v17 = vsel %vm4112_vm5, %v4108_v39, 0.0  ;;  %v1443_v22 = vrot.slane %v4108_v39, 1 }
 0x141   : > { %v4140_v52 = vpop.f32.mrb[9].mxu0  ;;  %v4152_v59 = vsel %vm7549_vm2, %v953_v48, %v7520_v50  ;;  %v4161_v62 = vsel %vm7559_vm4, %v1444_v49, %v7519_v51  ;;  %v7793_v42 = vrot.slane %v4106_v38, 1 }
 0x142   : > { %v4146_v58 = vpop.f32.mrb[10].mxu0  ;;  %7745 = vst [vmem:[#allocation16_spill] sm:$0xff] %v4152_v59  ;;  %7746 = vst [vmem:[#allocation17_spill] sm:$0xff] %v4161_v62  ;;  %v1181_v3 = vsel %vm4098_vm3, %v4152_v59, 0.0  ;;  %v4199_v15 = vsel %vm7549_vm2, %v952_v53, %v953_v48  ;;  %v4205_v16 = vsel %vm7549_vm2, %v7516_v1, %v952_v53  ;;  %v4242_v53 = vld [vmem:[%s7504_s3 + $0x2] ss:$0 sm:$0xff]  ;;  %v4246_v60 = vsel %vm7559_vm4, %v1443_v22, %v1444_v49 }
 0x143   : > { %v4166_v0 = vpop.f32.mrb[11].mxu0  ;;  %v1218_v9 = vmul.f32 %v4125_v43, %v1181_v3  ;;  %7748 = vst [vmem:[#allocation19_spill] sm:$0xff] %v4199_v15  ;;  %7749 = vst [vmem:[#allocation20_spill] sm:$0xff] %v4205_v16  ;;  %v1179_v19 = vsel %vm4112_vm5, %v4205_v16, 0.0  ;;  %v1180_v21 = vsel %vm1084_vm7, %v4199_v15, 0.0  ;;  %v4252_v3 = vsel %vm7559_vm4, %v7515_v8, %v1443_v22 }
 0x144   : > { %v1216_v26 = vmul.f32 %v4125_v43, %v1179_v19  ;;  %v1217_v27 = vmul.f32 %v4125_v43, %v1180_v21  ;;  %7753 = vst [vmem:[#allocation24_spill] sm:$0xff] %v4246_v60  ;;  %7754 = vst [vmem:[#allocation25_spill] sm:$0xff] %v4252_v3  ;;  %v1381_v21 = vmul.f32 %v4188_v6, %v1344_v17  ;;  %v1638_v49 = vsel %vm1542_vm8, %v4246_v60, 0.0 }
 0x145   : > { %v1250_v18 = vadd.f32 %v4176_v2, %v1218_v9  ;;  %v724_v9 = vmax.f32 %v692_v4, 0.0  ;;  %v722_v22 = vmax.f32 %v690_v10, 0.0  ;;  %v1639_v35 = vsel %vm4086_vm0, %v4161_v62, 0.0  ;;  %v4276_v4 = vld [vmem:[%s7504_s3 + $0x3] ss:$0 sm:$0xff]  ;;  %vm1086_vm5 = vmand %vm4290_vm11, %vm4294_vm12 }
 0x146   : > { %v1249_v17 = vadd.f32 %v4176_v2, %v1217_v27  ;;  %v693_v10 = vadd.f32 3.0, %v4183_v5  ;;  %v1675_v33 = vmul.f32 %v4242_v53, %v1638_v49  ;;  %v7767_v60 = vshra.s32 %v4066_v7, 4  ;;  %vm1544_vm7 = vmand %vm4098_vm3, %vm4256_vm9 }
 0x147   : > { %v4237_v48 = vadd.f32 %v1383_v13, %v1250_v18  ;;  %v1248_v18 = vadd.f32 %v4176_v2, %v1216_v26  ;;  %v691_v26 = vadd.f32 3.0, %v4194_v11  ;;  %v756_v51 = vmin.f32 %v724_v9, 6.0 }
 0x148   : > { %v4225_v23 = vpop.f32.mrb[12].mxu0  ;;  %v754_v55 = vmin.f32 %v722_v22, 6.0  ;;  %v1414_v25 = vadd.f32 %v1382_v45, %v1249_v17  ;;  %v725_v9 = vmax.f32 %v693_v10, 0.0  ;;  %vm4316_vm13 = vcmp.lt.s32.totalorder %v7767_v60, 15 }
 0x149   : > { %7750 = vst [vmem:[#allocation21_spill] sm:$0xff] %v4225_v23  ;;  %v4235_v30 = vpop.f32.mrb[13].mxu0  ;;  %v1413_v1 = vadd.f32 %v1381_v21, %v1248_v18  ;;  %v1676_v18 = vmul.f32 %v4242_v53, %v1639_v35  ;;  %v1840_v21 = vmul.f32 %v4276_v4, %v4152_v59  ;;  %v788_v24 = vmul.f32 %v756_v51, %v4128_v44 }
 0x14a   : > { %7752 = vst [vmem:[#allocation23_spill] sm:$0xff] %v4235_v30  ;;  %v4254_v19 = vpop.f32.mrb[14].mxu0  ;;  %v723_v20 = vmax.f32 %v691_v26, 0.0  ;;  %v1909_v35 = vmul.f32 %v4307_v57, %v4106_v38  ;;  %v786_v22 = vmul.f32 %v754_v55, %v4132_v46  ;;  %v4330_v17 = vadd.f32 %v4134_v47, %v4057_v56 }
 0x14b   : > { %7755 = vst [vmem:[#allocation26_spill] sm:$0xff] %v4254_v19  ;;  %v4268_v8 = vpop.f32.mrb[15].mxu0  ;;  %v1707_v49 = vadd.f32 %v1675_v33, %v1413_v1  ;;  %v4322_v33 = vadd.s32 80, %v4060_v61  ;;  %v4326_v45 = vmul.f32 0.16666667, %v788_v24  ;;  %v1708_v51 = vadd.f32 %v1676_v18, %v1414_v25 }
 0x14c   : > { %7758 = vst [vmem:[#allocation27_spill] sm:$0xff] %v4268_v8  ;;  %v4334_v7 = vadd.f32 %v4057_v56, %v4140_v52  ;;  %v4338_v10 = vmul.f32 0.16666667, %v786_v22  ;;  %v757_v46 = vmin.f32 %v725_v9, 6.0  ;;  %v7773_v55 = vshra.s32 %v4164_v63, 4 }
 0x14d   : > { %v1872_v54 = vadd.f32 %v1840_v21, %v1707_v49  ;;  %v7777_v47 = vshra.s32 %v4069_v12, 4  ;;  %v7778_v21 = vmov 0  ;;  %v755_v52 = vmin.f32 %v723_v20, 6.0 }
 0x14e   : > { %7772 = vst [vmem:[#allocation32_spill] sm:$0xff] %v4338_v10  ;;  %vm4342_vm14 = vcmp.ge.s32.totalorder %v7773_v55, 1  ;;  %v919_v49 = vand.u32 15, %v4233_v29  ;;  %v4356_v25 = vadd.s32 96, %v4060_v61  ;;  %v7782_v9 = vand.u32 15, %v4080_v31 }
 0x14f   : > { %v1941_v24 = vadd.f32 %v1909_v35, %v1872_v54  ;;  %vm4350_vm15 = vcmp.lt.s32.totalorder %v7777_v47, 15  ;;  %v7783_v22 = vmov 0  ;;  %v4372_v35 = vadd.s32 104, %v4060_v61 }
 0x150   : > { %v4310_v50 = vpop.f32.mrb[16].mxu0  ;;  %v7779_v21 = vsel %vm4350_vm15, 4294967295, %v7778_v21  ;;  %7781 = vst [vmem:[#allocation35_spill] sm:$0xff] %v4356_v25  ;;  %vm4360_vm0 = vcmp.ge.s32.totalorder %v7782_v9, 1  ;;  %v957_v55 = vrot.slane %v4326_v45, 7  ;;  %v7786_v9 = vshra.s32 %v4233_v29, 4 }
 0x151   : > { %7766 = vst [vmem:[#allocation29_spill] sm:$0xff] %v4310_v50  ;;  %v4324_v44 = vpop.f32.mrb[17].mxu0  ;;  %7780 = vst [vmem:[#allocation34_spill] sm:$0xff] %v7779_v21  ;;  %v7784_v22 = vsel %vm4360_vm0, 4294967295, %v7783_v22  ;;  %v4387_v20 = vadd.f32 3.0, %v4330_v17  ;;  %v4390_v12 = vadd.f32 3.0, %v4334_v7  ;;  %v789_v15 = vmul.f32 %v757_v46, %v4183_v5 }
 0x152   : > { %7770 = vst [vmem:[#allocation30_spill] sm:$0xff] %v4324_v44  ;;  %v4336_v60 = vpop.f32.mrb[18].mxu0  ;;  %7785 = vst [vmem:[#allocation36_spill] sm:$0xff] %v7784_v22  ;;  %vm4382_vm8 = vcmp.ge.s32.totalorder %v7786_v9, 1  ;;  %v1349_v39 = vsel %vm4281_vm10, %v4326_v45, 0.0  ;;  %v7789_v16 = vrot.slane %v4338_v10, 7 }
 0x153   : > { %7771 = vst [vmem:[#allocation31_spill] sm:$0xff] %v4336_v60  ;;  %v4346_v18 = vpop.f32.mrb[19].mxu0  ;;  %v7790_v47 = vrot.slane %v4106_v38, 7  ;;  %v1347_v3 = vsel %vm4290_vm11, %v4338_v10, 0.0  ;;  %v7792_v59 = vrot.slane %v4338_v10, 1  ;;  %vm1088_vm3 = vmand %vm4281_vm10, %vm4360_vm0  ;;  %v7805_v54 = vrot.slane %v4338_v10, 1 }
 0x154   : > { %7776 = vst [vmem:[#allocation33_spill] sm:$0xff] %v4346_v18  ;;  %v4423_v5 = vld [vmem:[%s7504_s3 + $0x5] ss:$0 sm:$0xff]  ;;  %v4447_v44 = vmul.f32 0.16666667, %v789_v15  ;;  %v7854_v27 = vmov 0 }
 0x155   : > { %v4401_v9 = vsel %vm7549_vm2, %v7790_v47, %v7789_v16  ;;  %v4414_v32 = vsel %vm7559_vm4, %v7793_v42, %v7792_v59  ;;  %v787_v47 = vmul.f32 %v755_v52, %v4194_v11  ;;  %v7795_v52 = vmov 0 }
 0x156   : > { %7791 = vst [vmem:[#allocation37_spill] sm:$0xff] %v4401_v9  ;;  %v1182_v62 = vsel %vm1086_vm5, %v4401_v9, 0.0  ;;  %7794 = vst [vmem:[#allocation38_spill] sm:$0xff] %v4414_v32  ;;  %v1804_v16 = vsel %vm4090_vm1, %v4401_v9, 0.0  ;;  %v1640_v42 = vsel %vm1544_vm7, %v4414_v32, 0.0  ;;  %v2037_v11 = vsel %vm4116_vm6, %v4414_v32, 0.0 }
 0x157   : > { %v1219_v46 = vmul.f32 %v4125_v43, %v1182_v62  ;;  %v1841_v59 = vmul.f32 %v4276_v4, %v1804_v16  ;;  %vm4436_vm5 = vcmp.lt.s32.totalorder %v919_v49, 15  ;;  %v1448_v9 = vrot.slane %v4326_v45, 1  ;;  %7798 = vst [vmem:[#allocation40_spill] sm:$0xff] %v4447_v44 }
 0x158   : > { %v7796_v52 = vsel %vm4436_vm5, 4294967295, %v7795_v52  ;;  %v1384_v62 = vmul.f32 %v4188_v6, %v1347_v3  ;;  %v1677_v36 = vmul.f32 %v4242_v53, %v1640_v42  ;;  %v2074_v38 = vmul.f32 %v4423_v5, %v2037_v11 }
 0x159   : > { %7797 = vst [vmem:[#allocation39_spill] sm:$0xff] %v7796_v52  ;;  %v1251_v18 = vadd.f32 %v4176_v2, %v1219_v46  ;;  %v1873_v60 = vadd.f32 %v1841_v59, %v1708_v51  ;;  %v1910_v16 = vmul.f32 %v4307_v57, %v4338_v10  ;;  %v2432_v49 = vsel %vm4316_vm13, %v4326_v45, 0.0  ;;  %v4466_v46 = vld [vmem:[%s7504_s3 + $0x7] ss:$0 sm:$0xff] }
 0x15a   : > { %v4452_v32 = vmul.f32 0.16666667, %v787_v47  ;;  %v1709_v3 = vadd.f32 %v1677_v36, %v4237_v48  ;;  %v4455_v50 = vadd.f32 %v2074_v38, %v1941_v24  ;;  %v7543_v51 = vrot.slane %v4447_v44, 7 }
 0x15b   : > { %v1416_v42 = vadd.f32 %v1384_v62, %v1251_v18  ;;  %v4457_v11 = vadd.f32 %v1910_v16, %v1873_v60  ;;  %v1350_v15 = vsel %vm4342_vm14, %v4447_v44, 0.0  ;;  %v4469_v47 = vmul.f32 %v4188_v6, %v1349_v39 }
 0x15c   : > { %v4473_v38 = vmul.f32 %v4307_v57, %v4326_v45  ;;  %v7544_v48 = vrot.slane %v4447_v44, 1  ;;  %v2433_v60 = vsel %vm4350_vm15, %v4447_v44, 0.0  ;;  %v4480_v24 = vmul.f32 %v4466_v46, %v2432_v49 }
 0x15d   : > { %v1008_v18 = vsel %vm7549_vm2, %v957_v55, %v7543_v51  ;;  %v1387_v39 = vmul.f32 %v4188_v6, %v1350_v15  ;;  %v956_v59 = vrot.slane %v4452_v32, 7  ;;  %v4502_v36 = vmul.f32 %v4307_v57, %v4447_v44  ;;  %v4515_v51 = vld [vmem:[%s7504_s3 + $0x6] ss:$0 sm:$0xff] }
 0x15e   : > { %v1185_v45 = vsel %vm4342_vm14, %v1008_v18, 0.0  ;;  %v4498_v62 = vsel %vm7559_vm4, %v1448_v9, %v7544_v48  ;;  %v2268_v16 = vsel %vm4350_vm15, %v1008_v18, 0.0  ;;  %v7799_v49 = vshra.s32 %v4072_v14, 4  ;;  %v4523_v14 = vpop.f32.mrb[20].mxu0 }
 0x15f   : > { %v1222_v48 = vmul.f32 %v4125_v43, %v1185_v45  ;;  %v1844_v8 = vmul.f32 %v4276_v4, %v1008_v18  ;;  %v2470_v19 = vmul.f32 %v4466_v46, %v2433_v60  ;;  %v1348_v29 = vsel %vm4382_vm8, %v4452_v32, 0.0  ;;  %7802 = vst [vmem:[#allocation41_spill] sm:$0xff] %v4523_v14 }
 0x160   : > { %vm4508_vm7 = vcmp.lt.s32.totalorder %v7799_v49, 15  ;;  %v1643_v49 = vsel %vm4281_vm10, %v4498_v62, 0.0  ;;  %v2305_v21 = vmul.f32 %v4515_v51, %v2268_v16  ;;  %v1009_v30 = vsel %vm7549_vm2, %v956_v59, %v957_v55  ;;  %vm2171_vm10 = vmand %vm4316_vm13, %vm4090_vm1 }
 0x161   : > { %v7803_v45 = vrot.slane %v4338_v10, 7  ;;  %v1254_v18 = vadd.f32 %v4176_v2, %v1222_v48  ;;  %v2629_v14 = vsel %vm4316_vm13, %v4498_v62, 0.0  ;;  %v1184_v55 = vsel %vm1088_vm3, %v1009_v30, 0.0  ;;  %vm2532_vm1 = vmand %vm4508_vm7, %vm4116_vm6 }
 0x162   : > { %v1221_v23 = vmul.f32 %v4125_v43, %v1184_v55  ;;  %v1447_v48 = vrot.slane %v4452_v32, 1  ;;  %v1806_v40 = vsel %vm4294_vm12, %v1009_v30, 0.0 }
 0x163   : > { %v1010_v60 = vsel %vm7549_vm2, %v7803_v45, %v956_v59  ;;  %v1385_v59 = vmul.f32 %v4188_v6, %v1348_v29  ;;  %vm1546_vm2 = vmand %vm4382_vm8, %vm4436_vm5  ;;  %v4554_v45 = vadd.f32 %v1387_v39, %v1254_v18 }
 0x164   : > { %v1183_v44 = vsel %vm4382_vm8, %v1010_v60, 0.0  ;;  %v1842_v22 = vmul.f32 %v4276_v4, %v1010_v60  ;;  %v1253_v29 = vadd.f32 %v4176_v2, %v1221_v23  ;;  %v1500_v52 = vsel %vm7559_vm4, %v1447_v48, %v1448_v9 }
 0x165   : > { %v1220_v16 = vmul.f32 %v4125_v43, %v1183_v44  ;;  %7804 = vst [vmem:[#allocation42_spill] sm:$0xff] %v4554_v45  ;;  %v1911_v44 = vmul.f32 %v4307_v57, %v4452_v32  ;;  %v4569_v39 = vsel %vm7559_vm4, %v7805_v54, %v1447_v48  ;;  %v1843_v23 = vmul.f32 %v4276_v4, %v1806_v40 }
 0x166   : > { %7806 = vst [vmem:[#allocation43_spill] sm:$0xff] %v4569_v39  ;;  %v1641_v18 = vsel %vm4290_vm11, %v4569_v39, 0.0  ;;  %v1874_v45 = vadd.f32 %v1842_v22, %v1709_v3  ;;  %v2039_v48 = vsel %vm4256_vm9, %v1500_v52, 0.0  ;;  %v2075_v1 = vmul.f32 %v4423_v5, %v4569_v39 }
 0x167   : > { %v1252_v55 = vadd.f32 %v4176_v2, %v1220_v16  ;;  %v1642_v16 = vsel %vm1546_vm2, %v1500_v52, 0.0  ;;  %v1678_v10 = vmul.f32 %v4242_v53, %v1641_v18  ;;  %v2076_v54 = vmul.f32 %v4423_v5, %v2039_v48 }
 0x168   : > { %v1679_v2 = vmul.f32 %v4242_v53, %v1642_v16  ;;  %v1943_v34 = vadd.f32 %v1911_v44, %v1874_v45  ;;  %v2266_v28 = vsel %vm4508_vm7, %v1010_v60, 0.0  ;;  %v2267_v22 = vsel %vm2171_vm10, %v1009_v30, 0.0  ;;  %v4605_v60 = vld [vmem:[%s7504_s3 + $0x8] ss:$0 sm:$0xff] }
 0x169   : > { %v1417_v9 = vadd.f32 %v1385_v59, %v1252_v55  ;;  %v1710_v57 = vadd.f32 %v1678_v10, %v1416_v42  ;;  %v2303_v3 = vmul.f32 %v4515_v51, %v2266_v28  ;;  %v4593_v59 = vpop.f32.mrb[21].mxu0  ;;  %v2107_v45 = vadd.f32 %v2075_v1, %v4457_v11 }
 0x16a   : > { %7807 = vst [vmem:[#allocation44_spill] sm:$0xff] %v4593_v59  ;;  %v2108_v44 = vadd.f32 %v2076_v54, %v1943_v34  ;;  %v2304_v55 = vmul.f32 %v4515_v51, %v2267_v22  ;;  %v2431_v10 = vsel %vm4508_vm7, %v4452_v32, 0.0  ;;  %v1680_v11 = vmul.f32 %v4242_v53, %v1643_v49 }
 0x16b   : > { %v1711_v40 = vadd.f32 %v1679_v2, %v1417_v9  ;;  %v1875_v2 = vadd.f32 %v1843_v23, %v1710_v57  ;;  %v2335_v42 = vadd.f32 %v2303_v3, %v4455_v50  ;;  %v2468_v41 = vmul.f32 %v4466_v46, %v2431_v10  ;;  %v4646_v3 = vpop.f32.mrb[22].mxu0 }
 0x16c   : > { %v2336_v18 = vadd.f32 %v2304_v55, %v2107_v45  ;;  %v2337_v16 = vadd.f32 %v2305_v21, %v2108_v44  ;;  %v2628_v9 = vsel %vm2532_vm1, %v1500_v52, 0.0  ;;  %v2666_v48 = vmul.f32 %v4605_v60, %v2629_v14  ;;  %7814 = vst [vmem:[#allocation48_spill] sm:$0xff] %v4646_v3 }
 0x16d   : > { %v1876_v30 = vadd.f32 %v1844_v8, %v1711_v40  ;;  %v2500_v15 = vadd.f32 %v2468_v41, %v2335_v42  ;;  %v2665_v32 = vmul.f32 %v4605_v60, %v2628_v9  ;;  %v728_v8 = vmax.f32 %v4387_v20, 0.0 }
 0x16e   : > { %v2501_v50 = vadd.f32 %v4480_v24, %v2336_v18  ;;  %v4612_v57 = vadd.f32 %v2470_v19, %v2337_v16  ;;  %v726_v23 = vmax.f32 %v4390_v12, 0.0  ;;  %v1418_v34 = vadd.f32 %v4469_v47, %v1253_v29 }
 0x16f   : > { %v2077_v49 = vmul.f32 %v4423_v5, %v4498_v62  ;;  %v4618_v21 = vadd.f32 %v2665_v32, %v2500_v15  ;;  %v1944_v52 = vadd.f32 %v4473_v38, %v1875_v2  ;;  %v603_v14 = vadd.f32 %v4146_v58, %v4057_v56 }
 0x170   : > { %v4623_v1 = vadd.f32 %v2666_v48, %v2501_v50  ;;  %v760_v20 = vmin.f32 %v728_v8, 6.0  ;;  %v758_v24 = vmin.f32 %v726_v23, 6.0  ;;  %v1712_v19 = vadd.f32 %v1680_v11, %v1418_v34  ;;  %v7830_v8 = vld [vmem:[#allocation21_spill] sm:$0xff]  ;;  %v7831_v23 = vld [vmem:[#allocation40_spill] sm:$0xff] }
 0x171   : > { %7808 = vst [vmem:[#allocation45_spill] sm:$0xff] %v4618_v21  ;;  %v921_v54 = vand.u32 15, %v4164_v63  ;;  %v4626_v12 = vadd.f32 %v2077_v49, %v1944_v52  ;;  %v4630_v47 = vadd.f32 %v4057_v56, %v4166_v0  ;;  %v7562_v62 = vshra.s32 %v4356_v25, 4 }
 0x172   : > { %7809 = vst [vmem:[#allocation46_spill] sm:$0xff] %v4623_v1  ;;  %v790_v38 = vmul.f32 %v758_v24, %v4334_v7  ;;  %v697_v29 = vadd.f32 3.0, %v603_v14  ;;  %v4635_v58 = vadd.f32 %v4502_v36, %v1876_v30  ;;  %v7810_v28 = vshra.s32 %v4322_v33, 4  ;;  %v7898_v36 = vld [vmem:[#allocation15_spill] sm:$0xff] }
 0x173   : > { %v4644_v22 = vadd.s32 88, %v4060_v61  ;;  %v792_v0 = vmul.f32 %v760_v20, %v4330_v17  ;;  %v7815_v7 = vand.u32 15, %v4322_v33  ;;  %v7561_v44 = vshra.s32 %v4372_v35, 4 }
 0x174   : > { %vm4639_vm2 = vcmp.ge.s32.totalorder %v7810_v28, 1  ;;  %v4649_v45 = vmul.f32 0.16666667, %v790_v38  ;;  %vm4658_vm11 = vcmp.lt.s32.totalorder %v921_v54, 15  ;;  %v695_v10 = vadd.f32 3.0, %v4630_v47  ;;  %v7837_v38 = vld [vmem:[#allocation23_spill] sm:$0xff] }
 0x175   : > { %7813 = vst [vmem:[#allocation47_spill] sm:$0xff] %v4644_v22  ;;  %vm4653_vm6 = vcmp.ge.s32.totalorder %v7815_v7, 1  ;;  %v924_v2 = vand.u32 15, %v4356_v25  ;;  %vm4666_vm13 = vcmp.ge.s32.totalorder %v7562_v62, 1  ;;  %v729_v30 = vmax.f32 %v697_v29, 0.0 }
 0x176   : > { %v7822_v42 = vshra.s32 %v4080_v31, 4  ;;  %v7564_v11 = vrot.slane %v4649_v45, 7  ;;  %v1351_v18 = vsel %vm4639_vm2, %v4649_v45, 0.0  ;;  %v7825_v16 = vshra.s32 %v4104_v37, 4 }
 0x177   : > { %v4695_v48 = vmul.f32 0.16666667, %v792_v0  ;;  %v7563_v15 = vrot.slane %v4649_v45, 1  ;;  %vm4700_vm1 = vcmp.ge.s32.totalorder %v7561_v44, 1  ;;  %v923_v37 = vand.u32 15, %v4644_v22 }
 0x178   : > { %vm4672_vm8 = vcmp.lt.s32.totalorder %v7822_v42, 15  ;;  %vm4686_vm7 = vcmp.lt.s32.totalorder %v7825_v16, 15  ;;  %v4707_v50 = vadd.f32 %v7830_v8, %v4057_v56  ;;  %v7832_v34 = vrot.slane %v7831_v23, 7 }
 0x179   : > { %vm7833_vm10 = vcmp.lt.s32.totalorder %v4060_v61, 1  ;;  %v1388_v52 = vmul.f32 %v4188_v6, %v1351_v18  ;;  %v7834_v20 = vshra.s32 %v4164_v63, 4  ;;  %v7835_v24 = vmov 0 }
 0x17a   : > { %v1007_v49 = vsel %vm7833_vm10, %v7832_v34, %v7564_v11  ;;  %v727_v54 = vmax.f32 %v695_v10, 0.0  ;;  %v4728_v29 = vadd.f32 %v4057_v56, %v7837_v38  ;;  %vm7838_vm10 = vmand %vm4639_vm2, %vm4653_vm6  ;;  %v7839_v0 = vrot.slane %v7831_v23, 1 }
 0x17b   : > { %vm4722_vm3 = vcmp.lt.s32.totalorder %v7834_v20, 15  ;;  %v1186_v28 = vsel %vm7838_vm10, %v1007_v49, 0.0  ;;  %vm7840_vm4 = vcmp.lt.s32.totalorder %v4060_v61, 7  ;;  %v1808_v10 = vsel %vm4360_vm0, %v1007_v49, 0.0  ;;  %vm7843_vm10 = vmand %vm4342_vm14, %vm4658_vm11  ;;  %v7847_v20 = vld [vmem:[#allocation28_spill] sm:$0xff] }
 0x17c   : > { %v7836_v24 = vsel %vm4722_vm3, 4294967295, %v7835_v24  ;;  %v1498_v63 = vsel %vm7840_vm4, %v7839_v0, %v7563_v15  ;;  %v761_v42 = vmin.f32 %v729_v30, 6.0  ;;  %vm2534_vm3 = vmand %vm4350_vm15, %vm4256_vm9  ;;  %v1223_v16 = vmul.f32 %v4125_v43, %v1186_v28 }
 0x17d   : > { %v1644_v8 = vsel %vm7843_vm10, %v1498_v63, 0.0  ;;  %v1845_v23 = vmul.f32 %v4276_v4, %v1808_v10  ;;  %v2434_v34 = vsel %vm4686_vm7, %v4649_v45, 0.0  ;;  %vm4757_vm4 = vcmp.ge.s32.totalorder %v924_v2, 1  ;;  %vm7849_vm9 = vmand %vm4686_vm7, %vm4294_vm12  ;;  %v7850_v10 = vld [vmem:[#allocation18_spill] sm:$0xff] }
 0x17e   : > { %v7844_v30 = vmov 0  ;;  %v1681_v13 = vmul.f32 %v4242_v53, %v1644_v8  ;;  %v1914_v38 = vmul.f32 %v7847_v20, %v4649_v45  ;;  %v2041_v28 = vsel %vm4436_vm5, %v1498_v63, 0.0 }
 0x17f   : > { %v7845_v30 = vsel %vm4757_vm4, 4294967295, %v7844_v30  ;;  %v2269_v0 = vsel %vm7849_vm9, %v1007_v49, 0.0  ;;  %v1255_v18 = vadd.f32 %v7850_v10, %v1223_v16  ;;  %v1877_v2 = vadd.f32 %v1845_v23, %v1712_v19  ;;  %v4785_v19 = vpop.f32.mrb[23].mxu0 }
 0x180   : > { %7846 = vst [vmem:[#allocation21_spill] sm:$0xff] %v7845_v30  ;;  %v2078_v44 = vmul.f32 %v4423_v5, %v2041_v28  ;;  %v2306_v62 = vmul.f32 %v4515_v51, %v2269_v0  ;;  %v2471_v8 = vmul.f32 %v4466_v46, %v2434_v34  ;;  %v2630_v15 = vsel %vm2534_vm3, %v1498_v63, 0.0  ;;  %7857 = vst [vmem:[#allocation23_spill] sm:$0xff] %v4785_v19 }
 0x181   : > { %v793_v11 = vmul.f32 %v761_v42, %v603_v14  ;;  %v759_v31 = vmin.f32 %v727_v54, 6.0  ;;  %v7851_v1 = vshra.s32 %v4644_v22, 4  ;;  %vm4781_vm12 = vcmp.lt.s32.totalorder %v923_v37, 15  ;;  %v7858_v42 = vld [vmem:[#allocation42_spill] sm:$0xff] }
 0x182   : > { %v7855_v27 = vsel %vm4781_vm12, 4294967295, %v7854_v27  ;;  %v4787_v49 = vadd.f32 %v1388_v52, %v1255_v18  ;;  %v4789_v16 = vadd.f32 %v1914_v38, %v1877_v2  ;;  %v2338_v63 = vadd.f32 %v2306_v62, %v4626_v12 }
 0x183   : > { %vm4777_vm14 = vcmp.ge.s32.totalorder %v7851_v1, 1  ;;  %7856 = vst [vmem:[#allocation40_spill] sm:$0xff] %v7855_v27  ;;  %v2667_v14 = vmul.f32 %v4605_v60, %v2630_v15  ;;  %v4793_v54 = vmul.f32 0.16666667, %v793_v11  ;;  %v791_v1 = vmul.f32 %v759_v31, %v4630_v47 }
 0x184   : > { %v1713_v23 = vadd.f32 %v1681_v13, %v7858_v42  ;;  %v4798_v37 = vadd.f32 %v2078_v44, %v4635_v58  ;;  %v961_v34 = vrot.slane %v4695_v48, 7  ;;  %v1353_v52 = vsel %vm4666_vm13, %v4695_v48, 0.0 }
 0x185   : > { %v4804_v38 = vadd.f32 %v2471_v8, %v2338_v63  ;;  %v4807_v12 = vadd.f32 %v2667_v14, %v4612_v57  ;;  %v1452_v62 = vrot.slane %v4695_v48, 1  ;;  %v2436_v47 = vsel %vm4672_vm8, %v4695_v48, 0.0 }
 0x186   : > { %v7568_v58 = vrot.slane %v4793_v54, 7  ;;  %v7567_v44 = vrot.slane %v4793_v54, 1  ;;  %v1354_v11 = vsel %vm4700_vm1, %v4793_v54, 0.0  ;;  %v4818_v31 = vmul.f32 0.16666667, %v791_v1 }
 0x187   : > { %7859 = vst [vmem:[#allocation36_spill] sm:$0xff] %v4807_v12  ;;  %v4821_v15 = vadd.f32 3.0, %v4707_v50  ;;  %v4824_v57 = vadd.s32 112, %v4060_v61  ;;  %v4827_v13 = vmul.f32 %v4188_v6, %v1353_v52  ;;  %vm7860_vm15 = vcmp.lt.s32.totalorder %v4060_v61, 1 }
 0x188   : > { %v1004_v28 = vsel %vm7860_vm15, %v961_v34, %v7568_v58  ;;  %vm7861_vm3 = vcmp.lt.s32.totalorder %v4060_v61, 7  ;;  %vm7862_vm10 = vnez %v7836_v24  ;;  %v4844_v2 = vmul.f32 %v7847_v20, %v4695_v48  ;;  %v7863_v58 = vld [vmem:[#allocation22_spill] sm:$0xff] }
 0x189   : > { %v4837_v0 = vsel %vm7861_vm3, %v1452_v62, %v7567_v44  ;;  %v2437_v18 = vsel %vm7862_vm10, %v4793_v54, 0.0  ;;  %v4847_v8 = vmul.f32 %v4466_v46, %v2436_v47  ;;  %v1189_v63 = vsel %vm4700_vm1, %v1004_v28, 0.0 }
 0x18a   : > { %v1647_v14 = vsel %vm4666_vm13, %v4837_v0, 0.0  ;;  %v1226_v1 = vmul.f32 %v4125_v43, %v1189_v63  ;;  %v1391_v42 = vmul.f32 %v4188_v6, %v1354_v11  ;;  %v2272_v52 = vsel %vm7862_vm10, %v1004_v28, 0.0  ;;  %vm1550_vm10 = vmand %vm4777_vm14, %vm4781_vm12 }
 0x18b   : > { %v4859_v48 = vadd.f32 3.0, %v4728_v29  ;;  %v1848_v47 = vmul.f32 %v4276_v4, %v1004_v28  ;;  %v4867_v44 = vmul.f32 %v4466_v46, %v2437_v18  ;;  %v960_v63 = vrot.slane %v4818_v31, 7 }
 0x18c   : > { %v7864_v11 = vshra.s32 %v7863_v58, 4  ;;  %v1258_v19 = vadd.f32 %v7850_v10, %v1226_v1  ;;  %v4879_v3 = vmul.f32 %v4242_v53, %v1647_v14  ;;  %v4883_v28 = vmul.f32 %v4423_v5, %v4837_v0 }
 0x18d   : > { %v1451_v18 = vrot.slane %v4818_v31, 1  ;;  %v2309_v59 = vmul.f32 %v4515_v51, %v2272_v52  ;;  %vm7867_vm3 = vcmp.lt.s32.totalorder %v4060_v61, 1  ;;  %v1352_v14 = vsel %vm4777_vm14, %v4818_v31, 0.0 }
 0x18e   : > { %vm4872_vm15 = vcmp.lt.s32.totalorder %v7864_v11, 15  ;;  %v1005_v58 = vsel %vm7867_vm3, %v960_v63, %v961_v34  ;;  %v7868_v11 = vrot.slane %v4649_v45, 7  ;;  %vm7869_vm9 = vmmov %vm7867_vm3  ;;  %v4900_v1 = vadd.f32 %v1391_v42, %v1258_v19 }
 0x18f   : > { %vm7871_vm3 = vmand %vm4666_vm13, %vm4757_vm4  ;;  %v7873_v21 = vrot.slane %v4649_v45, 1  ;;  %v1915_v27 = vmul.f32 %v7847_v20, %v4818_v31  ;;  %v2435_v41 = vsel %vm4872_vm15, %v4818_v31, 0.0  ;;  %v730_v12 = vmax.f32 %v4859_v48, 0.0 }
 0x190   : > { %v1006_v39 = vsel %vm7869_vm9, %v7868_v11, %v960_v63  ;;  %7870 = vst [vmem:[#allocation34_spill] sm:$0xff] %v4900_v1  ;;  %v1188_v34 = vsel %vm7871_vm3, %v1005_v58, 0.0  ;;  %vm7872_vm9 = vcmp.lt.s32.totalorder %v4060_v61, 7  ;;  %v2633_v11 = vsel %vm4672_vm8, %v4837_v0, 0.0  ;;  %vm2175_vm13 = vmand %vm4672_vm8, %vm4360_vm0 }
 0x191   : > { %v1187_v52 = vsel %vm4777_vm14, %v1006_v39, 0.0  ;;  %v1496_v63 = vsel %vm7872_vm9, %v1451_v18, %v1452_v62  ;;  %v1225_v19 = vmul.f32 %v4125_v43, %v1188_v34  ;;  %vm7874_vm14 = vmmov %vm7872_vm9  ;;  %v1810_v62 = vsel %vm4653_vm6, %v1005_v58, 0.0 }
 0x192   : > { %v1224_v22 = vmul.f32 %v4125_v43, %v1187_v52  ;;  %v1497_v17 = vsel %vm7874_vm14, %v7873_v21, %v1451_v18  ;;  %v1646_v25 = vsel %vm1550_vm10, %v1496_v63, 0.0  ;;  %v1846_v1 = vmul.f32 %v4276_v4, %v1006_v39 }
 0x193   : > { %v1645_v42 = vsel %vm4639_vm2, %v1497_v17, 0.0  ;;  %v1257_v45 = vadd.f32 %v7850_v10, %v1225_v19  ;;  %v1389_v18 = vmul.f32 %v4188_v6, %v1352_v14  ;;  %v1683_v52 = vmul.f32 %v4242_v53, %v1646_v25  ;;  %vm2536_vm2 = vmand %vm4872_vm15, %vm4436_vm5 }
 0x194   : > { %v1256_v0 = vadd.f32 %v7850_v10, %v1224_v22  ;;  %v1682_v40 = vmul.f32 %v4242_v53, %v1645_v42  ;;  %v1847_v34 = vmul.f32 %v4276_v4, %v1810_v62  ;;  %v1878_v21 = vadd.f32 %v1846_v1, %v1713_v23  ;;  %v4941_v10 = vpop.f32.mrb[24].mxu0 }
 0x195   : > { %v2043_v22 = vsel %vm4658_vm11, %v1496_v63, 0.0  ;;  %v2079_v19 = vmul.f32 %v4423_v5, %v1497_v17  ;;  %7875 = vst [vmem:[#allocation28_spill] sm:$0xff] %v4941_v10  ;;  %v2270_v25 = vsel %vm4872_vm15, %v1006_v39, 0.0  ;;  %v2271_v23 = vsel %vm2175_vm13, %v1005_v58, 0.0 }
 0x196   : > { %v1421_v30 = vadd.f32 %v1389_v18, %v1256_v0  ;;  %v1714_v43 = vadd.f32 %v1682_v40, %v4787_v49  ;;  %v1947_v14 = vadd.f32 %v1915_v27, %v1878_v21  ;;  %v2080_v42 = vmul.f32 %v4423_v5, %v2043_v22 }
 0x197   : > { %v2111_v27 = vadd.f32 %v2079_v19, %v4789_v16  ;;  %v2307_v62 = vmul.f32 %v4515_v51, %v2270_v25  ;;  %v2308_v39 = vmul.f32 %v4515_v51, %v2271_v23  ;;  %v2631_v7 = vsel %vm4686_vm7, %v1497_v17, 0.0 }
 0x198   : > { %v1715_v49 = vadd.f32 %v1683_v52, %v1421_v30  ;;  %v1879_v1 = vadd.f32 %v1847_v34, %v1714_v43  ;;  %v2112_v0 = vadd.f32 %v2080_v42, %v1947_v14  ;;  %v2472_v30 = vmul.f32 %v4466_v46, %v2435_v41  ;;  %v7880_v14 = vld [vmem:[#allocation26_spill] sm:$0xff] }
 0x199   : > { %v2339_v58 = vadd.f32 %v2307_v62, %v4798_v37  ;;  %v2632_v43 = vsel %vm2536_vm2, %v1496_v63, 0.0  ;;  %v2670_v16 = vmul.f32 %v4605_v60, %v2633_v11  ;;  %v2340_v18 = vadd.f32 %v2308_v39, %v2111_v27 }
 0x19a   : > { %v1880_v26 = vadd.f32 %v1848_v47, %v1715_v49  ;;  %v2341_v40 = vadd.f32 %v2309_v59, %v2112_v0  ;;  %v2668_v52 = vmul.f32 %v4605_v60, %v2631_v7  ;;  %v2669_v21 = vmul.f32 %v4605_v60, %v2632_v43  ;;  %v7888_v0 = vld [vmem:[#allocation27_spill] sm:$0xff] }
 0x19b   : > { %v2504_v34 = vadd.f32 %v2472_v30, %v2339_v58  ;;  %v1422_v9 = vadd.f32 %v4827_v13, %v1257_v45  ;;  %v2505_v31 = vadd.f32 %v4847_v8, %v2340_v18  ;;  %v1948_v63 = vadd.f32 %v4844_v2, %v1879_v1 }
 0x19c   : > { %v4972_v37 = vadd.f32 %v4867_v44, %v2341_v40  ;;  %v4975_v47 = vadd.f32 %v2668_v52, %v4804_v38  ;;  %v925_v59 = vand.u32 15, %v4372_v35  ;;  %v762_v17 = vmin.f32 %v730_v12, 6.0 }
 0x19d   : > { %v4979_v11 = vadd.f32 %v2669_v21, %v2504_v34  ;;  %v1716_v22 = vadd.f32 %v4879_v3, %v1422_v9  ;;  %v1917_v13 = vmul.f32 %v7847_v20, %v4793_v54  ;;  %v4984_v48 = vadd.f32 %v2670_v16, %v2505_v31 }
 0x19e   : > { %7876 = vst [vmem:[#allocation39_spill] sm:$0xff] %v4975_v47  ;;  %v926_v44 = vand.u32 15, %v4824_v57  ;;  %v2113_v8 = vadd.f32 %v4883_v28, %v1948_v63  ;;  %v7879_v38 = vmax.f32 %v4821_v15, 0.0  ;;  %v794_v2 = vmul.f32 %v762_v17, %v4728_v29  ;;  %v5008_v29 = vpop.f32.mrb[25].mxu0 }
 0x19f   : > { %7877 = vst [vmem:[#allocation42_spill] sm:$0xff] %v4979_v11  ;;  %7878 = vst [vmem:[#allocation22_spill] sm:$0xff] %v4984_v48  ;;  %v7581_v19 = vshra.s32 %v4824_v57, 4  ;;  %v619_v42 = vadd.f32 %v7880_v14, %v4057_v56  ;;  %v1949_v3 = vadd.f32 %v1917_v13, %v1880_v26  ;;  %vm4994_vm0 = vcmp.lt.s32.totalorder %v925_v59, 15  ;;  %v5045_v16 = vpop.f32.mrb[26].mxu0 }
 0x1a0   : > { %v764_v45 = vmin.f32 %v7879_v38, 6.0  ;;  %v4999_v23 = vadd.s32 128, %v4060_v61  ;;  %vm5001_vm5 = vcmp.ge.s32.totalorder %v926_v44, 1  ;;  %v5006_v15 = vadd.s32 136, %v4060_v61  ;;  %7885 = vst [vmem:[#allocation26_spill] sm:$0xff] %v5008_v29  ;;  %vm1552_vm7 = vmand %vm4700_vm1, %vm4994_vm0 }
 0x1a1   : > { %v5011_v1 = vmul.f32 0.16666667, %v794_v2  ;;  %vm5015_vm8 = vcmp.ge.s32.totalorder %v7581_v19, 1  ;;  %v701_v62 = vadd.f32 3.0, %v619_v42  ;;  %v611_v39 = vadd.f32 %v4057_v56, %v7888_v0  ;;  %7893 = vst [vmem:[#allocation49_spill] sm:$0xff] %v5045_v16  ;;  %v7902_v19 = vld [vmem:[#allocation34_spill] sm:$0xff] }
 0x1a2   : > { %v796_v49 = vmul.f32 %v764_v45, %v4707_v50  ;;  %vm1094_vm10 = vmand %vm5015_vm8, %vm5001_vm5  ;;  %v7889_v7 = vshra.s32 %v4322_v33, 4  ;;  %v7586_v58 = vshra.s32 %v4999_v23, 4  ;;  %v7585_v30 = vshra.s32 %v5006_v15, 4 }
 0x1a3   : > { %v7583_v41 = vrot.slane %v5011_v1, 7  ;;  %v7582_v50 = vrot.slane %v5011_v1, 1  ;;  %v1355_v56 = vsel %vm5015_vm8, %v5011_v1, 0.0  ;;  %v5043_v43 = vadd.s32 120, %v4060_v61 }
 0x1a4   : > { %vm5033_vm15 = vcmp.lt.s32.totalorder %v7889_v7, 15  ;;  %v5047_v18 = vmul.f32 0.16666667, %v796_v49  ;;  %v7894_v33 = vrot.slane %v4793_v54, 7  ;;  %vm7895_vm3 = vcmp.lt.s32.totalorder %v4060_v61, 1 }
 0x1a5   : > { %7892 = vst [vmem:[#allocation27_spill] sm:$0xff] %v5043_v43  ;;  %v7896_v52 = vrot.slane %v4793_v54, 1  ;;  %vm2177_vm14 = vmand %vm5033_vm15, %vm4653_vm6  ;;  %v733_v21 = vmax.f32 %v701_v62, 0.0  ;;  %v2438_v54 = vsel %vm5033_vm15, %v5011_v1, 0.0  ;;  %v699_v31 = vadd.f32 3.0, %v611_v39 }
 0x1a6   : > { %v1003_v40 = vsel %vm7895_vm3, %v7894_v33, %v7583_v41  ;;  %vm7897_vm13 = vnez %v7836_v24  ;;  %v1392_v59 = vmul.f32 %v4188_v6, %v1355_v56  ;;  %v1918_v38 = vmul.f32 %v7847_v20, %v5011_v1  ;;  %v7901_v24 = vld [vmem:[#allocation18_spill] sm:$0xff] }
 0x1a7   : > { %v1494_v34 = vsel %vm7872_vm9, %v7896_v52, %v7582_v50  ;;  %v1190_v12 = vsel %vm1094_vm10, %v1003_v40, 0.0  ;;  %vm2538_vm2 = vmand %vm7897_vm13, %vm4658_vm11  ;;  %v1812_v13 = vsel %vm4757_vm4, %v1003_v40, 0.0  ;;  %v2273_v2 = vsel %vm2177_vm14, %v1003_v40, 0.0 }
 0x1a8   : > { %v1648_v9 = vsel %vm1552_vm7, %v1494_v34, 0.0  ;;  %v1227_v63 = vmul.f32 %v7898_v36, %v1190_v12  ;;  %v1849_v44 = vmul.f32 %v4276_v4, %v1812_v13  ;;  %v2045_v55 = vsel %vm4781_vm12, %v1494_v34, 0.0 }
 0x1a9   : > { %v1685_v32 = vmul.f32 %v4242_v53, %v1648_v9  ;;  %v2082_v49 = vmul.f32 %v4423_v5, %v2045_v55  ;;  %v2310_v62 = vmul.f32 %v4515_v51, %v2273_v2  ;;  %v2475_v0 = vmul.f32 %v4466_v46, %v2438_v54 }
 0x1aa   : > { %v1259_v14 = vadd.f32 %v7901_v24, %v1227_v63  ;;  %v1881_v7 = vadd.f32 %v1849_v44, %v1716_v22  ;;  %v2634_v56 = vsel %vm2538_vm2, %v1494_v34, 0.0  ;;  %v765_v33 = vmin.f32 %v733_v21, 6.0 }
 0x1ab   : > { %v731_v52 = vmax.f32 %v699_v31, 0.0  ;;  %v2342_v9 = vadd.f32 %v2310_v62, %v2113_v8  ;;  %v2671_v13 = vmul.f32 %v4605_v60, %v2634_v56  ;;  %v5095_v50 = vadd.f32 %v1685_v32, %v7902_v19  ;;  %v7906_v31 = vld [vmem:[#allocation35_spill] sm:$0xff] }
 0x1ac   : > { %v5091_v12 = vadd.f32 %v1392_v59, %v1259_v14  ;;  %v5097_v40 = vadd.f32 %v1918_v38, %v1881_v7  ;;  %v797_v63 = vmul.f32 %v765_v33, %v619_v42  ;;  %v5099_v41 = vadd.f32 %v2082_v49, %v1949_v3  ;;  %v5130_v38 = vpop.f32.mrb[27].mxu0  ;;  %v5153_v33 = vld [vmem:[%s7503_s2] ss:$0 sm:$0xff] }
 0x1ad   : > { %v763_v55 = vmin.f32 %v731_v52, 6.0  ;;  %v928_v54 = vand.u32 15, %v4999_v23  ;;  %vm5104_vm6 = vcmp.ge.s32.totalorder %v7586_v58, 1  ;;  %v5108_v8 = vadd.f32 %v2475_v0, %v2342_v9  ;;  %7912 = vst [vmem:[#allocation21_spill] sm:$0xff] %v5130_v38  ;;  %v7918_v52 = vld [vmem:[#allocation29_spill] sm:$0xff]  ;;  %v7927_v58 = vld [vmem:[#allocation30_spill] sm:$0xff] }
 0x1ae   : > { %v5111_v34 = vadd.f32 %v2671_v13, %v4972_v37  ;;  %v5113_v19 = vmul.f32 0.16666667, %v797_v63  ;;  %v7584_v42 = vshra.s32 %v5043_v43, 4  ;;  %v965_v3 = vrot.slane %v5047_v18, 7 }
 0x1af   : > { %v795_v21 = vmul.f32 %v763_v55, %v611_v39  ;;  %v7907_v59 = vshra.s32 %v7906_v31, 4  ;;  %vm5125_vm1 = vcmp.ge.s32.totalorder %v7585_v30, 1  ;;  %v7910_v44 = vmov 0 }
 0x1b0   : > { %7905 = vst [vmem:[#allocation15_spill] sm:$0xff] %v5111_v34  ;;  %v7911_v44 = vsel %vm5125_vm1, 4294967295, %v7910_v44  ;;  %v927_v37 = vand.u32 15, %v5043_v43  ;;  %v1357_v39 = vsel %vm5104_vm6, %v5047_v18, 0.0  ;;  %v1456_v2 = vrot.slane %v5047_v18, 1 }
 0x1b1   : > { %vm5119_vm11 = vcmp.lt.s32.totalorder %v7907_v59, 15  ;;  %v7588_v14 = vrot.slane %v5113_v19, 7  ;;  %v7587_v49 = vrot.slane %v5113_v19, 1  ;;  %vm5138_vm7 = vcmp.ge.s32.totalorder %v928_v54, 1  ;;  %v7923_v59 = vld [vmem:[#allocation47_spill] sm:$0xff] }
 0x1b2   : > { %v7915_v0 = vshra.s32 %v4372_v35, 4  ;;  %v7916_v7 = vmov 0  ;;  %v5148_v56 = vmul.f32 0.16666667, %v795_v21  ;;  %v5157_v9 = vadd.f32 %v5153_v33, %v7918_v52 }
 0x1b3   : > { %v1000_v35 = vsel %vm7895_vm3, %v965_v3, %v7588_v14  ;;  %v1358_v13 = vsel %vm5125_vm1, %v5113_v19, 0.0  ;;  %v5170_v63 = vsel %vm7872_vm9, %v1456_v2, %v7587_v49  ;;  %vm5174_vm14 = vcmp.ge.s32.totalorder %v7584_v42, 1  ;;  %vm7928_vm9 = vmmov %vm7895_vm3 }
 0x1b4   : > { %vm5144_vm10 = vcmp.lt.s32.totalorder %v7915_v0, 15  ;;  %v5179_v54 = vmul.f32 %v4188_v6, %v1357_v39  ;;  %v1193_v21 = vsel %vm5125_vm1, %v1000_v35, 0.0  ;;  %vm5183_vm13 = vcmp.lt.s32.totalorder %v927_v37, 15 }
 0x1b5   : > { %v7917_v7 = vsel %vm5144_vm10, 4294967295, %v7916_v7  ;;  %v7924_v0 = vshra.s32 %v7923_v59, 4  ;;  %v2440_v42 = vsel %vm5119_vm11, %v5047_v18, 0.0  ;;  %v1230_v39 = vmul.f32 %v7898_v36, %v1193_v21 }
 0x1b6   : > { %v2276_v30 = vsel %vm5144_vm10, %v1000_v35, 0.0  ;;  %v5201_v37 = vadd.f32 %v5153_v33, %v7927_v58  ;;  %v1395_v59 = vmul.f32 %v4188_v6, %v1358_v13  ;;  %v964_v36 = vrot.slane %v5148_v56, 7 }
 0x1b7   : > { %vm5189_vm2 = vcmp.lt.s32.totalorder %v7924_v0, 15  ;;  %v2441_v0 = vsel %vm5144_vm10, %v5113_v19, 0.0  ;;  %v5213_v21 = vadd.f32 3.0, %v5157_v9  ;;  %v1262_v49 = vadd.f32 %v7901_v24, %v1230_v39  ;;  %vm1554_vm10 = vmand %vm5174_vm14, %vm5183_vm13 }
 0x1b8   : > { %v1852_v58 = vmul.f32 %v4276_v4, %v1000_v35  ;;  %v1356_v14 = vsel %vm5174_vm14, %v5148_v56, 0.0  ;;  %v1455_v34 = vrot.slane %v5148_v56, 1  ;;  %v2313_v13 = vmul.f32 %v4515_v51, %v2276_v30 }
 0x1b9   : > { %v2637_v48 = vsel %vm5119_vm11, %v5170_v63, 0.0  ;;  %v1001_v11 = vsel %vm7928_vm9, %v964_v36, %v965_v3  ;;  %v7929_v47 = vrot.slane %v5011_v1, 7  ;;  %v5235_v39 = vadd.f32 %v1395_v59, %v1262_v49  ;;  %vm7930_vm9 = vmand %vm5104_vm6, %vm5138_vm7 }
 0x1ba   : > { %v1192_v3 = vsel %vm7930_vm9, %v1001_v11, 0.0  ;;  %vm7931_vm1 = vcmp.lt.s32.totalorder %v4060_v61, 7  ;;  %v1393_v55 = vmul.f32 %v4188_v6, %v1356_v14  ;;  %v1814_v10 = vsel %vm5001_vm5, %v1001_v11, 0.0 }
 0x1bb   : > { %v1002_v35 = vsel %vm7895_vm3, %v7929_v47, %v964_v36  ;;  %v1492_v38 = vsel %vm7931_vm1, %v1455_v34, %v1456_v2  ;;  %v5249_v47 = vld [vmem:[%s7504_s3] ss:$0 sm:$0xff]  ;;  %v7932_v36 = vrot.slane %v5011_v1, 1  ;;  %v1851_v14 = vmul.f32 %v4276_v4, %v1814_v10 }
 0x1bc   : > { %v1191_v30 = vsel %vm5174_vm14, %v1002_v35, 0.0  ;;  %v1229_v59 = vmul.f32 %v5249_v47, %v1192_v3  ;;  %vm7933_vm14 = vmmov %vm7931_vm1  ;;  %v1650_v2 = vsel %vm1554_vm10, %v1492_v38, 0.0  ;;  %v1850_v43 = vmul.f32 %v4276_v4, %v1002_v35 }
 0x1bd   : > { %v1228_v49 = vmul.f32 %v5249_v47, %v1191_v30  ;;  %v1493_v16 = vsel %vm7933_vm14, %v7932_v36, %v1455_v34  ;;  %vm2179_vm1 = vmand %vm5119_vm11, %vm4757_vm4  ;;  %v1687_v27 = vmul.f32 %v4242_v53, %v1650_v2  ;;  %v1919_v3 = vmul.f32 %v7847_v20, %v5148_v56 }
 0x1be   : > { %v1649_v29 = vsel %vm5015_vm8, %v1493_v16, 0.0  ;;  %v1261_v1 = vadd.f32 %v7901_v24, %v1229_v59  ;;  %v1882_v30 = vadd.f32 %v1850_v43, %v5095_v50  ;;  %v2047_v17 = vsel %vm4994_vm0, %v1492_v38, 0.0  ;;  %vm2540_vm4 = vmand %vm5189_vm2, %vm4781_vm12 }
 0x1bf   : > { %v1260_v6 = vadd.f32 %v7901_v24, %v1228_v49  ;;  %v1686_v34 = vmul.f32 %v4242_v53, %v1649_v29  ;;  %v2083_v49 = vmul.f32 %v4423_v5, %v1493_v16  ;;  %v2084_v24 = vmul.f32 %v4423_v5, %v2047_v17  ;;  %v5311_v17 = vpop.f32.mrb[28].mxu0 }
 0x1c0   : > { %v1951_v29 = vadd.f32 %v1919_v3, %v1882_v30  ;;  %v2274_v53 = vsel %vm5189_vm2, %v1002_v35, 0.0  ;;  %v2275_v4 = vsel %vm2179_vm1, %v1001_v11, 0.0  ;;  %v2439_v10 = vsel %vm5189_vm2, %v5148_v56, 0.0  ;;  %7935 = vst [vmem:[#allocation18_spill] sm:$0xff] %v5311_v17  ;;  %v5336_v22 = vpop.f32.mrb[29].mxu0 }
 0x1c1   : > { %v1425_v32 = vadd.f32 %v1393_v55, %v1260_v6  ;;  %v1718_v36 = vadd.f32 %v1686_v34, %v5091_v12  ;;  %v2115_v12 = vadd.f32 %v2083_v49, %v5097_v40  ;;  %v2311_v59 = vmul.f32 %v4515_v51, %v2274_v53  ;;  %v5331_v53 = vld [vmem:[%s7504_s3 + $0x2] ss:$0 sm:$0xff]  ;;  %7938 = vst [vmem:[#allocation29_spill] sm:$0xff] %v5336_v22 }
 0x1c2   : > { %v2116_v55 = vadd.f32 %v2084_v24, %v1951_v29  ;;  %v2312_v2 = vmul.f32 %v4515_v51, %v2275_v4  ;;  %v2476_v11 = vmul.f32 %v4466_v46, %v2439_v10  ;;  %v2635_v35 = vsel %vm5033_vm15, %v1493_v16, 0.0 }
 0x1c3   : > { %v1719_v50 = vadd.f32 %v1687_v27, %v1425_v32  ;;  %v1883_v43 = vadd.f32 %v1851_v14, %v1718_v36  ;;  %v2343_v45 = vadd.f32 %v2311_v59, %v5099_v41  ;;  %v2636_v52 = vsel %vm2540_vm4, %v1492_v38, 0.0 }
 0x1c4   : > { %v2672_v6 = vmul.f32 %v4605_v60, %v2635_v35  ;;  %v2477_v34 = vmul.f32 %v4466_v46, %v2440_v42  ;;  %v2478_v40 = vmul.f32 %v4466_v46, %v2441_v0  ;;  %v2344_v27 = vadd.f32 %v2312_v2, %v2115_v12 }
 0x1c5   : > { %v5295_v56 = vadd.f32 %v1852_v58, %v1719_v50  ;;  %v2345_v14 = vadd.f32 %v2313_v13, %v2116_v55  ;;  %v1920_v30 = vmul.f32 %v7847_v20, %v5047_v18  ;;  %v2508_v3 = vadd.f32 %v2476_v11, %v2343_v45 }
 0x1c6   : > { %v2673_v26 = vmul.f32 %v4605_v60, %v2636_v52  ;;  %v5305_v16 = vadd.f32 %v2672_v6, %v5108_v8  ;;  %v2674_v41 = vmul.f32 %v4605_v60, %v2637_v48  ;;  %v2509_v38 = vadd.f32 %v2477_v34, %v2344_v27  ;;  %v5385_v34 = vld [vmem:[%s7504_s3 + $0x4] ss:$0 sm:$0xff] }
 0x1c7   : > { %v5308_v58 = vadd.f32 %v2478_v40, %v2345_v14  ;;  %v702_v42 = vadd.f32 3.0, %v5201_v37  ;;  %v736_v13 = vmax.f32 %v5213_v21, 0.0  ;;  %v5317_v20 = vadd.s32 144, %v4060_v61 }
 0x1c8   : > { %7934 = vst [vmem:[#allocation40_spill] sm:$0xff] %v5305_v16  ;;  %v5313_v0 = vadd.f32 %v2673_v26, %v2508_v3  ;;  %v1426_v18 = vadd.f32 %v5179_v54, %v1261_v1  ;;  %v5320_v8 = vadd.f32 %v2674_v41, %v2509_v38  ;;  %v1952_v48 = vadd.f32 %v1920_v30, %v1883_v43 }
 0x1c9   : > { %v734_v32 = vmax.f32 %v702_v42, 0.0  ;;  %v1651_v36 = vsel %vm5104_vm6, %v5170_v63, 0.0  ;;  %v929_v49 = vand.u32 15, %v5006_v15  ;;  %v768_v24 = vmin.f32 %v736_v13, 6.0  ;;  %v7956_v13 = vld [vmem:[#allocation33_spill] sm:$0xff] }
 0x1ca   : > { %7936 = vst [vmem:[#allocation34_spill] sm:$0xff] %v5313_v0  ;;  %7937 = vst [vmem:[#allocation35_spill] sm:$0xff] %v5320_v8  ;;  %v7602_v29 = vshra.s32 %v5317_v20, 4  ;;  %v930_v21 = vand.u32 15, %v5317_v20  ;;  %v1688_v54 = vmul.f32 %v5331_v53, %v1651_v36  ;;  %v2085_v1 = vmul.f32 %v4423_v5, %v5170_v63  ;;  %v7945_v63 = vld [vmem:[#allocation31_spill] sm:$0xff] }
 0x1cb   : > { %v766_v4 = vmin.f32 %v734_v32, 6.0  ;;  %vm5338_vm12 = vcmp.lt.s32.totalorder %v929_v49, 15  ;;  %v800_v59 = vmul.f32 %v768_v24, %v5157_v9  ;;  %v635_v2 = vadd.f32 %v5153_v33, %v7945_v63  ;;  %v5368_v9 = vpop.f32.mrb[30].mxu0  ;;  %v5436_v24 = vld [vmem:[%s7504_s3 + $0x3] ss:$0 sm:$0xff] }
 0x1cc   : > { %v1720_v43 = vadd.f32 %v1688_v54, %v1426_v18  ;;  %v2117_v12 = vadd.f32 %v2085_v1, %v1952_v48  ;;  %vm5346_vm8 = vcmp.ge.s32.totalorder %v7602_v29, 1  ;;  %vm5350_vm15 = vcmp.ge.s32.totalorder %v930_v21, 1  ;;  %7950 = vst [vmem:[#allocation47_spill] sm:$0xff] %v5368_v9  ;;  %v5422_v48 = vld [vmem:[%s7504_s3 + $0x1] ss:$0 sm:$0xff]  ;;  %v7980_v29 = vld [vmem:[#allocation41_spill] sm:$0xff] }
 0x1cd   : > { %v798_v50 = vmul.f32 %v766_v4, %v5201_v37  ;;  %v7946_v37 = vshra.s32 %v4824_v57, 4  ;;  %vm7949_vm11 = vnez %v7911_v44  ;;  %v5371_v45 = vadd.s32 160, %v4060_v61  ;;  %vm1098_vm2 = vmand %vm5346_vm8, %vm5350_vm15  ;;  %v5451_v63 = vld [vmem:[%s7505_s4] ss:$0 sm:$0xff] }
 0x1ce   : > { %vm1556_vm10 = vmand %vm7949_vm11, %vm5338_vm12  ;;  %v1921_v40 = vmul.f32 %v5385_v34, %v5113_v19  ;;  %vm7951_vm3 = vnez %v7917_v7  ;;  %v5393_v27 = vmul.f32 0.16666667, %v800_v59  ;;  %v705_v30 = vadd.f32 3.0, %v635_v2 }
 0x1cf   : > { %v5356_v11 = vmul.f32 0.16666667, %v798_v50  ;;  %vm5360_vm6 = vcmp.lt.s32.totalorder %v7946_v37, 15  ;;  %vm2542_vm9 = vmand %vm7951_vm3, %vm4994_vm0  ;;  %v7952_v3 = vrot.slane %v5113_v19, 7  ;;  %vm7953_vm14 = vcmp.lt.s32.totalorder %v4060_v61, 1 }
 0x1d0   : > { %v7954_v41 = vrot.slane %v5113_v19, 1  ;;  %vm7955_vm1 = vcmp.lt.s32.totalorder %v4060_v61, 7  ;;  %vm2181_vm4 = vmand %vm5360_vm6, %vm5001_vm5  ;;  %v5415_v42 = vadd.s32 168, %v4060_v61  ;;  %v627_v18 = vadd.f32 %v5153_v33, %v7956_v13 }
 0x1d1   : > { %v7605_v52 = vrot.slane %v5356_v11, 7  ;;  %v1359_v57 = vsel %vm5346_vm8, %v5356_v11, 0.0  ;;  %v7604_v6 = vrot.slane %v5356_v11, 1  ;;  %v2442_v14 = vsel %vm5360_vm6, %v5356_v11, 0.0 }
 0x1d2   : > { %v1396_v19 = vmul.f32 %v5422_v48, %v1359_v57  ;;  %v1922_v54 = vmul.f32 %v5385_v34, %v5356_v11  ;;  %v2479_v44 = vmul.f32 %v4466_v46, %v2442_v14  ;;  %v737_v59 = vmax.f32 %v705_v30, 0.0 }
 0x1d3   : > { %v999_v26 = vsel %vm7953_vm14, %v7952_v3, %v7605_v52  ;;  %v1490_v38 = vsel %vm7955_vm1, %v7954_v41, %v7604_v6  ;;  %v7598_v25 = vshra.s32 %v5415_v42, 4 }
 0x1d4   : > { %v1194_v32 = vsel %vm1098_vm2, %v999_v26, 0.0  ;;  %v1652_v28 = vsel %vm1556_vm10, %v1490_v38, 0.0  ;;  %v1816_v36 = vsel %vm5138_vm7, %v999_v26, 0.0  ;;  %v2277_v4 = vsel %vm2181_vm4, %v999_v26, 0.0  ;;  %vm7966_vm10 = vmmov %vm7953_vm14 }
 0x1d5   : > { %v1231_v49 = vmul.f32 %v5249_v47, %v1194_v32  ;;  %v1853_v21 = vmul.f32 %v5436_v24, %v1816_v36  ;;  %v1689_v1 = vmul.f32 %v5331_v53, %v1652_v28  ;;  %v2638_v50 = vsel %vm2542_vm9, %v1490_v38, 0.0  ;;  %vm7967_vm2 = vmmov %vm7955_vm1 }
 0x1d6   : > { %v2314_v46 = vmul.f32 %v4515_v51, %v2277_v4  ;;  %v2675_v14 = vmul.f32 %v4605_v60, %v2638_v50  ;;  %v2049_v7 = vsel %vm5183_vm13, %v1490_v38, 0.0  ;;  %v769_v3 = vmin.f32 %v737_v59, 6.0  ;;  %v5473_v38 = vld [vmem:[%s7504_s3 + $0x5] ss:$0 sm:$0xff] }
 0x1d7   : > { %v1263_v37 = vadd.f32 %v5451_v63, %v1231_v49  ;;  %v1885_v57 = vadd.f32 %v1853_v21, %v1720_v43  ;;  %v703_v26 = vadd.f32 3.0, %v627_v18  ;;  %v7601_v43 = vshra.s32 %v5371_v45, 4 }
 0x1d8   : > { %v2346_v13 = vadd.f32 %v2314_v46, %v2117_v12  ;;  %v5464_v32 = vadd.f32 %v2675_v14, %v5308_v58  ;;  %v801_v51 = vmul.f32 %v769_v3, %v635_v2  ;;  %v5468_v36 = vadd.s32 152, %v4060_v61 }
 0x1d9   : > { %v5459_v30 = vadd.f32 %v1396_v19, %v1263_v37  ;;  %v5461_v41 = vadd.f32 %v1922_v54, %v1885_v57  ;;  %v735_v28 = vmax.f32 %v703_v26, 0.0  ;;  %v2086_v19 = vmul.f32 %v5473_v38, %v2049_v7 }
 0x1da   : > { %7957 = vst [vmem:[#allocation30_spill] sm:$0xff] %v5464_v32  ;;  %7958 = vst [vmem:[#allocation31_spill] sm:$0xff] %v5468_v36  ;;  %v5476_v49 = vadd.f32 %v2479_v44, %v2346_v13  ;;  %v5479_v12 = vadd.f32 %v1689_v1, %v5235_v39  ;;  %v1953_v58 = vadd.f32 %v1921_v40, %v5295_v56  ;;  %v7959_v2 = vshra.s32 %v4999_v23, 4 }
 0x1db   : > { %v5488_v54 = vmul.f32 0.16666667, %v801_v51  ;;  %v767_v4 = vmin.f32 %v735_v28, 6.0  ;;  %v932_v50 = vand.u32 15, %v5371_v45  ;;  %v969_v59 = vrot.slane %v5393_v27, 7 }
 0x1dc   : > { %vm5484_vm0 = vcmp.lt.s32.totalorder %v7959_v2, 15  ;;  %vm5494_vm5 = vcmp.ge.s32.totalorder %v7598_v25, 1  ;;  %v7962_v39 = vmov 0  ;;  %v5498_v56 = vadd.f32 %v2086_v19, %v1953_v58  ;;  %v5542_v19 = vpop.f32.mrb[31].mxu0  ;;  %v5550_v2 = vld [vmem:[%s7504_s3 + $0x7] ss:$0 sm:$0xff] }
 0x1dd   : > { %v7963_v39 = vsel %vm5494_vm5, 4294967295, %v7962_v39  ;;  %v1460_v23 = vrot.slane %v5393_v27, 1  ;;  %v7600_v40 = vrot.slane %v5488_v54, 7  ;;  %v7599_v44 = vrot.slane %v5488_v54, 1  ;;  %7973 = vst [vmem:[#allocation33_spill] sm:$0xff] %v5542_v19 }
 0x1de   : > { %v7603_v1 = vshra.s32 %v5468_v36, 4  ;;  %vm5506_vm11 = vcmp.ge.s32.totalorder %v7601_v43, 1  ;;  %v2444_v57 = vsel %vm5484_vm0, %v5393_v27, 0.0  ;;  %v799_v46 = vmul.f32 %v767_v4, %v627_v18 }
 0x1df   : > { %v5517_v14 = vsel %vm7966_vm10, %v969_v59, %v7600_v40  ;;  %v1362_v7 = vsel %vm5494_vm5, %v5488_v54, 0.0  ;;  %v5526_v3 = vsel %vm7967_vm2, %v1460_v23, %v7599_v44  ;;  %v931_v26 = vand.u32 15, %v5468_v36  ;;  %v7976_v44 = vld [vmem:[#allocation27_spill] sm:$0xff] }
 0x1e0   : > { %vm5529_vm3 = vcmp.ge.s32.totalorder %v932_v50, 1  ;;  %v1197_v13 = vsel %vm5494_vm5, %v5517_v14, 0.0  ;;  %v7970_v51 = vshra.s32 %v5006_v15, 4  ;;  %v7971_v28 = vmov 0 }
 0x1e1   : > { %v5553_v4 = vmul.f32 %v5550_v2, %v2444_v57  ;;  %v1234_v15 = vmul.f32 %v5249_v47, %v1197_v13  ;;  %vm5558_vm14 = vcmp.ge.s32.totalorder %v7603_v1, 1  ;;  %v832_v25 = vmul.f32 0.16666667, %v799_v46 }
 0x1e2   : > { %vm5538_vm9 = vcmp.lt.s32.totalorder %v7970_v51, 15  ;;  %v1399_v51 = vmul.f32 %v5422_v48, %v1362_v7  ;;  %v7977_v40 = vshra.s32 %v7976_v44, 4  ;;  %v5571_v57 = vadd.f32 %v5153_v33, %v7980_v29 }
 0x1e3   : > { %v7972_v28 = vsel %vm5538_vm9, 4294967295, %v7971_v28  ;;  %v1266_v13 = vadd.f32 %v5451_v63, %v1234_v15  ;;  %v1856_v46 = vmul.f32 %v5436_v24, %v5517_v14  ;;  %vm5583_vm10 = vcmp.lt.s32.totalorder %v931_v26, 15 }
 0x1e4   : > { %vm5565_vm1 = vcmp.lt.s32.totalorder %v7977_v40, 15  ;;  %v2445_v40 = vsel %vm5538_vm9, %v5488_v54, 0.0  ;;  %v7981_v44 = vmov 0  ;;  %v2280_v29 = vsel %vm5538_vm9, %v5517_v14, 0.0  ;;  %vm1558_vm2 = vmand %vm5558_vm14, %vm5583_vm10 }
 0x1e5   : > { %v7982_v44 = vsel %vm5583_vm10, 4294967295, %v7981_v44  ;;  %v968_v7 = vrot.slane %v832_v25, 7  ;;  %v1360_v1 = vsel %vm5558_vm14, %v832_v25, 0.0  ;;  %v1459_v15 = vrot.slane %v832_v25, 1 }
 0x1e6   : > { %v5596_v58 = vadd.f32 %v1399_v51, %v1266_v13  ;;  %v2641_v26 = vsel %vm5484_vm0, %v5526_v3, 0.0  ;;  %v1397_v6 = vmul.f32 %v5422_v48, %v1360_v1  ;;  %v1923_v14 = vmul.f32 %v5385_v34, %v832_v25 }
 0x1e7   : > { %vm7983_vm4 = vcmp.lt.s32.totalorder %v4060_v61, 1  ;;  %v7984_v32 = vrot.slane %v5356_v11, 7  ;;  %vm7986_vm10 = vcmp.lt.s32.totalorder %v4060_v61, 7  ;;  %v7987_v13 = vrot.slane %v5356_v11, 1 }
 0x1e8   : > { %v997_v52 = vsel %vm7983_vm4, %v968_v7, %v969_v59  ;;  %vm7985_vm9 = vmmov %vm7983_vm4  ;;  %v1488_v51 = vsel %vm7986_vm10, %v1459_v15, %v1460_v23  ;;  %v2443_v50 = vsel %vm5565_vm1, %v832_v25, 0.0  ;;  %v8070_v18 = vmov 0 }
 0x1e9   : > { %v998_v8 = vsel %vm7985_vm9, %v7984_v32, %v968_v7  ;;  %vm7988_vm5 = vmmov %vm7986_vm10  ;;  %v1654_v7 = vsel %vm1558_vm2, %v1488_v51, 0.0  ;;  %v2480_v43 = vmul.f32 %v5550_v2, %v2443_v50  ;;  %v5674_v50 = vld [vmem:[%s7504_s3 + $0x8] ss:$0 sm:$0xff] }
 0x1ea   : > { %v1489_v0 = vsel %vm7988_vm5, %v7987_v13, %v1459_v15  ;;  %v1195_v1 = vsel %vm5558_vm14, %v998_v8, 0.0  ;;  %vm7989_vm4 = vmand %vm5506_vm11, %vm5529_vm3  ;;  %v1818_v15 = vsel %vm5350_vm15, %v997_v52, 0.0  ;;  %v1854_v55 = vmul.f32 %v5436_v24, %v998_v8 }
 0x1eb   : > { %v1196_v59 = vsel %vm7989_vm4, %v997_v52, 0.0  ;;  %v1653_v32 = vsel %vm5346_vm8, %v1489_v0, 0.0  ;;  %v1232_v23 = vmul.f32 %v5249_v47, %v1195_v1  ;;  %vm2183_vm5 = vmand %vm5484_vm0, %vm5138_vm7  ;;  %v2051_v13 = vsel %vm5338_vm12, %v1488_v51, 0.0 }
 0x1ec   : > { %v1233_v11 = vmul.f32 %v5249_v47, %v1196_v59  ;;  %v1690_v16 = vmul.f32 %v5331_v53, %v1653_v32  ;;  %v2087_v1 = vmul.f32 %v5473_v38, %v1489_v0  ;;  %v1691_v32 = vmul.f32 %v5331_v53, %v1654_v7  ;;  %vm2544_vm8 = vmand %vm5565_vm1, %vm5183_vm13 }
 0x1ed   : > { %v1264_v59 = vadd.f32 %v5451_v63, %v1232_v23  ;;  %v1855_v19 = vmul.f32 %v5436_v24, %v1818_v15  ;;  %v1886_v9 = vadd.f32 %v1854_v55, %v5479_v12  ;;  %v2088_v22 = vmul.f32 %v5473_v38, %v2051_v13 }
 0x1ee   : > { %v1722_v25 = vadd.f32 %v1690_v16, %v5459_v30  ;;  %v2119_v17 = vadd.f32 %v2087_v1, %v5461_v41  ;;  %v2278_v36 = vsel %vm5565_vm1, %v998_v8, 0.0  ;;  %v2279_v16 = vsel %vm2183_vm5, %v997_v52, 0.0  ;;  %v5660_v30 = vld [vmem:[%s7504_s3 + $0x6] ss:$0 sm:$0xff]  ;;  %v7993_v1 = vld [vmem:[#allocation44_spill] sm:$0xff]  ;;  %vm8020_vm5 = vmmov %vm7986_vm10 }
 0x1ef   : > { %v1429_v23 = vadd.f32 %v1397_v6, %v1264_v59  ;;  %v2315_v8 = vmul.f32 %v5660_v30, %v2278_v36  ;;  %v1955_v41 = vadd.f32 %v1923_v14, %v1886_v9  ;;  %v2316_v31 = vmul.f32 %v5660_v30, %v2279_v16 }
 0x1f0   : > { %v1887_v7 = vadd.f32 %v1855_v19, %v1722_v25  ;;  %v2639_v6 = vsel %vm5360_vm6, %v1489_v0, 0.0  ;;  %v2640_v21 = vsel %vm2544_vm8, %v1488_v51, 0.0  ;;  %v2317_v19 = vmul.f32 %v5660_v30, %v2280_v29 }
 0x1f1   : > { %v1723_v12 = vadd.f32 %v1691_v32, %v1429_v23  ;;  %v2347_v62 = vadd.f32 %v2315_v8, %v5498_v56  ;;  %v2676_v52 = vmul.f32 %v4605_v60, %v2639_v6  ;;  %v2120_v15 = vadd.f32 %v2088_v22, %v1955_v41 }
 0x1f2   : > { %v2348_v55 = vadd.f32 %v2316_v31, %v2119_v17  ;;  %v708_v36 = vadd.f32 3.0, %v5571_v57  ;;  %v2677_v0 = vmul.f32 %v5674_v50, %v2640_v21  ;;  %v2482_v60 = vmul.f32 %v5550_v2, %v2445_v40 }
 0x1f3   : > { %v1888_v9 = vadd.f32 %v1856_v46, %v1723_v12  ;;  %v2512_v14 = vadd.f32 %v2480_v43, %v2347_v62  ;;  %v5678_v35 = vadd.f32 %v2676_v52, %v5476_v49  ;;  %v2678_v56 = vmul.f32 %v5674_v50, %v2641_v26 }
 0x1f4   : > { %v2349_v22 = vadd.f32 %v2317_v19, %v2120_v15  ;;  %v2513_v17 = vadd.f32 %v5553_v4, %v2348_v55  ;;  %v1265_v46 = vadd.f32 %v5451_v63, %v1233_v11  ;;  %v640_v59 = vadd.f32 %v5153_v33, %v7993_v1 }
 0x1f5   : > { %7990 = vst [vmem:[#allocation27_spill] sm:$0xff] %v5678_v35  ;;  %v5684_v29 = vadd.f32 %v2677_v0, %v2512_v14  ;;  %v7994_v49 = vsel %vm5506_vm11, %v5393_v27, 0.0  ;;  %v1924_v4 = vmul.f32 %v5385_v34, %v5393_v27  ;;  %v740_v26 = vmax.f32 %v708_v36, 0.0 }
 0x1f6   : > { %v5686_v51 = vadd.f32 %v2482_v60, %v2349_v22  ;;  %v5688_v13 = vadd.f32 %v2678_v56, %v2513_v17  ;;  %v1398_v40 = vmul.f32 %v5422_v48, %v7994_v49  ;;  %v5700_v11 = vadd.s32 16, %v4060_v61  ;;  %v8001_v49 = vld [vmem:[#allocation48_spill] sm:$0xff] }
 0x1f7   : > { %7991 = vst [vmem:[#allocation41_spill] sm:$0xff] %v5684_v29  ;;  %v5703_v32 = vadd.s32 240, %v4060_v61  ;;  %v706_v25 = vadd.f32 3.0, %v640_v59  ;;  %v1655_v23 = vsel %vm5506_vm11, %v5526_v3, 0.0  ;;  %v5709_v16 = vadd.s32 176, %v4060_v61 }
 0x1f8   : > { %7992 = vst [vmem:[#allocation50_spill] sm:$0xff] %v5688_v13  ;;  %v1430_v8 = vadd.f32 %v1398_v40, %v1265_v46  ;;  %v1956_v41 = vadd.f32 %v1924_v4, %v1887_v7  ;;  %v7618_v31 = vshra.s32 %v4060_v61, 4  ;;  %v5714_v43 = vadd.s32 8, %v4060_v61 }
 0x1f9   : > { %7995 = vst [vmem:[#allocation44_spill] sm:$0xff] %v5703_v32  ;;  %7996 = vst [vmem:[#allocation51_spill] sm:$0xff] %v5709_v16  ;;  %v772_v6 = vmin.f32 %v740_v26, 6.0  ;;  %v7619_v12 = vshra.s32 %v5700_v11, 4  ;;  %v933_v62 = vand.u32 15, %v5415_v42  ;;  %v1692_v37 = vmul.f32 %v5331_v53, %v1655_v23 }
 0x1fa   : > { %7997 = vst [vmem:[#allocation52_spill] sm:$0xff] %v5714_v43  ;;  %v738_v21 = vmax.f32 %v706_v25, 0.0  ;;  %v2089_v7 = vmul.f32 %v5473_v38, %v5526_v3  ;;  %v7617_v19 = vshra.s32 %v5709_v16, 4  ;;  %v934_v15 = vand.u32 15, %v5709_v16  ;;  %v8007_v25 = vld [vmem:[#allocation23_spill] sm:$0xff]  ;;  %v8144_v3 = vld [vmem:[#allocation21_spill] sm:$0xff] }
 0x1fb   : > { %v1724_v0 = vadd.f32 %v1692_v37, %v1430_v8  ;;  %v804_v56 = vmul.f32 %v772_v6, %v5571_v57  ;;  %v5729_v22 = vadd.s32 192, %v4060_v61  ;;  %vm5731_vm7 = vcmp.lt.s32.totalorder %v933_v62, 15 }
 0x1fc   : > { %v770_v14 = vmin.f32 %v738_v21, 6.0  ;;  %v2121_v17 = vadd.f32 %v2089_v7, %v1956_v41  ;;  %v1925_v46 = vmul.f32 %v5385_v34, %v5488_v54  ;;  %v651_v40 = vadd.f32 %v5153_v33, %v8001_v49 }
 0x1fd   : > { %7998 = vst [vmem:[#allocation53_spill] sm:$0xff] %v5729_v22  ;;  %vm5741_vm13 = vcmp.ge.s32.totalorder %v7617_v19, 1  ;;  %vm5745_vm6 = vcmp.ge.s32.totalorder %v934_v15, 1  ;;  %v8004_v57 = vmov 0  ;;  %v5750_v26 = vadd.s32 200, %v4060_v61 }
 0x1fe   : > { %v802_v1 = vmul.f32 %v770_v14, %v640_v59  ;;  %v8005_v57 = vsel %vm5745_vm6, 4294967295, %v8004_v57  ;;  %v643_v23 = vadd.f32 %v5153_v33, %v8007_v25  ;;  %v5756_v8 = vadd.s32 248, %v4060_v61  ;;  %vm1102_vm9 = vmand %vm5741_vm13, %vm5745_vm6 }
 0x1ff   : > { %8006 = vst [vmem:[#allocation48_spill] sm:$0xff] %v8005_v57  ;;  %v709_v6 = vadd.f32 3.0, %v651_v40  ;;  %vm8008_vm0 = vnez %v7963_v39  ;;  %v5764_v62 = vmul.f32 0.16666667, %v804_v56  ;;  %v936_v21 = vand.u32 15, %v5729_v22 }
 0x200   : > { %v5758_v41 = vmul.f32 0.16666667, %v802_v1  ;;  %vm1560_vm11 = vmand %vm8008_vm0, %vm5731_vm7  ;;  %v1957_v7 = vadd.f32 %v1925_v46, %v1888_v9  ;;  %v8009_v56 = vshra.s32 %v5317_v20, 4  ;;  %vm8012_vm1 = vnez %v7972_v28 }
 0x201   : > { %v8013_v9 = vshra.s32 %v5371_v45, 4  ;;  %v741_v25 = vmax.f32 %v709_v6, 0.0  ;;  %v707_v19 = vadd.f32 3.0, %v643_v23  ;;  %v5795_v20 = vadd.s32 184, %v4060_v61  ;;  %vm8027_vm0 = vmand %vm8012_vm1, %vm5338_vm12 }
 0x202   : > { %v7621_v15 = vrot.slane %v5758_v41, 7  ;;  %v1363_v14 = vsel %vm5741_vm13, %v5758_v41, 0.0  ;;  %v7620_v1 = vrot.slane %v5758_v41, 1  ;;  %vm5779_vm14 = vcmp.lt.s32.totalorder %v8009_v56, 15 }
 0x203   : > { %vm5789_vm2 = vcmp.lt.s32.totalorder %v8013_v9, 15  ;;  %8016 = vst [vmem:[#allocation23_spill] sm:$0xff] %v5795_v20  ;;  %v8017_v56 = vrot.slane %v5488_v54, 7  ;;  %vm8018_vm4 = vcmp.lt.s32.totalorder %v4060_v61, 1  ;;  %v1400_v45 = vmul.f32 %v5422_v48, %v1363_v14  ;;  %vm2185_vm8 = vmand %vm5779_vm14, %vm5350_vm15 }
 0x204   : > { %v8019_v9 = vrot.slane %v5488_v54, 1  ;;  %v1926_v59 = vmul.f32 %v5385_v34, %v5758_v41  ;;  %vm5824_vm10 = vcmp.ge.s32.totalorder %v7619_v12, 1  ;;  %v8023_v54 = vmov 0 }
 0x205   : > { %v995_v27 = vsel %vm8018_vm4, %v8017_v56, %v7621_v15  ;;  %vm5818_vm4 = vcmp.lt.s32.totalorder %v7618_v31, 15  ;;  %v8021_v56 = vmov 0  ;;  %v8024_v54 = vsel %vm5824_vm10, 4294967295, %v8023_v54 }
 0x206   : > { %v1486_v6 = vsel %vm8020_vm5, %v8019_v9, %v7620_v1  ;;  %v8022_v56 = vsel %vm5818_vm4, 4294967295, %v8021_v56  ;;  %8025 = vst [vmem:[#allocation54_spill] sm:$0xff] %v8024_v54  ;;  %v1198_v5 = vsel %vm1102_vm9, %v995_v27, 0.0  ;;  %v1820_v9 = vsel %vm5529_vm3, %v995_v27, 0.0 }
 0x207   : > { %v1656_v14 = vsel %vm1560_vm11, %v1486_v6, 0.0  ;;  %v2446_v31 = vsel %vm5779_vm14, %v5758_v41, 0.0  ;;  %v1235_v12 = vmul.f32 %v5249_v47, %v1198_v5  ;;  %v1857_v60 = vmul.f32 %v5436_v24, %v1820_v9 }
 0x208   : > { %v1693_v55 = vmul.f32 %v5331_v53, %v1656_v14  ;;  %vm8026_vm15 = vnez %v7982_v44  ;;  %v2281_v52 = vsel %vm2185_vm8, %v995_v27, 0.0  ;;  %v2642_v1 = vsel %vm8027_vm0, %v1486_v6, 0.0 }
 0x209   : > { %v2053_v39 = vsel %vm8026_vm15, %v1486_v6, 0.0  ;;  %v773_v15 = vmin.f32 %v741_v25, 6.0  ;;  %v739_v37 = vmax.f32 %v707_v19, 0.0  ;;  %v1267_v36 = vadd.f32 %v5451_v63, %v1235_v12 }
 0x20a   : > { %v1889_v13 = vadd.f32 %v1857_v60, %v1724_v0  ;;  %v2318_v5 = vmul.f32 %v5660_v30, %v2281_v52  ;;  %v2679_v14 = vmul.f32 %v5674_v50, %v2642_v1  ;;  %v2090_v9 = vmul.f32 %v5473_v38, %v2053_v39  ;;  %v8043_v39 = vld [vmem:[#allocation11_spill] sm:$0xff] }
 0x20b   : > { %v2483_v29 = vmul.f32 %v5550_v2, %v2446_v31  ;;  %v805_v27 = vmul.f32 %v773_v15, %v651_v40  ;;  %v771_v35 = vmin.f32 %v739_v37, 6.0  ;;  %v5858_v28 = vadd.f32 %v1400_v45, %v1267_v36 }
 0x20c   : > { %v5860_v10 = vadd.f32 %v1926_v59, %v1889_v13  ;;  %v2350_v6 = vadd.f32 %v2318_v5, %v2121_v17  ;;  %v5863_v19 = vadd.f32 %v2679_v14, %v5686_v51  ;;  %v973_v12 = vrot.slane %v5764_v62, 7  ;;  %v8044_v14 = vld [vmem:[#allocation14_spill] sm:$0xff] }
 0x20d   : > { %v5866_v0 = vmul.f32 0.16666667, %v805_v27  ;;  %v8029_v52 = vshra.s32 %v5750_v26, 4  ;;  %v8030_v60 = vmov 0  ;;  %v803_v31 = vmul.f32 %v771_v35, %v643_v23 }
 0x20e   : > { %8028 = vst [vmem:[#allocation55_spill] sm:$0xff] %v5863_v19  ;;  %v5874_v40 = vadd.f32 %v2483_v29, %v2350_v6  ;;  %v7625_v13 = vshra.s32 %v5795_v20, 4  ;;  %v1725_v36 = vadd.f32 %v1693_v55, %v5596_v58  ;;  %v5878_v17 = vadd.f32 %v2090_v9, %v1957_v7  ;;  %v8050_v9 = vld [vmem:[#allocation31_spill] sm:$0xff] }
 0x20f   : > { %vm5870_vm12 = vcmp.ge.s32.totalorder %v8029_v52, 1  ;;  %v1464_v51 = vrot.slane %v5764_v62, 1  ;;  %v7627_v59 = vrot.slane %v5866_v0, 7  ;;  %v7626_v37 = vrot.slane %v5866_v0, 1 }
 0x210   : > { %v8031_v60 = vsel %vm5870_vm12, 4294967295, %v8030_v60  ;;  %v935_v15 = vand.u32 15, %v5795_v20  ;;  %v8032_v1 = vshra.s32 %v5729_v22, 4  ;;  %vm5890_vm9 = vcmp.ge.s32.totalorder %v936_v21, 1 }
 0x211   : > { %v8035_v29 = vmov 0  ;;  %v2448_v58 = vsel %vm5789_vm2, %v5764_v62, 0.0  ;;  %v5897_v55 = vmul.f32 0.16666667, %v803_v31  ;;  %vm8038_vm1 = vcmp.lt.s32.totalorder %v4060_v61, 1 }
 0x212   : > { %vm5886_vm11 = vcmp.ge.s32.totalorder %v8032_v1, 1  ;;  %v8036_v29 = vsel %vm5890_vm9, 4294967295, %v8035_v29  ;;  %v992_v23 = vsel %vm8038_vm1, %v973_v12, %v7627_v59  ;;  %v1366_v7 = vsel %vm5870_vm12, %v5866_v0, 0.0 }
 0x213   : > { %8037 = vst [vmem:[#allocation56_spill] sm:$0xff] %v8036_v29  ;;  %v5910_v21 = vsel %vm8020_vm5, %v1464_v51, %v7626_v37  ;;  %v8039_v25 = vshra.s32 %v5415_v42, 4  ;;  %v8040_v45 = vmov 0  ;;  %v1201_v27 = vsel %vm5870_vm12, %v992_v23, 0.0 }
 0x214   : > { %vm5928_vm0 = vcmp.ge.s32.totalorder %v7625_v13, 1  ;;  %v1238_v52 = vmul.f32 %v5249_v47, %v1201_v27  ;;  %vm5938_vm1 = vcmp.lt.s32.totalorder %v935_v15, 15  ;;  %v8047_v1 = vmov 0 }
 0x215   : > { %vm5914_vm8 = vcmp.lt.s32.totalorder %v8039_v25, 15  ;;  %v8048_v1 = vsel %vm5938_vm1, 4294967295, %v8047_v1  ;;  %v5947_v25 = vmul.f32 %v5550_v2, %v2448_v58  ;;  %v1403_v13 = vmul.f32 %v5422_v48, %v1366_v7  ;;  %vm1562_vm10 = vmand %vm5928_vm0, %vm5938_vm1 }
 0x216   : > { %v8041_v45 = vsel %vm5914_vm8, 4294967295, %v8040_v45  ;;  %v2284_v31 = vsel %vm5914_vm8, %v992_v23, 0.0  ;;  %8049 = vst [vmem:[#allocation11_spill] sm:$0xff] %v8048_v1  ;;  %v2449_v27 = vsel %vm5914_vm8, %v5866_v0, 0.0  ;;  %v972_v37 = vrot.slane %v5897_v55, 7 }
 0x217   : > { %8042 = vst [vmem:[#allocation57_spill] sm:$0xff] %v8041_v45  ;;  %v1270_v15 = vadd.f32 %v5451_v63, %v1238_v52  ;;  %v1364_v59 = vsel %vm5928_vm0, %v5897_v55, 0.0  ;;  %v1463_v42 = vrot.slane %v5897_v55, 1  ;;  %v8051_v5 = vshra.s32 %v8050_v9, 4 }
 0x218   : > { %v1860_v7 = vmul.f32 %v5436_v24, %v992_v23  ;;  %v2321_v19 = vmul.f32 %v5660_v30, %v2284_v31  ;;  %vm8054_vm8 = vcmp.lt.s32.totalorder %v4060_v61, 1  ;;  %v8055_v52 = vrot.slane %v5758_v41, 7 }
 0x219   : > { %vm5961_vm5 = vcmp.lt.s32.totalorder %v8051_v5, 15  ;;  %v993_v20 = vsel %vm8054_vm8, %v972_v37, %v973_v12  ;;  %vm8056_vm12 = vmmov %vm8054_vm8  ;;  %v5977_v5 = vadd.f32 %v1403_v13, %v1270_v15  ;;  %vm8059_vm4 = vcmp.lt.s32.totalorder %v4060_v61, 7 }
 0x21a   : > { %v994_v16 = vsel %vm8056_vm12, %v8055_v52, %v972_v37  ;;  %vm8058_vm8 = vmand %vm5886_vm11, %vm5890_vm9  ;;  %v1484_v9 = vsel %vm8059_vm4, %v1463_v42, %v1464_v51  ;;  %v2645_v37 = vsel %vm5789_vm2, %v5910_v21, 0.0  ;;  %v1401_v13 = vmul.f32 %v5422_v48, %v1364_v59 }
 0x21b   : > { %8057 = vst [vmem:[#allocation31_spill] sm:$0xff] %v5977_v5  ;;  %v1199_v23 = vsel %vm5928_vm0, %v994_v16, 0.0  ;;  %v1200_v12 = vsel %vm8058_vm8, %v993_v20, 0.0  ;;  %v8060_v6 = vrot.slane %v5758_v41, 1  ;;  %vm8061_vm12 = vmmov %vm8059_vm4  ;;  %v8062_v52 = vshra.s32 %v5703_v32, 4 }
 0x21c   : > { %v1236_v31 = vmul.f32 %v5249_v47, %v1199_v23  ;;  %v8063_v1 = vmov 0  ;;  %v1658_v5 = vsel %vm1562_vm10, %v1484_v9, 0.0  ;;  %v1822_v23 = vsel %vm5745_vm6, %v993_v20, 0.0  ;;  %vm2187_vm4 = vmand %vm5789_vm2, %vm5529_vm3 }
 0x21d   : > { %v1485_v15 = vsel %vm8061_vm12, %v8060_v6, %v1463_v42  ;;  %vm5999_vm0 = vcmp.lt.s32.totalorder %v8062_v52, 15  ;;  %v1858_v59 = vmul.f32 %v5436_v24, %v994_v16  ;;  %v1237_v41 = vmul.f32 %v5249_v47, %v1200_v12  ;;  %vm2548_vm10 = vmand %vm5961_vm5, %vm8026_vm15 }
 0x21e   : > { %v8064_v1 = vsel %vm5999_vm0, 4294967295, %v8063_v1  ;;  %v1657_v51 = vsel %vm5741_vm13, %v1485_v15, 0.0  ;;  %v1268_v42 = vadd.f32 %v5451_v63, %v1236_v31  ;;  %v1695_v4 = vmul.f32 %v5331_v53, %v1658_v5 }
 0x21f   : > { %8065 = vst [vmem:[#allocation58_spill] sm:$0xff] %v8064_v1  ;;  %v1694_v6 = vmul.f32 %v5331_v53, %v1657_v51  ;;  %v1859_v52 = vmul.f32 %v5436_v24, %v1822_v23  ;;  %v1890_v32 = vadd.f32 %v1858_v59, %v1725_v36  ;;  %v1927_v29 = vmul.f32 %v5385_v34, %v5897_v55 }
 0x220   : > { %v2055_v57 = vsel %vm5731_vm7, %v1484_v9, 0.0  ;;  %v1433_v22 = vadd.f32 %v1401_v13, %v1268_v42  ;;  %v2091_v12 = vmul.f32 %v5473_v38, %v1485_v15  ;;  %v8066_v51 = vshra.s32 %v5714_v43, 4 }
 0x221   : > { %v1726_v45 = vadd.f32 %v1694_v6, %v5858_v28  ;;  %v2092_v31 = vmul.f32 %v5473_v38, %v2055_v57  ;;  %v8067_v5 = vmov 0  ;;  %v1959_v36 = vadd.f32 %v1927_v29, %v1890_v32 }
 0x222   : > { %vm6026_vm13 = vcmp.lt.s32.totalorder %v8066_v51, 15  ;;  %v2282_v23 = vsel %vm5961_vm5, %v994_v16, 0.0  ;;  %v2283_v28 = vsel %vm2187_vm4, %v993_v20, 0.0  ;;  %v2447_v57 = vsel %vm5961_vm5, %v5897_v55, 0.0 }
 0x223   : > { %v8068_v5 = vsel %vm6026_vm13, 4294967295, %v8067_v5  ;;  %v1727_v13 = vadd.f32 %v1695_v4, %v1433_v22  ;;  %v1891_v32 = vadd.f32 %v1859_v52, %v1726_v45  ;;  %v2123_v29 = vadd.f32 %v2091_v12, %v5860_v10  ;;  %v8072_v52 = vld [vmem:[#allocation28_spill] sm:$0xff] }
 0x224   : > { %v2319_v16 = vmul.f32 %v5660_v30, %v2282_v23  ;;  %v8069_v46 = vand.u32 15, %v5700_v11  ;;  %v2124_v20 = vadd.f32 %v2092_v31, %v1959_v36  ;;  %v2320_v55 = vmul.f32 %v5660_v30, %v2283_v28  ;;  %v8074_v36 = vld [vmem:[#allocation26_spill] sm:$0xff] }
 0x225   : > { %v2484_v44 = vmul.f32 %v5550_v2, %v2447_v57  ;;  %v2643_v58 = vsel %vm5779_vm14, %v1485_v15, 0.0  ;;  %v6056_v22 = vadd.f32 %v1860_v7, %v1727_v13  ;;  %v2644_v45 = vsel %vm2548_vm10, %v1484_v9, 0.0 }
 0x226   : > { %vm6048_vm8 = vcmp.ge.s32.totalorder %v8069_v46, 1  ;;  %v2351_v10 = vadd.f32 %v2319_v16, %v5878_v17  ;;  %v2680_v59 = vmul.f32 %v5674_v50, %v2643_v58  ;;  %v2486_v42 = vmul.f32 %v5550_v2, %v2449_v27 }
 0x227   : > { %v8071_v18 = vsel %vm6048_vm8, 4294967295, %v8070_v18  ;;  %v2352_v6 = vadd.f32 %v2320_v55, %v2123_v29  ;;  %v2353_v4 = vadd.f32 %v2321_v19, %v2124_v20  ;;  %v664_v12 = vadd.f32 %v5153_v33, %v8072_v52  ;;  %v8092_v52 = vld [vmem:[#allocation12_spill] sm:$0xff] }
 0x228   : > { %v2682_v31 = vmul.f32 %v5674_v50, %v2645_v37  ;;  %v2516_v51 = vadd.f32 %v2484_v44, %v2351_v10  ;;  %v2681_v49 = vmul.f32 %v5674_v50, %v2644_v45  ;;  %v6066_v7 = vadd.f32 %v2680_v59, %v5874_v40  ;;  %v8099_v37 = vld [vmem:[#allocation49_spill] sm:$0xff] }
 0x229   : > { %v2517_v17 = vadd.f32 %v5947_v25, %v2352_v6  ;;  %v6069_v9 = vadd.f32 %v2486_v42, %v2353_v4  ;;  %v712_v15 = vadd.f32 3.0, %v664_v12  ;;  %v656_v27 = vadd.f32 %v5153_v33, %v8074_v36  ;;  %v8091_v6 = vld [vmem:[#allocation16_spill] sm:$0xff] }
 0x22a   : > { %8073 = vst [vmem:[#allocation28_spill] sm:$0xff] %v6066_v7  ;;  %v2458_v19 = vsel %vm5999_vm0, %v8044_v14, 0.0  ;;  %v1269_v23 = vadd.f32 %v5451_v63, %v1237_v41  ;;  %v6078_v28 = vadd.f32 %v2681_v49, %v2516_v51  ;;  %v6082_v40 = vmul.f32 %v5385_v34, %v8043_v39  ;;  %v8093_v49 = vld [vmem:[#allocation17_spill] sm:$0xff]  ;;  %v6503_v7 = vld [vmem:[%s7504_s3 + $0x2] ss:$0 sm:$0xff] }
 0x22b   : > { %v8077_v25 = vand.u32 15, %v5714_v43  ;;  %v8078_v57 = vmov 0  ;;  %v1659_v13 = vsel %vm5886_vm11, %v5910_v21, 0.0  ;;  %v6093_v29 = vadd.f32 %v2682_v31, %v2517_v17 }
 0x22c   : > { %8075 = vst [vmem:[#allocation26_spill] sm:$0xff] %v6078_v28  ;;  %8076 = vst [vmem:[#allocation59_spill] sm:$0xff] %v6082_v40  ;;  %v710_v16 = vadd.f32 3.0, %v656_v27  ;;  %vm8081_vm14 = vnez %v8022_v56  ;;  %vm8084_vm2 = vnez %v8024_v54  ;;  %v6111_v44 = vmul.f32 %v5385_v34, %v8044_v14 }
 0x22d   : > { %vm6086_vm3 = vcmp.lt.s32.totalorder %v8077_v25, 15  ;;  %8080 = vst [vmem:[#allocation60_spill] sm:$0xff] %v6093_v29  ;;  %v8082_v41 = vsel %vm8081_vm14, %v8043_v39, 0.0  ;;  %v8085_v20 = vsel %vm8084_vm2, %v8044_v14, 0.0  ;;  %v8088_v58 = vsel %vm5886_vm11, %v5764_v62, 0.0  ;;  %v8094_v25 = vld [vmem:[#allocation19_spill] sm:$0xff] }
 0x22e   : > { %v8079_v57 = vsel %vm6086_vm3, 4294967295, %v8078_v57  ;;  %v6100_v46 = vmul.f32 %v5550_v2, %v8082_v41  ;;  %v6107_v55 = vmul.f32 %v5422_v48, %v8085_v20  ;;  %8087 = vst [vmem:[#allocation63_spill] sm:$0xff] %v6111_v44  ;;  %v1402_v39 = vmul.f32 %v5422_v48, %v8088_v58 }
 0x22f   : > { %v6119_v10 = vmul.f32 %v5550_v2, %v2458_v19  ;;  %v744_v45 = vmax.f32 %v712_v15, 0.0  ;;  %v742_v59 = vmax.f32 %v710_v16, 0.0  ;;  %v6122_v42 = vadd.s32 208, %v4060_v61 }
 0x230   : > { %8083 = vst [vmem:[#allocation61_spill] sm:$0xff] %v6100_v46  ;;  %8086 = vst [vmem:[#allocation62_spill] sm:$0xff] %v6107_v55  ;;  %v2264_v4 = vsel %vm6026_vm13, %v8091_v6, 0.0  ;;  %v2429_v35 = vsel %vm6026_vm13, %v8092_v52, 0.0  ;;  %v1696_v31 = vmul.f32 %v5331_v53, %v1659_v13  ;;  %v1434_v51 = vadd.f32 %v1402_v39, %v1269_v23  ;;  %v8130_v46 = vld [vmem:[#allocation51_spill] sm:$0xff] }
 0x231   : > { %8089 = vst [vmem:[#allocation64_spill] sm:$0xff] %v6119_v10  ;;  %8090 = vst [vmem:[#allocation65_spill] sm:$0xff] %v6122_v42  ;;  %v2625_v17 = vsel %vm8081_vm14, %v8093_v49, 0.0  ;;  %v1928_v15 = vmul.f32 %v5385_v34, %v5764_v62  ;;  %v937_v36 = vand.u32 15, %v5750_v26  ;;  %v774_v19 = vmin.f32 %v742_v59, 6.0  ;;  %v8126_v10 = vld [vmem:[#allocation53_spill] sm:$0xff] }
 0x232   : > { %v1802_v16 = vsel %vm6048_vm8, %v8094_v25, 0.0  ;;  %v6141_v41 = vadd.s32 224, %v4060_v61  ;;  %v938_v13 = vand.u32 15, %v6122_v42  ;;  %v1728_v23 = vadd.f32 %v1696_v31, %v1434_v51  ;;  %v8104_v51 = vld [vmem:[#allocation20_spill] sm:$0xff] }
 0x233   : > { %v776_v20 = vmin.f32 %v744_v45, 6.0  ;;  %v806_v58 = vmul.f32 %v774_v19, %v656_v27  ;;  %v7653_v39 = vshra.s32 %v6122_v42, 4  ;;  %v1960_v6 = vadd.f32 %v1928_v15, %v1891_v32  ;;  %v8101_v27 = vld [vmem:[#allocation25_spill] sm:$0xff]  ;;  %v6760_v45 = vld [vmem:[%s7504_s3 + $0x7] ss:$0 sm:$0xff] }
 0x234   : > { %8095 = vst [vmem:[#allocation16_spill] sm:$0xff] %v6141_v41  ;;  %v6147_v62 = vmul.f32 %v5473_v38, %v8093_v49  ;;  %v6150_v59 = vmul.f32 %v5660_v30, %v2264_v4  ;;  %v6153_v52 = vmul.f32 %v5550_v2, %v2429_v35  ;;  %v667_v29 = vadd.f32 %v5153_v33, %v8099_v37  ;;  %v8117_v37 = vld [vmem:[#allocation13_spill] sm:$0xff] }
 0x235   : > { %v6158_v31 = vmul.f32 %v5674_v50, %v2625_v17  ;;  %v1637_v32 = vsel %vm8084_vm2, %v8101_v27, 0.0  ;;  %vm6163_vm15 = vcmp.lt.s32.totalorder %v937_v36, 15  ;;  %v2093_v4 = vmul.f32 %v5473_v38, %v5910_v21 }
 0x236   : > { %8096 = vst [vmem:[#allocation12_spill] sm:$0xff] %v6147_v62  ;;  %8097 = vst [vmem:[#allocation17_spill] sm:$0xff] %v6150_v59  ;;  %v6171_v35 = vmul.f32 %v5436_v24, %v8104_v51  ;;  %v6174_v33 = vmul.f32 %v5436_v24, %v1802_v16  ;;  %vm6177_vm11 = vcmp.ge.s32.totalorder %v938_v13, 1  ;;  %v8107_v49 = vmov 0 }
 0x237   : > { %8098 = vst [vmem:[#allocation19_spill] sm:$0xff] %v6153_v52  ;;  %8100 = vst [vmem:[#allocation49_spill] sm:$0xff] %v6158_v31  ;;  %v8108_v49 = vsel %vm6177_vm11, 4294967295, %v8107_v49  ;;  %v8110_v17 = vand.u32 15, %v4060_v61  ;;  %v8111_v15 = vmov 0  ;;  %v808_v21 = vmul.f32 %v776_v20, %v664_v12 }
 0x238   : > { %8105 = vst [vmem:[#allocation20_spill] sm:$0xff] %v6171_v35  ;;  %8106 = vst [vmem:[#allocation66_spill] sm:$0xff] %v6174_v33  ;;  %v6187_v36 = vmul.f32 0.16666667, %v806_v58  ;;  %vm6191_vm12 = vcmp.ge.s32.totalorder %v7653_v39, 1  ;;  %v8114_v19 = vmov 0  ;;  %v2125_v16 = vadd.f32 %v2093_v4, %v1960_v6 }
 0x239   : > { %8109 = vst [vmem:[#allocation67_spill] sm:$0xff] %v8108_v49  ;;  %vm6183_vm5 = vcmp.ge.s32.totalorder %v8110_v17, 1  ;;  %v8115_v19 = vsel %vm6191_vm12, 4294967295, %v8114_v19  ;;  %v6196_v13 = vmul.f32 %v5331_v53, %v1637_v32  ;;  %v6200_v28 = vmul.f32 %v5385_v34, %v8117_v37  ;;  %v8119_v17 = vld [vmem:[#allocation24_spill] sm:$0xff]  ;;  %vm1106_vm0 = vmand %vm6191_vm12, %vm6177_vm11  ;;  %v8121_v39 = vld [vmem:[#allocation57_spill] sm:$0xff] }
 0x23a   : > { %v8112_v15 = vsel %vm6183_vm5, 4294967295, %v8111_v15  ;;  %vm8120_vm4 = vnez %v8031_v60  ;;  %v713_v20 = vadd.f32 3.0, %v667_v29  ;;  %v1929_v58 = vmul.f32 %v5385_v34, %v5866_v0 }
 0x23b   : > { %8113 = vst [vmem:[#allocation68_spill] sm:$0xff] %v8112_v15  ;;  %8116 = vst [vmem:[#allocation69_spill] sm:$0xff] %v6196_v13  ;;  %v940_v6 = vand.u32 15, %v6141_v41  ;;  %vm8122_vm2 = vnez %v8121_v39  ;;  %v8123_v12 = vshra.s32 %v6141_v41, 4  ;;  %v8127_v32 = vshra.s32 %v8126_v10, 4  ;;  %v8164_v41 = vld [vmem:[#allocation23_spill] sm:$0xff] }
 0x23c   : > { %8118 = vst [vmem:[#allocation70_spill] sm:$0xff] %v6200_v28  ;;  %v1367_v4 = vsel %vm6191_vm12, %v6187_v36, 0.0  ;;  %v8131_v44 = vshra.s32 %v8130_v46, 4  ;;  %v6243_v59 = vmul.f32 0.16666667, %v808_v21  ;;  %v8134_v62 = vrot.slane %v6187_v36, 7 }
 0x23d   : > { %vm6224_vm13 = vcmp.ge.s32.totalorder %v8123_v12, 1  ;;  %vm6230_vm3 = vcmp.lt.s32.totalorder %v8127_v32, 15  ;;  %v745_v12 = vmax.f32 %v713_v20, 0.0  ;;  %v8135_v10 = vrot.slane %v5866_v0, 7  ;;  %v6293_v39 = vld [vmem:[%s7503_s2] ss:$0 sm:$0xff] }
 0x23e   : > { %vm6239_vm8 = vcmp.lt.s32.totalorder %v8131_v44, 15  ;;  %vm8136_vm10 = vcmp.lt.s32.totalorder %v4060_v61, 1  ;;  %v8137_v40 = vrot.slane %v6187_v36, 1  ;;  %v8138_v28 = vrot.slane %v5866_v0, 1 }
 0x23f   : > { %v991_v32 = vsel %vm8136_vm10, %v8135_v10, %v8134_v62  ;;  %vm8139_vm11 = vcmp.lt.s32.totalorder %v4060_v61, 7  ;;  %vm2189_vm12 = vmand %vm6239_vm8, %vm5745_vm6  ;;  %v6262_v21 = vadd.s32 232, %v4060_v61  ;;  %v1404_v44 = vmul.f32 %v5422_v48, %v1367_v4 }
 0x240   : > { %v1482_v46 = vsel %vm8139_vm11, %v8138_v28, %v8137_v40  ;;  %v1202_v20 = vsel %vm1106_vm0, %v991_v32, 0.0  ;;  %vm8141_vm10 = vmand %vm8120_vm4, %vm6163_vm15  ;;  %v1824_v0 = vsel %vm5890_vm9, %v991_v32, 0.0  ;;  %v1930_v28 = vmul.f32 %v5385_v34, %v6187_v36 }
 0x241   : > { %v1660_v62 = vsel %vm8141_vm10, %v1482_v46, 0.0  ;;  %v1239_v40 = vmul.f32 %v5249_v47, %v1202_v20  ;;  %v1861_v33 = vmul.f32 %v5436_v24, %v1824_v0  ;;  %v2450_v60 = vsel %vm6239_vm8, %v6187_v36, 0.0  ;;  %vm8143_vm6 = vmand %vm8122_vm2, %vm5731_vm7 }
 0x242   : > { %v1697_v35 = vmul.f32 %v5331_v53, %v1660_v62  ;;  %v2285_v13 = vsel %vm2189_vm12, %v991_v32, 0.0  ;;  %v2646_v55 = vsel %vm8143_vm6, %v1482_v46, 0.0  ;;  %v777_v1 = vmin.f32 %v745_v12, 6.0  ;;  %vm2167_vm7 = vmand %vm8081_vm14, %vm6183_vm5 }
 0x243   : > { %v1271_v47 = vadd.f32 %v5451_v63, %v1239_v40  ;;  %v1893_v20 = vadd.f32 %v1861_v33, %v1728_v23  ;;  %v2322_v4 = vmul.f32 %v5660_v30, %v2285_v13  ;;  %v2683_v0 = vmul.f32 %v5674_v50, %v2646_v55  ;;  %v8147_v40 = vld [vmem:[#allocation31_spill] sm:$0xff]  ;;  %vm8155_vm2 = vmmov %vm8139_vm11 }
 0x244   : > { %v2487_v14 = vmul.f32 %v5550_v2, %v2450_v60  ;;  %v809_v54 = vmul.f32 %v777_v1, %v667_v29  ;;  %v7669_v62 = vshra.s32 %v6262_v21, 4  ;;  %v659_v12 = vadd.f32 %v6293_v39, %v8144_v3 }
 0x245   : > { %v6297_v32 = vadd.f32 %v1404_v44, %v1271_v47  ;;  %v6299_v23 = vadd.f32 %v1930_v28, %v1893_v20  ;;  %v2354_v33 = vadd.f32 %v2322_v4, %v2125_v16  ;;  %v6302_v55 = vadd.f32 %v2683_v0, %v6069_v9 }
 0x246   : > { %v7672_v1 = vrot.slane %v6243_v59, 7  ;;  %v6309_v29 = vmul.f32 0.16666667, %v809_v54  ;;  %v711_v13 = vadd.f32 3.0, %v659_v12  ;;  %v6312_v60 = vadd.f32 %v1697_v35, %v8147_v40 }
 0x247   : > { %8145 = vst [vmem:[#allocation57_spill] sm:$0xff] %v6302_v55  ;;  %v1369_v16 = vsel %vm6224_vm13, %v6243_v59, 0.0  ;;  %v1468_v9 = vrot.slane %v6243_v59, 1  ;;  %v6318_v28 = vadd.f32 %v2487_v14, %v2354_v33  ;;  %v1961_v44 = vadd.f32 %v1929_v58, %v6056_v22 }
 0x248   : > { %8146 = vst [vmem:[#allocation53_spill] sm:$0xff] %v6309_v29  ;;  %v7671_v56 = vrot.slane %v6309_v29, 7  ;;  %vm6324_vm0 = vcmp.ge.s32.totalorder %v7669_v62, 1  ;;  %v8148_v54 = vmov 0  ;;  %v7670_v35 = vrot.slane %v6309_v29, 1 }
 0x249   : > { %v8149_v54 = vsel %vm6324_vm0, 4294967295, %v8148_v54  ;;  %v6330_v47 = vadd.s32 216, %v4060_v61  ;;  %v6334_v20 = vmul.f32 %v5473_v38, %v8101_v27  ;;  %v6337_v14 = vsel %vm2167_vm7, %v8094_v25, 0.0 }
 0x24a   : > { %8150 = vst [vmem:[#allocation51_spill] sm:$0xff] %v8149_v54  ;;  %v2452_v22 = vsel %vm6230_vm3, %v6243_v59, 0.0  ;;  %v743_v58 = vmax.f32 %v711_v13, 0.0  ;;  %v2057_v0 = vsel %vm5938_vm1, %v1482_v46, 0.0  ;;  %vm8154_vm14 = vcmp.lt.s32.totalorder %v4060_v61, 1 }
 0x24b   : > { %8151 = vst [vmem:[#allocation48_spill] sm:$0xff] %v6330_v47  ;;  %8152 = vst [vmem:[#allocation56_spill] sm:$0xff] %v6334_v20  ;;  %v6350_v3 = vsel %vm8154_vm14, %v7672_v1, %v7671_v56  ;;  %v6356_v25 = vsel %vm8155_vm2, %v1468_v9, %v7670_v35  ;;  %v8156_v33 = vshra.s32 %v5750_v26, 4  ;;  %v8157_v13 = vmov 0 }
 0x24c   : > { %vm6364_vm12 = vcmp.ge.s32.totalorder %v940_v6, 1  ;;  %v8160_v46 = vmov 0  ;;  %v6369_v40 = vmul.f32 %v5422_v48, %v1369_v16  ;;  %v1205_v62 = vsel %vm6324_vm0, %v6350_v3, 0.0  ;;  %v6387_v16 = vld [vmem:[%s7504_s3] ss:$0 sm:$0xff] }
 0x24d   : > { %vm6360_vm11 = vcmp.lt.s32.totalorder %v8156_v33, 15  ;;  %v8161_v46 = vsel %vm6364_vm12, 4294967295, %v8160_v46  ;;  %v1370_v35 = vsel %vm6324_vm0, %v6309_v29, 0.0  ;;  %v6379_v26 = vmul.f32 %v5385_v34, %v6243_v59  ;;  %8163 = vst [vmem:[#allocation11_spill] sm:$0xff] %v6387_v16 }
 0x24e   : > { %v8158_v13 = vsel %vm6360_vm11, 4294967295, %v8157_v13  ;;  %8162 = vst [vmem:[#allocation31_spill] sm:$0xff] %v8161_v46  ;;  %v6382_v6 = vmul.f32 %v5550_v2, %v2452_v22  ;;  %v1242_v33 = vmul.f32 %v6387_v16, %v1205_v62  ;;  %v2094_v1 = vmul.f32 %v5473_v38, %v2057_v0  ;;  %v8196_v62 = vld [vmem:[#allocation44_spill] sm:$0xff] }
 0x24f   : > { %8159 = vst [vmem:[#allocation21_spill] sm:$0xff] %v8158_v13  ;;  %v2453_v55 = vsel %vm6360_vm11, %v6309_v29, 0.0  ;;  %v775_v20 = vmin.f32 %v743_v58, 6.0  ;;  %v1407_v15 = vmul.f32 %v5422_v48, %v1370_v35  ;;  %v939_v43 = vand.u32 15, %v6330_v47  ;;  %v8168_v58 = vld [vmem:[#allocation18_spill] sm:$0xff] }
 0x250   : > { %v1274_v22 = vadd.f32 %v5451_v63, %v1242_v33  ;;  %v8165_v42 = vshra.s32 %v8164_v41, 4  ;;  %v1663_v0 = vsel %vm6224_vm13, %v6356_v25, 0.0  ;;  %v6408_v56 = vadd.f32 %v2094_v1, %v1961_v44 }
 0x251   : > { %v807_v27 = vmul.f32 %v775_v20, %v659_v12  ;;  %v6412_v33 = vadd.f32 %v6293_v39, %v8168_v58  ;;  %v6417_v29 = vmul.f32 %v5550_v2, %v2453_v55  ;;  %vm6425_vm6 = vcmp.lt.s32.totalorder %v939_v43, 15  ;;  %v8177_v55 = vld [vmem:[#allocation29_spill] sm:$0xff] }
 0x252   : > { %vm6401_vm4 = vcmp.lt.s32.totalorder %v8165_v42, 15  ;;  %v6414_v35 = vadd.f32 %v1407_v15, %v1274_v22  ;;  %v8171_v42 = vshra.s32 %v6330_v47, 4  ;;  %v8174_v54 = vmov 0  ;;  %8190 = vst [vmem:[#allocation29_spill] sm:$0xff] %v6503_v7 }
 0x253   : > { %8169 = vst [vmem:[#allocation23_spill] sm:$0xff] %v6412_v33  ;;  %v8175_v54 = vsel %vm6425_vm6, 4294967295, %v8174_v54  ;;  %v6431_v12 = vmul.f32 %v5436_v24, %v6350_v3  ;;  %v840_v1 = vmul.f32 0.16666667, %v807_v27  ;;  %v6434_v15 = vadd.f32 3.0, %v6412_v33 }
 0x254   : > { %8170 = vst [vmem:[#allocation18_spill] sm:$0xff] %v6414_v35  ;;  %vm6421_vm10 = vcmp.ge.s32.totalorder %v8171_v42, 1  ;;  %8176 = vst [vmem:[#allocation71_spill] sm:$0xff] %v8175_v54  ;;  %v6438_v44 = vadd.f32 %v6293_v39, %v8177_v55  ;;  %v6445_v43 = vmul.f32 %v5331_v53, %v1663_v0  ;;  %v6449_v20 = vmul.f32 %v5473_v38, %v6356_v25 }
 0x255   : > { %v2288_v27 = vsel %vm6360_vm11, %v6350_v3, 0.0  ;;  %v2649_v22 = vsel %vm6230_vm3, %v6356_v25, 0.0  ;;  %v976_v58 = vrot.slane %v840_v1, 7  ;;  %v1368_v42 = vsel %vm6421_vm10, %v840_v1, 0.0  ;;  %vm1566_vm14 = vmand %vm6421_vm10, %vm6425_vm6 }
 0x256   : > { %v1467_v55 = vrot.slane %v840_v1, 1  ;;  %v1931_v53 = vmul.f32 %v5385_v34, %v840_v1  ;;  %v1405_v0 = vmul.f32 %v5422_v48, %v1368_v42  ;;  %v2451_v3 = vsel %vm6401_vm4, %v840_v1, 0.0 }
 0x257   : > { %v748_v47 = vmax.f32 %v6434_v15, 0.0  ;;  %v714_v25 = vadd.f32 3.0, %v6438_v44  ;;  %v8178_v35 = vrot.slane %v6243_v59, 7  ;;  %vm8179_vm2 = vcmp.lt.s32.totalorder %v4060_v61, 1 }
 0x258   : > { %v8180_v54 = vrot.slane %v6187_v36, 7  ;;  %vm8181_vm7 = vmmov %vm8179_vm2  ;;  %vm8182_vm5 = vcmp.lt.s32.totalorder %v4060_v61, 7  ;;  %v8183_v48 = vrot.slane %v6187_v36, 1  ;;  %vm8186_vm11 = vnez %v8115_v19 }
 0x259   : > { %v989_v13 = vsel %vm8179_vm2, %v976_v58, %v8178_v35  ;;  %v1480_v34 = vsel %vm8182_vm5, %v1467_v55, %v1468_v9  ;;  %vm8184_vm6 = vmmov %vm8182_vm5  ;;  %v8187_v9 = vshra.s32 %v5700_v11, 4  ;;  %v6619_v36 = vmul.f32 %v5660_v30, %v6337_v14 }
 0x25a   : > { %v990_v33 = vsel %vm8181_vm7, %v8180_v54, %v976_v58  ;;  %v1481_v1 = vsel %vm8184_vm6, %v8183_v48, %v1467_v55  ;;  %vm8185_vm2 = vmand %vm6224_vm13, %vm6364_vm12  ;;  %v1662_v35 = vsel %vm1566_vm14, %v1480_v34, 0.0  ;;  %v2059_v48 = vsel %vm6163_vm15, %v1480_v34, 0.0 }
 0x25b   : > { %v1203_v15 = vsel %vm6421_vm10, %v990_v33, 0.0  ;;  %v1204_v59 = vsel %vm8185_vm2, %v989_v13, 0.0  ;;  %v1661_v54 = vsel %vm8186_vm11, %v1481_v1, 0.0  ;;  %vm6494_vm5 = vcmp.lt.s32.totalorder %v8187_v9, 15  ;;  %vm2191_vm13 = vmand %vm6230_vm3, %vm5890_vm9 }
 0x25c   : > { %v1240_v58 = vmul.f32 %v6387_v16, %v1203_v15  ;;  %v1241_v41 = vmul.f32 %v6387_v16, %v1204_v59  ;;  %v1698_v42 = vmul.f32 %v6503_v7, %v1661_v54  ;;  %v1699_v19 = vmul.f32 %v6503_v7, %v1662_v35  ;;  %vm2552_vm6 = vmand %vm6401_vm4, %vm5938_vm1 }
 0x25d   : > { %vm8191_vm11 = vnez %v8108_v49  ;;  %v1862_v55 = vmul.f32 %v5436_v24, %v990_v33  ;;  %v2095_v15 = vmul.f32 %v5473_v38, %v1481_v1  ;;  %v8192_v59 = vshra.s32 %v5756_v8, 4 }
 0x25e   : > { %v1826_v11 = vsel %vm8191_vm11, %v989_v13, 0.0  ;;  %v8193_v54 = vmov 0  ;;  %v1272_v35 = vadd.f32 %v5451_v63, %v1240_v58  ;;  %v1273_v9 = vadd.f32 %v5451_v63, %v1241_v41 }
 0x25f   : > { %vm6519_vm10 = vcmp.lt.s32.totalorder %v8192_v59, 15  ;;  %v1730_v7 = vadd.f32 %v1698_v42, %v6297_v32  ;;  %v1863_v16 = vmul.f32 %v5436_v24, %v1826_v11  ;;  %v1894_v46 = vadd.f32 %v1862_v55, %v6312_v60  ;;  %v8206_v11 = vld [vmem:[#allocation37_spill] sm:$0xff] }
 0x260   : > { %v8194_v54 = vsel %vm6519_vm10, 4294967295, %v8193_v54  ;;  %v2096_v49 = vmul.f32 %v5473_v38, %v2059_v48  ;;  %v2127_v61 = vadd.f32 %v2095_v15, %v6299_v23  ;;  %v2286_v59 = vsel %vm6401_vm4, %v990_v33, 0.0  ;;  %v8207_v48 = vld [vmem:[#allocation47_spill] sm:$0xff]  ;;  %v8208_v15 = vld [vmem:[#allocation32_spill] sm:$0xff] }
 0x261   : > { %8195 = vst [vmem:[#allocation72_spill] sm:$0xff] %v8194_v54  ;;  %v1437_v58 = vadd.f32 %v1405_v0, %v1272_v35  ;;  %v1895_v63 = vadd.f32 %v1863_v16, %v1730_v7  ;;  %v2287_v24 = vsel %vm2191_vm13, %v989_v13, 0.0  ;;  %v2323_v38 = vmul.f32 %v5660_v30, %v2286_v59  ;;  %v8307_v16 = vld [vmem:[#allocation19_spill] sm:$0xff] }
 0x262   : > { %v1963_v32 = vadd.f32 %v1931_v53, %v1894_v46  ;;  %v2324_v23 = vmul.f32 %v5660_v30, %v2287_v24  ;;  %v2488_v60 = vmul.f32 %v5550_v2, %v2451_v3  ;;  %v2647_v4 = vsel %vm6239_vm8, %v1481_v1, 0.0 }
 0x263   : > { %v8197_v33 = vand.u32 15, %v8196_v62  ;;  %v1731_v31 = vadd.f32 %v1699_v19, %v1437_v58  ;;  %v2355_v10 = vadd.f32 %v2323_v38, %v6408_v56  ;;  %v2648_v13 = vsel %vm2552_vm6, %v1480_v34, 0.0  ;;  %v8215_v38 = vld [vmem:[#allocation23_spill] sm:$0xff] }
 0x264   : > { %v2684_v0 = vmul.f32 %v5674_v50, %v2647_v4  ;;  %v2325_v46 = vmul.f32 %v5660_v30, %v2288_v27  ;;  %v2128_v53 = vadd.f32 %v2096_v49, %v1963_v32  ;;  %v2356_v41 = vadd.f32 %v2324_v23, %v2127_v61 }
 0x265   : > { %vm6548_vm1 = vcmp.ge.s32.totalorder %v8197_v33, 1  ;;  %v2685_v3 = vmul.f32 %v5674_v50, %v2648_v13  ;;  %v6557_v52 = vadd.f32 %v6431_v12, %v1731_v31  ;;  %v2520_v1 = vadd.f32 %v2488_v60, %v2355_v10  ;;  %v8305_v31 = vld [vmem:[#allocation17_spill] sm:$0xff] }
 0x266   : > { %v6560_v7 = vadd.f32 %v2684_v0, %v6318_v28  ;;  %v746_v42 = vmax.f32 %v714_v25, 0.0  ;;  %vm8201_vm9 = vnez %v8071_v18  ;;  %v2686_v56 = vmul.f32 %v5674_v50, %v2649_v22  ;;  %v6729_v0 = vld [vmem:[%s7504_s3 + $0x3] ss:$0 sm:$0xff] }
 0x267   : > { %vm2169_vm8 = vmand %vm6494_vm5, %vm8201_vm9  ;;  %v2357_v27 = vadd.f32 %v2325_v46, %v2128_v53  ;;  %v2521_v61 = vadd.f32 %v6382_v6, %v2356_v41  ;;  %v1438_v49 = vadd.f32 %v6369_v40, %v1273_v9  ;;  %vm8202_vm3 = vnez %v8079_v57  ;;  %v8210_v9 = vld [vmem:[#allocation43_spill] sm:$0xff]  ;;  %v8221_v46 = vld [vmem:[#allocation45_spill] sm:$0xff] }
 0x268   : > { %8200 = vst [vmem:[#allocation44_spill] sm:$0xff] %v6560_v7  ;;  %vm8203_vm4 = vnez %v8068_v5  ;;  %v6573_v28 = vadd.f32 %v2685_v3, %v2520_v1  ;;  %v780_v12 = vmin.f32 %v748_v47, 6.0  ;;  %v778_v25 = vmin.f32 %v746_v42, 6.0  ;;  %v8223_v41 = vld [vmem:[#allocation53_spill] sm:$0xff] }
 0x269   : > { %vm2530_vm7 = vmand %vm8203_vm4, %vm8202_vm3  ;;  %v1964_v34 = vadd.f32 %v6379_v26, %v1895_v63  ;;  %v2294_v22 = vsel %vm6519_vm10, %v8104_v51, 0.0  ;;  %v6580_v19 = vadd.f32 %v6417_v29, %v2357_v27  ;;  %v6582_v6 = vadd.f32 %v2686_v56, %v2521_v61  ;;  %v8209_v29 = vld [vmem:[#allocation38_spill] sm:$0xff]  ;;  %v8224_v56 = vld [vmem:[#allocation21_spill] sm:$0xff] }
 0x26a   : > { %8204 = vst [vmem:[#allocation73_spill] sm:$0xff] %v6573_v28  ;;  %v1732_v40 = vadd.f32 %v6445_v43, %v1438_v49  ;;  %v2265_v5 = vsel %vm2169_vm8, %v8206_v11, 0.0  ;;  %v810_v55 = vmul.f32 %v778_v25, %v6438_v44  ;;  %v6590_v26 = vadd.f32 %v6293_v39, %v8207_v48  ;;  %v8226_v61 = vld [vmem:[#allocation10_spill] sm:$0xff] }
 0x26b   : > { %8205 = vst [vmem:[#allocation74_spill] sm:$0xff] %v6582_v6  ;;  %v2129_v47 = vadd.f32 %v6449_v20, %v1964_v34  ;;  %v2430_v51 = vsel %vm6494_vm5, %v8208_v15, 0.0  ;;  %v2626_v35 = vsel %vm2530_vm7, %v8209_v29, 0.0  ;;  %v2627_v43 = vsel %vm6494_vm5, %v8210_v9, 0.0  ;;  %v6608_v20 = vld [vmem:[%s7504_s3 + $0x5] ss:$0 sm:$0xff] }
 0x26c   : > { %v8211_v59 = vand.u32 15, %v6262_v21  ;;  %v8214_v58 = vsel %vm8202_vm3, %v8119_v17, 0.0  ;;  %v812_v32 = vmul.f32 %v780_v12, %v8215_v38  ;;  %v6626_v23 = vmul.f32 %v5660_v30, %v2294_v22  ;;  %v8230_v34 = vld [vmem:[#allocation65_spill] sm:$0xff]  ;;  %v8275_v28 = vld [vmem:[#allocation58_spill] sm:$0xff] }
 0x26d   : > { %v6615_v63 = vmul.f32 %v6608_v20, %v8214_v58  ;;  %v6629_v60 = vmul.f32 %v5660_v30, %v2265_v5  ;;  %v6631_v4 = vmul.f32 0.16666667, %v810_v55  ;;  %v8217_v33 = vshra.s32 %v8196_v62, 4  ;;  %v8241_v58 = vld [vmem:[#allocation31_spill] sm:$0xff] }
 0x26e   : > { %vm6601_vm14 = vcmp.lt.s32.totalorder %v8211_v59, 15  ;;  %8216 = vst [vmem:[#allocation37_spill] sm:$0xff] %v6626_v23  ;;  %v6640_v14 = vmul.f32 %v5550_v2, %v2430_v51  ;;  %v6643_v10 = vmul.f32 %v5674_v50, %v2626_v35  ;;  %v6646_v13 = vmul.f32 %v5674_v50, %v2627_v43  ;;  %v6659_v2 = vld [vmem:[%s7504_s3 + $0x4] ss:$0 sm:$0xff]  ;;  %v8239_v35 = vld [vmem:[#allocation33_spill] sm:$0xff] }
 0x26f   : > { %vm6635_vm2 = vcmp.ge.s32.totalorder %v8217_v33, 1  ;;  %v717_v62 = vadd.f32 3.0, %v6590_v26  ;;  %v6654_v53 = vadd.f32 3.0, %v8221_v46  ;;  %v1933_v3 = vmul.f32 %v6659_v2, %v8223_v41  ;;  %v8242_v33 = vld [vmem:[#allocation11_spill] sm:$0xff] }
 0x270   : > { %v7708_v1 = vrot.slane %v6631_v4, 7  ;;  %vm1110_vm13 = vmand %vm6635_vm2, %vm6548_vm1  ;;  %v7707_v42 = vrot.slane %v6631_v4, 1  ;;  %vm8225_vm6 = vnez %v8224_v56  ;;  %v6673_v27 = vmul.f32 0.16666667, %v812_v32  ;;  %v8309_v56 = vld [vmem:[#allocation63_spill] sm:$0xff] }
 0x271   : > { %8222 = vst [vmem:[#allocation47_spill] sm:$0xff] %v6654_v53  ;;  %v8227_v49 = vshra.s32 %v8226_v61, 4  ;;  %v1371_v25 = vsel %vm6635_vm2, %v6631_v4, 0.0  ;;  %v8231_v22 = vshra.s32 %v8230_v34, 4  ;;  %v8232_v11 = vmov 0 }
 0x272   : > { %v8234_v5 = vrot.slane %v8223_v41, 7  ;;  %vm8235_vm8 = vcmp.lt.s32.totalorder %v8226_v61, 1  ;;  %v8236_v48 = vrot.slane %v8223_v41, 1  ;;  %vm8237_vm5 = vcmp.lt.s32.totalorder %v8226_v61, 7 }
 0x273   : > { %vm6677_vm4 = vcmp.ge.s32.totalorder %v8227_v49, 1  ;;  %vm6686_vm7 = vcmp.lt.s32.totalorder %v8231_v22, 15  ;;  %v1934_v51 = vmul.f32 %v6659_v2, %v6631_v4  ;;  %v6710_v9 = vadd.f32 %v6293_v39, %v8239_v35  ;;  %v6723_v49 = vld [vmem:[%s7504_s3 + $0x1] ss:$0 sm:$0xff]  ;;  %v8243_v22 = vld [vmem:[#allocation29_spill] sm:$0xff] }
 0x274   : > { %v8233_v11 = vsel %vm6686_vm7, 4294967295, %v8232_v11  ;;  %v987_v55 = vsel %vm8235_vm8, %v8234_v5, %v7708_v1  ;;  %v1478_v15 = vsel %vm8237_vm5, %v8236_v48, %v7707_v42  ;;  %vm2193_vm10 = vmand %vm6686_vm7, %vm8191_vm11  ;;  %v749_v32 = vmax.f32 %v717_v62, 0.0  ;;  %v8244_v48 = vld [vmem:[#allocation71_spill] sm:$0xff]  ;;  %v8247_v1 = vld [vmem:[#allocation16_spill] sm:$0xff] }
 0x275   : > { %v1206_v43 = vsel %vm1110_vm13, %v987_v55, 0.0  ;;  %vm8240_vm8 = vmand %vm6324_vm0, %vm6601_vm14  ;;  %v1828_v38 = vsel %vm6364_vm12, %v987_v55, 0.0  ;;  %v1408_v39 = vmul.f32 %v6723_v49, %v1371_v25  ;;  %v2454_v62 = vsel %vm6686_vm7, %v6631_v4, 0.0 }
 0x276   : > { %v1664_v59 = vsel %vm8240_vm8, %v1478_v15, 0.0  ;;  %v1243_v41 = vmul.f32 %v8242_v33, %v1206_v43  ;;  %v1865_v34 = vmul.f32 %v6729_v0, %v1828_v38  ;;  %vm8245_vm0 = vnez %v8244_v48  ;;  %vm8246_vm11 = vmand %vm8225_vm6, %vm6163_vm15  ;;  %v6746_v43 = vld [vmem:[%s7505_s4] ss:$0 sm:$0xff] }
 0x277   : > { %v1701_v5 = vmul.f32 %v8243_v22, %v1664_v59  ;;  %v2061_v29 = vsel %vm8245_vm0, %v1478_v15, 0.0  ;;  %v2289_v35 = vsel %vm2193_vm10, %v987_v55, 0.0  ;;  %v2650_v25 = vsel %vm8246_vm11, %v1478_v15, 0.0 }
 0x278   : > { %v1275_v38 = vadd.f32 %v6746_v43, %v1243_v41  ;;  %v1897_v24 = vadd.f32 %v1865_v34, %v1732_v40  ;;  %v2326_v59 = vmul.f32 %v5660_v30, %v2289_v35  ;;  %v2687_v42 = vmul.f32 %v5674_v50, %v2650_v25  ;;  %v8252_v25 = vld [vmem:[#allocation18_spill] sm:$0xff] }
 0x279   : > { %v8248_v55 = vshra.s32 %v8247_v1, 4  ;;  %v2491_v15 = vmul.f32 %v6760_v45, %v2454_v62  ;;  %v781_v17 = vmin.f32 %v749_v32, 6.0  ;;  %v715_v40 = vadd.f32 3.0, %v6710_v9 }
 0x27a   : > { %v6764_v41 = vadd.f32 %v1408_v39, %v1275_v38  ;;  %v6766_v30 = vadd.f32 %v1934_v51, %v1897_v24  ;;  %v2358_v50 = vadd.f32 %v2326_v59, %v2129_v47  ;;  %v6769_v1 = vadd.f32 %v2687_v42, %v6580_v19  ;;  %v8253_v42 = vld [vmem:[#allocation46_spill] sm:$0xff] }
 0x27b   : > { %vm6753_vm10 = vcmp.lt.s32.totalorder %v8248_v55, 15  ;;  %v2098_v34 = vmul.f32 %v6608_v20, %v2061_v29  ;;  %v813_v35 = vmul.f32 %v781_v17, %v6590_v26  ;;  %v6774_v55 = vadd.f32 %v1701_v5, %v8252_v25  ;;  %v8255_v26 = vld [vmem:[#allocation52_spill] sm:$0xff] }
 0x27c   : > { %8251 = vst [vmem:[#allocation32_spill] sm:$0xff] %v6769_v1  ;;  %v1965_v62 = vadd.f32 %v1933_v3, %v6557_v52  ;;  %v1341_v32 = vsel %vm6677_vm4, %v6673_v27, 0.0  ;;  %v2456_v47 = vsel %vm6753_vm10, %v6673_v27, 0.0  ;;  %v6783_v24 = vadd.f32 %v2491_v15, %v2358_v50  ;;  %v8259_v15 = vld [vmem:[#allocation54_spill] sm:$0xff] }
 0x27d   : > { %v747_v19 = vmax.f32 %v715_v40, 0.0  ;;  %v6786_v51 = vadd.f32 3.0, %v8253_v42  ;;  %v846_v17 = vmul.f32 0.16666667, %v813_v35  ;;  %v8256_v39 = vshra.s32 %v8255_v26, 4  ;;  %v8268_v1 = vld [vmem:[#allocation14_spill] sm:$0xff] }
 0x27e   : > { %v6794_v52 = vadd.f32 %v2098_v34, %v1965_v62  ;;  %v7716_v3 = vrot.slane %v6673_v27, 7  ;;  %v6800_v38 = vmul.f32 %v6659_v2, %v6673_v27  ;;  %v943_v59 = vand.u32 15, %v5756_v8 }
 0x27f   : > { %8254 = vst [vmem:[#allocation38_spill] sm:$0xff] %v6786_v51  ;;  %vm6790_vm15 = vcmp.ge.s32.totalorder %v8256_v39, 1  ;;  %vm8260_vm5 = vnez %v8259_v15  ;;  %v6808_v40 = vmul.f32 %v6723_v49, %v1341_v32  ;;  %v6811_v50 = vmul.f32 %v6760_v45, %v2456_v47 }
 0x280   : > { %v982_v34 = vrot.slane %v846_v17, 7  ;;  %v1473_v35 = vrot.slane %v846_v17, 1  ;;  %v1342_v25 = vsel %vm6790_vm15, %v846_v17, 0.0  ;;  %v8261_v62 = vshra.s32 %v6262_v21, 4 }
 0x281   : > { %v779_v32 = vmin.f32 %v747_v19, 6.0  ;;  %v8264_v47 = vshra.s32 %v5756_v8, 4  ;;  %vm8267_vm13 = vcmp.lt.s32.totalorder %v8226_v61, 1  ;;  %v8269_v6 = vrot.slane %v8268_v1, 7 }
 0x282   : > { %vm6821_vm8 = vcmp.lt.s32.totalorder %v8261_v62, 15  ;;  %v984_v29 = vsel %vm8267_vm13, %v7716_v3, %v982_v34  ;;  %vm8270_vm6 = vmmov %vm8267_vm13  ;;  %v8271_v62 = vrot.slane %v6673_v27, 1  ;;  %vm8272_vm7 = vcmp.lt.s32.totalorder %v8226_v61, 7 }
 0x283   : > { %vm6827_vm11 = vcmp.ge.s32.totalorder %v8264_v47, 1  ;;  %v1015_v21 = vsel %vm8270_vm6, %v982_v34, %v8269_v6  ;;  %v8273_v8 = vrot.slane %v8268_v1, 1  ;;  %vm8274_vm0 = vmmov %vm8272_vm7  ;;  %vm8276_vm13 = vnez %v8275_v28  ;;  %v6939_v28 = vld [vmem:[%s7504_s3 + $0x8] ss:$0 sm:$0xff] }
 0x284   : > { %v1475_v19 = vsel %vm8272_vm7, %v8271_v62, %v1473_v35  ;;  %vm2197_vm12 = vmand %vm8276_vm13, %vm6548_vm1  ;;  %v1177_v3 = vsel %vm6790_vm15, %v984_v29, 0.0  ;;  %v6861_v1 = vmul.f32 %v6659_v2, %v846_v17  ;;  %vm6863_vm7 = vcmp.lt.s32.totalorder %v943_v59, 15 }
 0x285   : > { %v6847_v47 = vsel %vm8274_vm0, %v1473_v35, %v8273_v8  ;;  %vm8277_vm6 = vmand %vm8260_vm5, %vm8201_vm9  ;;  %v8280_v35 = vld [vmem:[#allocation48_spill] sm:$0xff]  ;;  %v1214_v7 = vmul.f32 %v8242_v33, %v1177_v3  ;;  %v1635_v18 = vsel %vm6677_vm4, %v1475_v19, 0.0  ;;  %v2457_v3 = vsel %vm6821_vm8, %v846_v17, 0.0 }
 0x286   : > { %v1178_v6 = vsel %vm8277_vm6, %v1015_v21, 0.0  ;;  %v8281_v62 = vshra.s32 %v8280_v35, 4  ;;  %vm8284_vm9 = vmand %vm6790_vm15, %vm8202_vm3  ;;  %v1379_v35 = vmul.f32 %v6723_v49, %v1342_v25  ;;  %v2292_v5 = vsel %vm6821_vm8, %v984_v29, 0.0 }
 0x287   : > { %v1215_v15 = vmul.f32 %v8242_v33, %v1178_v6  ;;  %v1636_v59 = vsel %vm8284_vm9, %v6847_v47, 0.0  ;;  %v811_v6 = vmul.f32 %v779_v32, %v6710_v9  ;;  %v1246_v46 = vadd.f32 %v6746_v43, %v1214_v7  ;;  %vm2558_vm3 = vmand %vm6821_vm8, %vm6601_vm14  ;;  %v8287_v32 = vld [vmem:[#allocation62_spill] sm:$0xff] }
 0x288   : > { %vm6869_vm0 = vcmp.lt.s32.totalorder %v8281_v62, 15  ;;  %v8285_v62 = vld [vmem:[#allocation68_spill] sm:$0xff]  ;;  %v2293_v57 = vsel %vm2197_vm12, %v1015_v21, 0.0  ;;  %v1672_v25 = vmul.f32 %v8243_v22, %v1635_v18  ;;  %v1673_v23 = vmul.f32 %v8243_v22, %v1636_v59  ;;  %vm1570_vm15 = vmand %vm6827_vm11, %vm6863_vm7 }
 0x289   : > { %vm8286_vm5 = vnez %v8285_v62  ;;  %v1247_v51 = vadd.f32 %v6746_v43, %v1215_v15  ;;  %v6901_v17 = vmul.f32 %v6729_v0, %v984_v29  ;;  %v2653_v7 = vsel %vm6753_vm10, %v1475_v19, 0.0  ;;  %v6919_v29 = vld [vmem:[%s7504_s3 + $0x6] ss:$0 sm:$0xff] }
 0x28a   : > { %v1800_v42 = vsel %vm8286_vm5, %v1015_v21, 0.0  ;;  %v1411_v9 = vadd.f32 %v1379_v35, %v1246_v46  ;;  %v6914_v18 = vmul.f32 %v6608_v20, %v1475_v19  ;;  %v6922_v26 = vmul.f32 %v6919_v29, %v2292_v5  ;;  %v8290_v35 = vld [vmem:[#allocation69_spill] sm:$0xff]  ;;  %vm1080_vm12 = vmand %vm6677_vm4, %vm8286_vm5 }
 0x28b   : > { %v1412_v15 = vadd.f32 %v8287_v32, %v1247_v51  ;;  %v6911_v21 = vmul.f32 %v6729_v0, %v1800_v42  ;;  %v6925_v59 = vmul.f32 %v6919_v29, %v2293_v57  ;;  %v6928_v46 = vmul.f32 %v6760_v45, %v2457_v3 }
 0x28c   : > { %v6930_v51 = vmul.f32 0.16666667, %v811_v6  ;;  %v1705_v42 = vadd.f32 %v1673_v23, %v1411_v9  ;;  %v6934_v32 = vsel %vm2558_vm3, %v6847_v47, 0.0  ;;  %v6942_v5 = vmul.f32 %v6939_v28, %v2653_v7  ;;  %v8292_v9 = vld [vmem:[#allocation20_spill] sm:$0xff]  ;;  %v8293_v7 = vld [vmem:[#allocation66_spill] sm:$0xff] }
 0x28d   : > { %8288 = vst [vmem:[#allocation43_spill] sm:$0xff] %v6925_v59  ;;  %8289 = vst [vmem:[#allocation23_spill] sm:$0xff] %v6928_v46  ;;  %v1706_v19 = vadd.f32 %v8290_v35, %v1412_v15  ;;  %v8294_v37 = vrot.slane %v6673_v27, 7  ;;  %vm8295_vm8 = vcmp.lt.s32.totalorder %v8226_v61, 1  ;;  %vm8299_vm9 = vcmp.lt.s32.totalorder %v8226_v61, 7  ;;  %v8303_v46 = vld [vmem:[#allocation59_spill] sm:$0xff] }
 0x28e   : > { %8291 = vst [vmem:[#allocation51_spill] sm:$0xff] %v6942_v5  ;;  %v980_v23 = vrot.slane %v6930_v51, 7  ;;  %v1372_v3 = vsel %vm6827_vm11, %v6930_v51, 0.0  ;;  %v1471_v6 = vrot.slane %v6930_v51, 1  ;;  %v1935_v57 = vmul.f32 %v6659_v2, %v6930_v51  ;;  %vm8297_vm6 = vmmov %vm8295_vm8 }
 0x28f   : > { %v1870_v15 = vadd.f32 %v8292_v9, %v1705_v42  ;;  %v1871_v35 = vadd.f32 %v8293_v7, %v1706_v19  ;;  %v1409_v5 = vmul.f32 %v6723_v49, %v1372_v3  ;;  %v2455_v53 = vsel %vm6869_vm0, %v6930_v51, 0.0  ;;  %vm8301_vm3 = vmmov %vm8299_vm9  ;;  %v8302_v7 = vld [vmem:[#allocation70_spill] sm:$0xff] }
 0x290   : > { %v985_v2 = vsel %vm8295_vm8, %v980_v23, %v8294_v37  ;;  %v8296_v42 = vrot.slane %v6631_v4, 7  ;;  %v8298_v49 = vrot.slane %v6673_v27, 1  ;;  %v8300_v9 = vrot.slane %v6631_v4, 1 }
 0x291   : > { %v1939_v54 = vadd.f32 %v8302_v7, %v1870_v15  ;;  %v1940_v59 = vadd.f32 %v8303_v46, %v1871_v35  ;;  %v1176_v37 = vsel %vm1080_vm12, %v985_v2, 0.0  ;;  %v8304_v46 = vld [vmem:[#allocation12_spill] sm:$0xff] }
 0x292   : > { %v986_v19 = vsel %vm8297_vm6, %v8296_v42, %v980_v23  ;;  %v1476_v3 = vsel %vm8299_vm9, %v1471_v6, %v8298_v49  ;;  %v1477_v51 = vsel %vm8301_vm3, %v8300_v9, %v1471_v6  ;;  %v1213_v23 = vmul.f32 %v8242_v33, %v1176_v37 }
 0x293   : > { %v1207_v27 = vsel %vm6827_vm11, %v986_v19, 0.0  ;;  %v1665_v6 = vsel %vm6635_vm2, %v1477_v51, 0.0  ;;  %v1666_v42 = vsel %vm1570_vm15, %v1476_v3, 0.0  ;;  %v2104_v15 = vadd.f32 %v6615_v63, %v1939_v54 }
 0x294   : > { %v1244_v4 = vmul.f32 %v8242_v33, %v1207_v27  ;;  %v2105_v35 = vadd.f32 %v8304_v46, %v1940_v59  ;;  %v1702_v12 = vmul.f32 %v8243_v22, %v1665_v6  ;;  %v1703_v62 = vmul.f32 %v8243_v22, %v1666_v42 }
 0x295   : > { %v1245_v49 = vadd.f32 %v6746_v43, %v1213_v23  ;;  %v1830_v9 = vsel %vm6548_vm1, %v985_v2, 0.0  ;;  %v1866_v33 = vmul.f32 %v6729_v0, %v986_v19  ;;  %v2333_v7 = vadd.f32 %v8305_v31, %v2104_v15 }
 0x296   : > { %v1276_v39 = vadd.f32 %v6746_v43, %v1244_v4  ;;  %v2334_v37 = vadd.f32 %v6629_v60, %v2105_v35  ;;  %v1734_v54 = vadd.f32 %v1702_v12, %v6764_v41  ;;  %v1867_v63 = vmul.f32 %v6729_v0, %v1830_v9 }
 0x297   : > { %v1410_v59 = vadd.f32 %v6808_v40, %v1245_v49  ;;  %v1898_v27 = vadd.f32 %v1866_v33, %v6774_v55  ;;  %v2063_v43 = vsel %vm6601_vm14, %v1476_v3, 0.0  ;;  %vm8306_vm1 = vnez %v8241_v58 }
 0x298   : > { %v1441_v22 = vadd.f32 %v1409_v5, %v1276_v39  ;;  %vm2195_vm2 = vmand %vm6753_vm10, %vm8306_vm1  ;;  %v2498_v23 = vadd.f32 %v8307_v16, %v2333_v7  ;;  %v2499_v60 = vadd.f32 %v6640_v14, %v2334_v37  ;;  %v1899_v41 = vadd.f32 %v1867_v63, %v1734_v54  ;;  %v8312_v54 = vld [vmem:[#allocation61_spill] sm:$0xff] }
 0x299   : > { %v2099_v0 = vmul.f32 %v6608_v20, %v1477_v51  ;;  %v1704_v4 = vadd.f32 %v1672_v25, %v1410_v59  ;;  %v1967_v5 = vadd.f32 %v1935_v57, %v1898_v27  ;;  %v2100_v55 = vmul.f32 %v6608_v20, %v2063_v43  ;;  %v8313_v59 = vld [vmem:[#allocation43_spill] sm:$0xff]  ;;  %v8315_v27 = vld [vmem:[#allocation72_spill] sm:$0xff] }
 0x29a   : > { %v1735_v40 = vadd.f32 %v1703_v62, %v1441_v22  ;;  %v2695_v44 = vadd.f32 %v6643_v10, %v2498_v23  ;;  %v2696_v6 = vadd.f32 %v6646_v13, %v2499_v60  ;;  %v2290_v15 = vsel %vm6869_vm0, %v986_v19, 0.0  ;;  %v8314_v22 = vld [vmem:[#allocation23_spill] sm:$0xff]  ;;  %v8320_v23 = vld [vmem:[#allocation36_spill] sm:$0xff] }
 0x29b   : > { %v2131_v42 = vadd.f32 %v2099_v0, %v6766_v30  ;;  %v1869_v46 = vadd.f32 %v6911_v21, %v1704_v4  ;;  %v2132_v35 = vadd.f32 %v2100_v55, %v1967_v5  ;;  %v2291_v25 = vsel %vm2195_vm2, %v985_v2, 0.0  ;;  %v8324_v55 = vld [vmem:[#allocation64_spill] sm:$0xff] }
 0x29c   : > { %v1900_v14 = vadd.f32 %v6901_v17, %v1735_v40  ;;  %v2727_v57 = vadd.f32 3.0, %v2695_v44  ;;  %v2065_v10 = vsel %vm6863_vm7, %v6847_v47, 0.0  ;;  %v2327_v13 = vmul.f32 %v6919_v29, %v2290_v15  ;;  %v8323_v40 = vld [vmem:[#allocation37_spill] sm:$0xff] }
 0x29d   : > { %v2328_v30 = vmul.f32 %v6919_v29, %v2291_v25  ;;  %vm8308_vm14 = vnez %v8244_v48  ;;  %v2728_v17 = vadd.f32 3.0, %v2696_v6  ;;  %v1938_v21 = vadd.f32 %v8309_v56, %v1869_v46  ;;  %v8311_v29 = vld [vmem:[#allocation56_spill] sm:$0xff]  ;;  %v8325_v46 = vld [vmem:[#allocation38_spill] sm:$0xff] }
 0x29e   : > { %vm2556_vm4 = vmand %vm6869_vm0, %vm8308_vm14  ;;  %v2361_v58 = vadd.f32 %v6922_v26, %v2132_v35  ;;  %vm8310_vm10 = vnez %v8233_v11  ;;  %v2759_v19 = vmax.f32 %v2727_v57, 0.0  ;;  %v2359_v47 = vadd.f32 %v2327_v13, %v6794_v52  ;;  %v8326_v35 = vld [vmem:[#allocation39_spill] sm:$0xff] }
 0x29f   : > { %v2651_v2 = vsel %vm8310_vm10, %v1477_v51, 0.0  ;;  %v2360_v12 = vadd.f32 %v2328_v30, %v2131_v42  ;;  %v2492_v62 = vmul.f32 %v6760_v45, %v2455_v53  ;;  %v2103_v49 = vadd.f32 %v8311_v29, %v1938_v21  ;;  %v8327_v30 = vld [vmem:[#allocation42_spill] sm:$0xff] }
 0x2a0   : > { %v2652_v48 = vsel %vm2556_vm4, %v1476_v3, 0.0  ;;  %v2688_v8 = vmul.f32 %v6939_v28, %v2651_v2  ;;  %v1968_v39 = vadd.f32 %v6800_v38, %v1899_v41  ;;  %v2102_v26 = vmul.f32 %v6608_v20, %v2065_v10  ;;  %v8321_v41 = vld [vmem:[#allocation51_spill] sm:$0xff] }
 0x2a1   : > { %v2524_v9 = vadd.f32 %v2492_v62, %v2359_v47  ;;  %v2689_v33 = vmul.f32 %v6939_v28, %v2652_v48  ;;  %v2691_v11 = vmul.f32 %v6939_v28, %v6934_v32  ;;  %v2332_v52 = vadd.f32 %v6619_v36, %v2103_v49 }
 0x2a2   : > { %v7055_v51 = vadd.f32 %v2688_v8, %v6783_v24  ;;  %v1969_v53 = vadd.f32 %v6861_v1, %v1900_v14  ;;  %v2133_v3 = vadd.f32 %v6914_v18, %v1968_v39  ;;  %v2760_v31 = vmax.f32 %v2728_v17, 0.0  ;;  %v8317_v24 = vld [vmem:[#allocation13_spill] sm:$0xff]  ;;  %v8319_v18 = vld [vmem:[#allocation47_spill] sm:$0xff] }
 0x2a3   : > { %v2791_v7 = vmin.f32 %v2759_v19, 6.0  ;;  %v7059_v38 = vadd.f32 %v2689_v33, %v2524_v9  ;;  %v2525_v37 = vadd.f32 %v6811_v50, %v2360_v12  ;;  %v2497_v20 = vadd.f32 %v8312_v54, %v2332_v52  ;;  %v8322_v50 = vld [vmem:[#allocation49_spill] sm:$0xff]  ;;  %v8328_v19 = vld [vmem:[#allocation22_spill] sm:$0xff]  ;;  %v8329_v8 = vld [vmem:[#allocation15_spill] sm:$0xff] }
 0x2a4   : > { %v2134_v63 = vadd.f32 %v2102_v26, %v1969_v53  ;;  %v2362_v32 = vadd.f32 %v8313_v59, %v2133_v3  ;;  %v2526_v36 = vadd.f32 %v8314_v22, %v2361_v58  ;;  %vm8316_vm11 = vnez %v8315_v27  ;;  %v8332_v3 = vld [vmem:[#allocation40_spill] sm:$0xff]  ;;  %v8333_v22 = vld [vmem:[#allocation34_spill] sm:$0xff] }
 0x2a5   : > { %v8318_v43 = vsel %vm8316_vm11, %v8317_v24, 0.0  ;;  %v2761_v16 = vmax.f32 %v8319_v18, 0.0  ;;  %v2731_v60 = vadd.f32 3.0, %v8320_v23  ;;  %v7073_v0 = vadd.f32 %v8321_v41, %v2525_v37  ;;  %v8334_v41 = vld [vmem:[#allocation35_spill] sm:$0xff]  ;;  %vm2560_vm5 = vmand %vm8316_vm11, %vm6863_vm7 }
 0x2a6   : > { %v2496_v1 = vmul.f32 %v6760_v45, %v8318_v43  ;;  %v2694_v4 = vadd.f32 %v8322_v50, %v2497_v20  ;;  %v2363_v5 = vadd.f32 %v8323_v40, %v2134_v63  ;;  %v7078_v42 = vadd.f32 %v8324_v55, %v2362_v32 }
 0x2a7   : > { %v7080_v15 = vadd.f32 %v2691_v11, %v2526_v36  ;;  %v2762_v14 = vmax.f32 %v8325_v46, 0.0  ;;  %v2732_v45 = vadd.f32 3.0, %v8326_v35  ;;  %v2792_v25 = vmin.f32 %v2760_v31, 6.0  ;;  %v8331_v11 = vld [vmem:[#allocation46_spill] sm:$0xff] }
 0x2a8   : > { %v2823_v57 = vmul.f32 %v2791_v7, %v2695_v44  ;;  %v2726_v10 = vadd.f32 3.0, %v2694_v4  ;;  %v7084_v13 = vadd.f32 %v2496_v1, %v2363_v5  ;;  %v2733_v17 = vadd.f32 3.0, %v8327_v30  ;;  %v8330_v44 = vld [vmem:[#allocation45_spill] sm:$0xff] }
 0x2a9   : > { %v2793_v56 = vmin.f32 %v2761_v16, 6.0  ;;  %v2763_v21 = vmax.f32 %v2731_v60, 0.0  ;;  %v2794_v2 = vmin.f32 %v2762_v14, 6.0  ;;  %v2734_v47 = vadd.f32 3.0, %v8328_v19 }
 0x2aa   : > { %v2758_v58 = vmax.f32 %v2726_v10, 0.0  ;;  %v2764_v12 = vmax.f32 %v2732_v45, 0.0  ;;  %v2824_v62 = vmul.f32 %v2792_v25, %v2696_v6  ;;  %v7088_v29 = vmul.f32 0.16666667, %v2823_v57  ;;  %v8335_v45 = vld [vmem:[#allocation30_spill] sm:$0xff] }
 0x2ab   : > { %v2765_v48 = vmax.f32 %v2733_v17, 0.0  ;;  %v2735_v39 = vadd.f32 3.0, %v8329_v8  ;;  %v2825_v9 = vmul.f32 %v2793_v56, %v8330_v44  ;;  %v2795_v33 = vmin.f32 %v2763_v21, 6.0  ;;  %v8336_v21 = vld [vmem:[#allocation27_spill] sm:$0xff] }
 0x2ac   : > { %v2790_v49 = vmin.f32 %v2758_v58, 6.0  ;;  %v2826_v52 = vmul.f32 %v2794_v2, %v8331_v11  ;;  %vm2886_vm0 = vcmask 261120   ;;  %v2766_v53 = vmax.f32 %v2734_v47, 0.0 }
 0x2ad   : > { %v2736_v31 = vadd.f32 3.0, %v8332_v3  ;;  %v2796_v7 = vmin.f32 %v2764_v12, 6.0  ;;  %v7094_v37 = vmul.f32 0.16666667, %v2824_v62  ;;  %v2888_v6 = vsel %vm2886_vm0, %v7088_v29, 0.0  ;;  %v8337_v12 = vld [vmem:[#allocation41_spill] sm:$0xff] }
 0x2ae   : > { %v2822_v26 = vmul.f32 %v2790_v49, %v2694_v4  ;;  %v2797_v20 = vmin.f32 %v2765_v48, 6.0  ;;  %v2767_v63 = vmax.f32 %v2735_v39, 0.0  ;;  %v7100_v59 = vmul.f32 0.16666667, %v2825_v9 }
 0x2af   : > { %v2827_v32 = vmul.f32 %v2795_v33, %v8320_v23  ;;  %v2737_v36 = vadd.f32 3.0, %v8333_v22  ;;  %v7106_v43 = vmul.f32 0.16666667, %v2826_v52  ;;  %v2768_v1 = vmax.f32 %v2736_v31, 0.0 }
 0x2b0   : > { %v7098_v54 = vmul.f32 0.16666667, %v2822_v26  ;;  %v2798_v16 = vmin.f32 %v2766_v53, 6.0  ;;  %v2828_v60 = vmul.f32 %v2796_v7, %v8326_v35  ;;  %v2738_v50 = vadd.f32 3.0, %v8334_v41 }
 0x2b1   : > { %v2890_v4 = vsel %vm2886_vm0, %v7094_v37, 0.0  ;;  %v2829_v40 = vmul.f32 %v2797_v20, %v8327_v30  ;;  %v2799_v23 = vmin.f32 %v2767_v63, 6.0  ;;  %v2892_v55 = vsel %vm2886_vm0, %v7100_v59, 0.0 }
 0x2b2   : > { %v2887_v24 = vsel %vm2886_vm0, %v7098_v54, 0.0  ;;  %v7115_v46 = vmul.f32 0.16666667, %v2827_v32  ;;  %v2769_v14 = vmax.f32 %v2737_v36, 0.0  ;;  %v2739_v25 = vadd.f32 3.0, %v8335_v45  ;;  %v8339_v32 = vld [vmem:[#allocation55_spill] sm:$0xff] }
 0x2b3   : > { %v2889_v18 = vadd.f32 %v2888_v6, %v2887_v24  ;;  %v2894_v35 = vsel %vm2886_vm0, %v7106_v43, 0.0  ;;  %v2800_v57 = vmin.f32 %v2768_v1, 6.0  ;;  %v2830_v17 = vmul.f32 %v2798_v16, %v8328_v19  ;;  %v8338_v19 = vld [vmem:[#allocation50_spill] sm:$0xff]  ;;  %v8340_v24 = vld [vmem:[#allocation28_spill] sm:$0xff] }
 0x2b4   : > { %v7121_v56 = vmul.f32 0.16666667, %v2828_v60  ;;  %v2770_v30 = vmax.f32 %v2738_v50, 0.0  ;;  %v2740_v58 = vadd.f32 3.0, %v8336_v21  ;;  %v7124_v2 = vmul.f32 0.16666667, %v2829_v40 }
 0x2b5   : > { %v2891_v5 = vadd.f32 %v2890_v4, %v2889_v18  ;;  %v2831_v47 = vmul.f32 %v2799_v23, %v8329_v8  ;;  %v2741_v62 = vadd.f32 3.0, %v8337_v12  ;;  %v2896_v48 = vsel %vm2886_vm0, %v7115_v46, 0.0  ;;  %v8341_v23 = vld [vmem:[#allocation26_spill] sm:$0xff] }
 0x2b6   : > { %v2801_v39 = vmin.f32 %v2769_v14, 6.0  ;;  %v2771_v44 = vmax.f32 %v2739_v25, 0.0  ;;  %v2832_v9 = vmul.f32 %v2800_v57, %v8332_v3  ;;  %v2742_v33 = vadd.f32 3.0, %v8338_v19 }
 0x2b7   : > { %v2893_v10 = vadd.f32 %v2892_v55, %v2891_v5  ;;  %v7132_v11 = vmul.f32 0.16666667, %v2830_v17  ;;  %v2898_v52 = vsel %vm2886_vm0, %v7121_v56, 0.0  ;;  %v2802_v53 = vmin.f32 %v2770_v30, 6.0 }
 0x2b8   : > { %v2772_v8 = vmax.f32 %v2740_v58, 0.0  ;;  %v2900_v31 = vsel %vm2886_vm0, %v7124_v2, 0.0  ;;  %v7138_v7 = vmul.f32 0.16666667, %v2831_v47  ;;  %v2773_v6 = vmax.f32 %v2741_v62, 0.0  ;;  %v8342_v58 = vld [vmem:[#allocation60_spill] sm:$0xff] }
 0x2b9   : > { %v2895_v49 = vadd.f32 %v2894_v35, %v2893_v10  ;;  %v2833_v63 = vmul.f32 %v2801_v39, %v8333_v22  ;;  %v2803_v3 = vmin.f32 %v2771_v44, 6.0  ;;  %v2743_v36 = vadd.f32 3.0, %v8339_v32  ;;  %v8343_v39 = vld [vmem:[#allocation57_spill] sm:$0xff] }
 0x2ba   : > { %v2744_v1 = vadd.f32 3.0, %v8340_v24  ;;  %v7143_v18 = vmul.f32 0.16666667, %v2832_v9  ;;  %v2774_v16 = vmax.f32 %v2742_v33, 0.0  ;;  %v2902_v50 = vsel %vm2886_vm0, %v7132_v11, 0.0 }
 0x2bb   : > { %v2897_v26 = vadd.f32 %v2896_v48, %v2895_v49  ;;  %v2834_v4 = vmul.f32 %v2802_v53, %v8334_v41  ;;  %v2804_v40 = vmin.f32 %v2772_v8, 6.0  ;;  %v2745_v5 = vadd.f32 3.0, %v8341_v23 }
 0x2bc   : > { %v2904_v22 = vsel %vm2886_vm0, %v7138_v7, 0.0  ;;  %v2805_v55 = vmin.f32 %v2773_v6, 6.0  ;;  %v7151_v25 = vmul.f32 0.16666667, %v2833_v63  ;;  %v2835_v35 = vmul.f32 %v2803_v3, %v8335_v45  ;;  %v8344_v6 = vld [vmem:[#allocation44_spill] sm:$0xff] }
 0x2bd   : > { %v2899_v20 = vadd.f32 %v2898_v52, %v2897_v26  ;;  %v2775_v57 = vmax.f32 %v2743_v36, 0.0  ;;  %v2776_v10 = vmax.f32 %v2744_v1, 0.0  ;;  %v2906_v17 = vsel %vm2886_vm0, %v7143_v18, 0.0 }
 0x2be   : > { %v2806_v30 = vmin.f32 %v2774_v16, 6.0  ;;  %v2746_v41 = vadd.f32 3.0, %v8342_v58  ;;  %v7157_v62 = vmul.f32 0.16666667, %v2834_v4  ;;  %v2836_v49 = vmul.f32 %v2804_v40, %v8336_v21  ;;  %v8345_v16 = vld [vmem:[#allocation73_spill] sm:$0xff] }
 0x2bf   : > { %v2901_v60 = vadd.f32 %v2900_v31, %v2899_v20  ;;  %v2777_v48 = vmax.f32 %v2745_v5, 0.0  ;;  %v2747_v44 = vadd.f32 3.0, %v8343_v39  ;;  %v2837_v9 = vmul.f32 %v2805_v55, %v8337_v12 }
 0x2c0   : > { %v2908_v45 = vsel %vm2886_vm0, %v7151_v25, 0.0  ;;  %v7164_v26 = vmul.f32 0.16666667, %v2835_v35  ;;  %v2807_v52 = vmin.f32 %v2775_v57, 6.0  ;;  %v2808_v53 = vmin.f32 %v2776_v10, 6.0 }
 0x2c1   : > { %v2903_v14 = vadd.f32 %v2902_v50, %v2901_v60  ;;  %v2838_v8 = vmul.f32 %v2806_v30, %v8338_v19  ;;  %v2778_v31 = vmax.f32 %v2746_v41, 0.0  ;;  %v2748_v20 = vadd.f32 3.0, %v8344_v6 }
 0x2c2   : > { %v2910_v21 = vsel %vm2886_vm0, %v7157_v62, 0.0  ;;  %v7170_v3 = vmul.f32 0.16666667, %v2836_v49  ;;  %v2809_v12 = vmin.f32 %v2777_v48, 6.0  ;;  %v2779_v36 = vmax.f32 %v2747_v44, 0.0  ;;  %v8347_v48 = vld [vmem:[#allocation32_spill] sm:$0xff] }
 0x2c3   : > { %v2905_v47 = vadd.f32 %v2904_v22, %v2903_v14  ;;  %v7172_v1 = vmul.f32 0.16666667, %v2837_v9  ;;  %v2749_v60 = vadd.f32 3.0, %v8345_v16  ;;  %v2912_v4 = vsel %vm2886_vm0, %v7164_v26, 0.0 }
 0x2c4   : > { %v2839_v19 = vmul.f32 %v2807_v52, %v8339_v32  ;;  %v2840_v40 = vmul.f32 %v2808_v53, %v8340_v24  ;;  %v7179_v5 = vmul.f32 0.16666667, %v2838_v8  ;;  %v2810_v22 = vmin.f32 %v2778_v31, 6.0 }
 0x2c5   : > { %v2907_v33 = vadd.f32 %v2906_v17, %v2905_v47  ;;  %v2780_v55 = vmax.f32 %v2748_v20, 0.0  ;;  %v2914_v35 = vsel %vm2886_vm0, %v7170_v3, 0.0  ;;  %v2841_v57 = vmul.f32 %v2809_v12, %v8341_v23  ;;  %v8346_v17 = vld [vmem:[#allocation74_spill] sm:$0xff]  ;;  %v8348_v23 = vld [vmem:[#allocation25_spill] sm:$0xff] }
 0x2c6   : > { %v2811_v10 = vmin.f32 %v2779_v36, 6.0  ;;  %v2750_v30 = vadd.f32 3.0, %v8346_v17  ;;  %v2916_v41 = vsel %vm2886_vm0, %v7172_v1, 0.0  ;;  %v2781_v47 = vmax.f32 %v2749_v60, 0.0 }
 0x2c7   : > { %v2909_v63 = vadd.f32 %v2908_v45, %v2907_v33  ;;  %v7187_v49 = vmul.f32 0.16666667, %v2839_v19  ;;  %v7189_v24 = vmul.f32 0.16666667, %v2840_v40  ;;  %v2751_v44 = vadd.f32 3.0, %v8347_v48 }
 0x2c8   : > { %v2655_v33 = vsel %vm8276_vm13, %v8348_v23, 0.0  ;;  %v2918_v45 = vsel %vm2886_vm0, %v7179_v5, 0.0  ;;  %v2842_v52 = vmul.f32 %v2810_v22, %v8342_v58  ;;  %v2812_v53 = vmin.f32 %v2780_v55, 6.0 }
 0x2c9   : > { %v2911_v50 = vadd.f32 %v2910_v21, %v2909_v63  ;;  %v7202_v31 = vmul.f32 0.16666667, %v2841_v57  ;;  %v2843_v20 = vmul.f32 %v2811_v10, %v8343_v39  ;;  %v2752_v34 = vadd.f32 3.0, %v7055_v51  ;;  %v8350_v21 = vld [vmem:[#allocation24_spill] sm:$0xff] }
 0x2ca   : > { %v2782_v63 = vmax.f32 %v2750_v30, 0.0  ;;  %v2813_v27 = vmin.f32 %v2781_v47, 6.0  ;;  %v2656_v12 = vsel %vm2560_vm5, %v8350_v21, 0.0  ;;  %v2692_v36 = vmul.f32 %v6939_v28, %v2655_v33 }
 0x2cb   : > { %v2913_v14 = vadd.f32 %v2912_v4, %v2911_v50  ;;  %v2920_v50 = vsel %vm2886_vm0, %v7187_v49, 0.0  ;;  %v2922_v58 = vsel %vm2886_vm0, %v7189_v24, 0.0  ;;  %v2783_v4 = vmax.f32 %v2751_v44, 0.0 }
 0x2cc   : > { %v2753_v19 = vadd.f32 3.0, %v7059_v38  ;;  %v7213_v40 = vmul.f32 0.16666667, %v2842_v52  ;;  %v2844_v39 = vmul.f32 %v2812_v53, %v8344_v6  ;;  %v2724_v22 = vadd.f32 %v2692_v36, %v7078_v42 }
 0x2cd   : > { %v2915_v32 = vadd.f32 %v2914_v35, %v2913_v14  ;;  %v2693_v14 = vmul.f32 %v6939_v28, %v2656_v12  ;;  %v2754_v35 = vadd.f32 3.0, %v7073_v0  ;;  %v2784_v57 = vmax.f32 %v2752_v34, 0.0 }
 0x2ce   : > { %v2814_v10 = vmin.f32 %v2782_v63, 6.0  ;;  %v2924_v30 = vsel %vm2886_vm0, %v7202_v31, 0.0  ;;  %v2845_v47 = vmul.f32 %v2813_v27, %v8345_v16  ;;  %v2785_v44 = vmax.f32 %v2753_v19, 0.0 }
 0x2cf   : > { %v2917_v8 = vadd.f32 %v2916_v41, %v2915_v32  ;;  %v7221_v41 = vmul.f32 0.16666667, %v2843_v20  ;;  %v2725_v6 = vadd.f32 %v2693_v14, %v7084_v13  ;;  %v2755_v42 = vadd.f32 3.0, %v7080_v15 }
 0x2d0   : > { %v2815_v23 = vmin.f32 %v2783_v4, 6.0  ;;  %v7226_v9 = vmul.f32 0.16666667, %v2844_v39  ;;  %v2756_v28 = vadd.f32 3.0, %v2724_v22  ;;  %v2816_v52 = vmin.f32 %v2784_v57, 6.0 }
 0x2d1   : > { %v2919_v60 = vadd.f32 %v2918_v45, %v2917_v8  ;;  %v2786_v45 = vmax.f32 %v2754_v35, 0.0  ;;  %v2846_v53 = vmul.f32 %v2814_v10, %v8346_v17  ;;  %v2926_v8 = vsel %vm2886_vm0, %v7213_v40, 0.0 }
 0x2d2   : > { %v2928_v16 = vsel %vm2886_vm0, %v7221_v41, 0.0  ;;  %v7233_v20 = vmul.f32 0.16666667, %v2845_v47  ;;  %v2817_v34 = vmin.f32 %v2785_v44, 6.0  ;;  %v2757_v63 = vadd.f32 3.0, %v2725_v6 }
 0x2d3   : > { %v2921_v55 = vadd.f32 %v2920_v50, %v2919_v60  ;;  %v2787_v27 = vmax.f32 %v2755_v42, 0.0  ;;  %v2847_v21 = vmul.f32 %v2815_v23, %v8347_v48  ;;  %v2788_v12 = vmax.f32 %v2756_v28, 0.0 }
 0x2d4   : > { %v2818_v60 = vmin.f32 %v2786_v45, 6.0  ;;  %v2848_v50 = vmul.f32 %v2816_v52, %v7055_v51  ;;  %v7237_v17 = vmul.f32 0.16666667, %v2846_v53  ;;  %v2932_v4 = vsel %vm2886_vm0, %v7233_v20, 0.0 }
 0x2d5   : > { %v2923_v32 = vadd.f32 %v2922_v58, %v2921_v55  ;;  %v2930_v58 = vsel %vm2886_vm0, %v7226_v9, 0.0  ;;  %v2789_v39 = vmax.f32 %v2757_v63, 0.0  ;;  %v2819_v55 = vmin.f32 %v2787_v27, 6.0 }
 0x2d6   : > { %v2849_v14 = vmul.f32 %v2817_v34, %v7059_v38  ;;  %v7244_v35 = vmul.f32 0.16666667, %v2847_v21  ;;  %v2820_v57 = vmin.f32 %v2788_v12, 6.0  ;;  %v2850_v10 = vmul.f32 %v2818_v60, %v7073_v0 }
 0x2d7   : > { %v2925_v33 = vadd.f32 %v2924_v30, %v2923_v32  ;;  %v7247_v51 = vmul.f32 0.16666667, %v2848_v50  ;;  %v2934_v30 = vsel %vm2886_vm0, %v7237_v17, 0.0  ;;  %v2821_v32 = vmin.f32 %v2789_v39, 6.0 }
 0x2d8   : > { %v2851_v44 = vmul.f32 %v2819_v55, %v7080_v15  ;;  %v7252_v42 = vmul.f32 0.16666667, %v2849_v14  ;;  %v2936_v38 = vsel %vm2886_vm0, %v7244_v35, 0.0  ;;  %v2852_v28 = vmul.f32 %v2820_v57, %v2724_v22  ;;  %v2958_v55 = vld [vmem:[%s7506_s5] sm:$0xff] }
 0x2d9   : > { %v2927_v13 = vadd.f32 %v2926_v8, %v2925_v33  ;;  %v7256_v33 = vmul.f32 0.16666667, %v2850_v10  ;;  %v2938_v0 = vsel %vm2886_vm0, %v7247_v51, 0.0  ;;  %v2853_v52 = vmul.f32 %v2821_v32, %v2725_v6 }
 0x2da   : > { %v7260_v53 = vmul.f32 0.16666667, %v2851_v44  ;;  %v2940_v8 = vsel %vm2886_vm0, %v7252_v42, 0.0  ;;  %v3818_v10 = vmov 0  }
 0x2db   : > { %v2929_v36 = vadd.f32 %v2928_v16, %v2927_v13  ;;  %v7264_v16 = vmul.f32 0.16666667, %v2852_v28  ;;  %v2942_v13 = vsel %vm2886_vm0, %v7256_v33, 0.0  ;;  %v7268_v22 = vmul.f32 0.16666667, %v2853_v52  ;;  %3652 = vset.pattern.permute.xlu0 %v3818_v10  ;;  %v2966_v28 = vld [vmem:[%s7508_s7] sm:$0xff] }
 0x2dc   : > { %v2944_v63 = vsel %vm2886_vm0, %v7260_v53, 0.0 }
 0x2dd   : > { %v2931_v19 = vadd.f32 %v2930_v58, %v2929_v36  ;;  %v2946_v6 = vsel %vm2886_vm0, %v7264_v16, 0.0  ;;  %v2948_v12 = vsel %vm2886_vm0, %v7268_v22, 0.0 }
 0x2df   : > { %v2933_v48 = vadd.f32 %v2932_v4, %v2931_v19 }
 0x2e1   : > { %v2935_v47 = vadd.f32 %v2934_v30, %v2933_v48  ;;  %v2963_v30 = vld [vmem:[%s7507_s6] sm:$0xff] }
 0x2e3   : > { %v2937_v23 = vadd.f32 %v2936_v38, %v2935_v47  ;;  %v3661_v38 = vld [vmem:[%s7510_s9] sm:$0xff]  }
 0x2e4   : > { %3565 = vmatprep.subr.bf16.mxu1 %v3661_v38 }
 0x2e5   : > { %v2939_v45 = vadd.f32 %v2938_v0, %v2937_v23  ;;  %v3662_v23 = vld [vmem:[%s7510_s9 + $0x8] sm:$0xff]   ;;  %3566 = vmatpush3.bf16.msra.mxu1 %v3661_v38 }
 0x2e6   : > { %3567 = vmatprep.subr.bf16.mxu1 %v3662_v23 }
 0x2e7   : > { %v2941_v15 = vadd.f32 %v2940_v8, %v2939_v45 }
 0x2e9   : > { %v2943_v34 = vadd.f32 %v2942_v13, %v2941_v15  ;;  %3568 = vmatpush3.bf16.msra.mxu1 %v3662_v23 }
 0x2eb   : > { %v2945_v27 = vadd.f32 %v2944_v63, %v2943_v34 }
 0x2ed   : > { %v2947_v21 = vadd.f32 %v2946_v6, %v2945_v27  ;;  %v2980_v27 = vld [vmem:[%s7509_s8] sm:$0x1] }
 0x2ef   : > { %v2949_v36 = vadd.f32 %v2948_v12, %v2947_v21 }
 0x2f1   : > { %v2950_v60 = vrot.slane %v2949_v36, 4 }
 0x2f3   : > { %v2951_v50 = vadd.f32 %v2950_v60, %v2949_v36  ;;  %v2988_v60 = vsub.s32 0, %v8226_v61 }
 0x2f5   : > { %v2952_v58 = vrot.slane %v2951_v50, 2 }
 0x2f7   : > { %v2953_v4 = vadd.f32 %v2952_v58, %v2951_v50 }
 0x2f9   : > { %v2954_v19 = vrot.slane %v2953_v4, 1 }
 0x2fb   : > { %v2955_v39 = vadd.f32 %v2954_v19, %v2953_v4 }
 0x2fd   : > { %v2957_v14 = vmul.f32 0.00390625, %v2955_v39 }
 0x2ff   : > { %v2959_v48 = vmul.f32 %v2958_v55, %v2957_v14 }
 0x301   : > { %v2960_v57 = vsel %vm2886_vm0, %v2959_v48, 0.0 }
 0x302   : > { %2961 = vadd.xlane.f32.xlu0 %v2960_v57 }
 0x38f   : > { %v2962_v47 = vpop.xlane.xlu0 %2961 }
 0x390   : > { %v2964_v32 = vadd.f32 %v2963_v30, %v2962_v47 }
 0x392   : > { %v2965_v44 = vmax.f32 %v2964_v32, 0.0 }
 0x394   : > { %2969 = vperm.xlu0 %3652, %v2965_v44  }
 0x413   : > { %v2970_v0 = vpop.permute.xlu0 %2969 }
 0x414   : > { %v2972_v45 = vmul.f32 %v2970_v0, %v2966_v28 }
 0x416   : > { %v2973_v52 = vsel %vm2886_vm0, %v2972_v45, 0.0 }
 0x417   : > { %v2974_v8 = vrot.slane %v2973_v52, 4 }
 0x419   : > { %v2975_v15 = vadd.f32 %v2974_v8, %v2973_v52 }
 0x41b   : > { %v2976_v13 = vrot.slane %v2975_v15, 2 }
 0x41d   : > { %v2977_v34 = vadd.f32 %v2976_v13, %v2975_v15 }
 0x41f   : > { %v2978_v63 = vrot.slane %v2977_v34, 1 }
 0x421   : > { %v2979_v6 = vadd.f32 %v2978_v63, %v2977_v34 }
 0x423   : > { %v2981_v21 = vadd.f32 %v2980_v27, %v2979_v6  ;;  %v3685_v27 = vld [vmem:[%s3992_s27 + $0x10] sm:$0xff] }
 0x425   : > { %v2982_v12 = vadd.f32 3.0, %v2981_v21 }
 0x427   : > { %v2983_v36 = vmax.f32 %v2982_v12, 0.0  ;;  %v3686_v12 = vld [vmem:[%s3992_s27] sm:$0xff] }
 0x429   : > { %v2984_v50 = vmin.f32 %v2983_v36, 6.0 }
 0x42b   : > { %v2985_v58 = vmul.f32 0.16666667, %v2984_v50  ;;  %v3687_v50 = vld [vmem:[%s3992_s27 + $0x18] sm:$0xff] }
 0x42d   : > { %v2989_v4 = vrot.slane %v2985_v58, %v2988_v60 }
 0x42f   : > { %v2990_v19 = vmul.f32 %v2989_v4, %v7098_v54  ;;  %v2991_v39 = vmul.f32 %v2989_v4, %v7088_v29  ;;  %v2992_v55 = vmul.f32 %v2989_v4, %v7094_v37  ;;  %v2993_v14 = vmul.f32 %v2989_v4, %v7100_v59 }
 0x430   : > { %v2994_v48 = vmul.f32 %v2989_v4, %v7106_v43  ;;  %v2995_v57 = vmul.f32 %v2989_v4, %v7115_v46  ;;  %v2996_v54 = vmul.f32 %v2989_v4, %v7121_v56  ;;  %v2997_v29 = vmul.f32 %v2989_v4, %v7124_v2 }
 0x431   : > { %v3022_v10 = vpack.c.bf16 %v2991_v39, %v2990_v19  ;;  %v3023_v30 = vpack.c.bf16 %v2993_v14, %v2992_v55  ;;  %v2998_v37 = vmul.f32 %v2989_v4, %v7132_v11  ;;  %v2999_v59 = vmul.f32 %v2989_v4, %v7138_v7 }
 0x432   : > { %v3024_v61 = vpack.c.bf16 %v2995_v57, %v2994_v48  ;;  %v3025_v43 = vpack.c.bf16 %v2997_v29, %v2996_v54  ;;  %v3000_v46 = vmul.f32 %v2989_v4, %v7143_v18  ;;  %v3001_v32 = vmul.f32 %v2989_v4, %v7151_v25  ;;  %v3690_v29 = vld [vmem:[%s3992_s27 + $0x20] sm:$0xff] }
 0x433   : > { %3569 = vmatprep.mubr.msk.bf16.mxu1 %vm2886_vm0, %v3022_v10  ;;  %v3026_v47 = vpack.c.bf16 %v2999_v59, %v2998_v37  ;;  %v3002_v44 = vmul.f32 %v2989_v4, %v7157_v62  ;;  %v3003_v56 = vmul.f32 %v2989_v4, %v7164_v26  ;;  %v3004_v11 = vmul.f32 %v2989_v4, %v7170_v3  ;;  %v3689_v10 = vld [vmem:[%s3992_s27 + $0x30] sm:$0xff] }
 0x434   : > { %3570 = vmatmul.mubr.msk.bf16.vlgmr.msra.gmra.mrb[0].mxu1 %vm2886_vm0, %v3023_v30  ;;  %v3027_v38 = vpack.c.bf16 %v3001_v32, %v3000_v46  ;;  %v3005_v7 = vmul.f32 %v2989_v4, %v7172_v1  ;;  %v3006_v23 = vmul.f32 %v2989_v4, %v7179_v5  ;;  %v3007_v18 = vmul.f32 %v2989_v4, %v7187_v49  ;;  %v3692_v46 = vld [vmem:[%s3992_s27 + $0x28] sm:$0xff] }
 0x435   : > { %3573 = vmatprep.mubr.msk.bf16.mxu1 %vm2886_vm0, %v3024_v61  ;;  %v3028_v2 = vpack.c.bf16 %v3003_v56, %v3002_v44  ;;  %v3008_v62 = vmul.f32 %v2989_v4, %v7189_v24  ;;  %v3009_v26 = vmul.f32 %v2989_v4, %v7202_v31  ;;  %v3010_v0 = vmul.f32 %v2989_v4, %v7213_v40 }
 0x436   : > { %v3029_v28 = vpack.c.bf16 %v3005_v7, %v3004_v11  ;;  %v3030_v25 = vpack.c.bf16 %v3007_v18, %v3006_v23  ;;  %v3011_v3 = vmul.f32 %v2989_v4, %v7221_v41  ;;  %v3012_v5 = vmul.f32 %v2989_v4, %v7226_v9  ;;  %v3693_v7 = vld [vmem:[%s3992_s27 + $0x50] sm:$0xff] }
 0x437   : > { %v3031_v45 = vpack.c.bf16 %v3009_v26, %v3008_v62  ;;  %v3013_v49 = vmul.f32 %v2989_v4, %v7233_v20  ;;  %v3014_v52 = vmul.f32 %v2989_v4, %v7237_v17  ;;  %v3015_v24 = vmul.f32 %v2989_v4, %v7244_v35 }
 0x438   : > { %v3032_v1 = vpack.c.bf16 %v3011_v3, %v3010_v0  ;;  %v3016_v40 = vmul.f32 %v2989_v4, %v7247_v51  ;;  %v3017_v41 = vmul.f32 %v2989_v4, %v7252_v42  ;;  %v3018_v15 = vmul.f32 %v2989_v4, %v7256_v33  ;;  %v7348_v42 = vld [vmem:[%s7511_s10] ss:$0 sm:$0xff]  ;;  %v3695_v0 = vld [vmem:[%s3992_s27 + $0x58] sm:$0xff] }
 0x439   : > { %v3033_v8 = vpack.c.bf16 %v3013_v49, %v3012_v5  ;;  %v3034_v31 = vpack.c.bf16 %v3015_v24, %v3014_v52  ;;  %v3019_v9 = vmul.f32 %v2989_v4, %v7260_v53  ;;  %v3020_v17 = vmul.f32 %v2989_v4, %v7264_v16 }
 0x43a   : > { %v3035_v20 = vpack.c.bf16 %v3017_v41, %v3016_v40  ;;  %v3021_v35 = vmul.f32 %v2989_v4, %v7268_v22  ;;  %v3688_v4 = vld [vmem:[%s3992_s27 + $0x8] sm:$0xff] }
 0x43b   : > { %v3036_v13 = vpack.c.bf16 %v3019_v9, %v3018_v15  ;;  %v3698_v9 = vld [vmem:[%s3992_s27 + $0x60] sm:$0xff] }
 0x43c   : > { %3574 = vmatmul.mubr.msk.bf16.gmra.mrb[4].mxu1 %vm2886_vm0, %v3025_v43  ;;  %v3037_v51 = vpack.c.bf16 %v3021_v35, %v3020_v17  ;;  %v3691_v43 = vld [vmem:[%s3992_s27 + $0x38] sm:$0xff] }
 0x43d   : > { %3577 = vmatprep.mubr.msk.bf16.mxu1 %vm2886_vm0, %v3026_v47  ;;  %v3699_v17 = vld [vmem:[%s3992_s27 + $0x78] sm:$0xff] }
 0x444   : > { %3578 = vmatmul.mubr.msk.bf16.gmra.mrb[8].mxu1 %vm2886_vm0, %v3027_v38 }
 0x445   : > { %3581 = vmatprep.mubr.msk.bf16.mxu1 %vm2886_vm0, %v3028_v2 }
 0x44c   : > { %3582 = vmatmul.mubr.msk.bf16.gmra.mrb[12].mxu1 %vm2886_vm0, %v3029_v28 }
 0x44d   : > { %3585 = vmatprep.mubr.msk.bf16.mxu1 %vm2886_vm0, %v3030_v25  ;;  %v3694_v25 = vld [vmem:[%s3992_s27 + $0x40] sm:$0xff] }
 0x454   : > { %3586 = vmatmul.mubr.msk.bf16.gmra.mrb[16].mxu1 %vm2886_vm0, %v3031_v45  ;;  %v3696_v45 = vld [vmem:[%s3992_s27 + $0x48] sm:$0xff] }
 0x455   : > { %3589 = vmatprep.mubr.msk.bf16.mxu1 %vm2886_vm0, %v3032_v1 }
 0x45c   : > { %3590 = vmatmul.mubr.msk.bf16.gmra.mrb[20].mxu1 %vm2886_vm0, %v3033_v8 }
 0x45d   : > { %3593 = vmatprep.mubr.msk.bf16.mxu1 %vm2886_vm0, %v3034_v31  ;;  %v3697_v31 = vld [vmem:[%s3992_s27 + $0x70] sm:$0xff] }
 0x464   : > { %3594 = vmatmul.mubr.msk.bf16.gmra.mrb[24].mxu1 %vm2886_vm0, %v3035_v20 }
 0x465   : > { %3597 = vmatprep.mubr.msk.bf16.mxu1 %vm2886_vm0, %v3036_v13 }
 0x46c   : > { %3598 = vmatmul.mubr.msk.bf16.gmra.mrb[28].mxu1 %vm2886_vm0, %v3037_v51  ;;  %v3700_v51 = vld [vmem:[%s3992_s27 + $0x68] sm:$0xff] }
 0x507   : > { %v3571_v33 = vpop.f32.mrb[0].mxu1 }
 0x508   : > { %v3152_v53 = vadd.f32 %v3571_v33, %v7348_v42  ;;  %v3143_v34 = vpop.f32.mrb[1].mxu1 }
 0x509   : > { %v3144_v63 = vadd.f32 %v7348_v42, %v3143_v34  ;;  %v3572_v16 = vpop.f32.mrb[2].mxu1 }
 0x50a   : > { %v3272_v22 = vadd.f32 %v3685_v27, %v3152_v53  ;;  %v3155_v6 = vadd.f32 %v3572_v16, %v7348_v42  ;;  %v3146_v21 = vpop.f32.mrb[3].mxu1 }
 0x50b   : > { %v3270_v36 = vadd.f32 %v3686_v12, %v3144_v63  ;;  %v3147_v60 = vadd.f32 %v7348_v42, %v3146_v21 }
 0x50c   : > { %3304 = vst [vmem:[%s7358_s28 + $0x10] sm:$0xff] %v3272_v22  ;;  %v3273_v58 = vadd.f32 %v3687_v50, %v3155_v6  ;;  %v3701_v22 = vld [vmem:[%s3992_s27 + $0x90] sm:$0xff] }
 0x50d   : > { %3302 = vst [vmem:[%s7358_s28] sm:$0xff] %v3270_v36  ;;  %v3271_v19 = vadd.f32 %v3688_v4, %v3147_v60  ;;  %v3702_v36 = vld [vmem:[%s3992_s27 + $0x80] sm:$0xff] }
 0x50e   : > { %3305 = vst [vmem:[%s7358_s28 + $0x18] sm:$0xff] %v3273_v58  ;;  %v3703_v58 = vld [vmem:[%s3992_s27 + $0x98] sm:$0xff] }
 0x50f   : > { %3303 = vst [vmem:[%s7358_s28 + $0x8] sm:$0xff] %v3271_v19  ;;  %v3575_v39 = vpop.f32.mrb[4].mxu1  ;;  %v3704_v19 = vld [vmem:[%s3992_s27 + $0x88] sm:$0xff] }
 0x510   : > { %v3168_v55 = vadd.f32 %v3575_v39, %v7348_v42  ;;  %v3159_v14 = vpop.f32.mrb[5].mxu1 }
 0x511   : > { %v3160_v48 = vadd.f32 %v7348_v42, %v3159_v14  ;;  %v3576_v57 = vpop.f32.mrb[6].mxu1 }
 0x512   : > { %v3276_v30 = vadd.f32 %v3689_v10, %v3168_v55  ;;  %v3171_v61 = vadd.f32 %v3576_v57, %v7348_v42  ;;  %v3162_v54 = vpop.f32.mrb[7].mxu1 }
 0x513   : > { %v3274_v37 = vadd.f32 %v3690_v29, %v3160_v48  ;;  %v3163_v59 = vadd.f32 %v7348_v42, %v3162_v54 }
 0x514   : > { %3308 = vst [vmem:[%s7358_s28 + $0x30] sm:$0xff] %v3276_v30  ;;  %v3277_v47 = vadd.f32 %v3691_v43, %v3171_v61  ;;  %v3705_v30 = vld [vmem:[%s3992_s27 + $0xb0] sm:$0xff] }
 0x515   : > { %3306 = vst [vmem:[%s7358_s28 + $0x20] sm:$0xff] %v3274_v37  ;;  %v3275_v32 = vadd.f32 %v3692_v46, %v3163_v59  ;;  %v3706_v37 = vld [vmem:[%s3992_s27 + $0xa0] sm:$0xff] }
 0x516   : > { %3309 = vst [vmem:[%s7358_s28 + $0x38] sm:$0xff] %v3277_v47  ;;  %v3707_v47 = vld [vmem:[%s3992_s27 + $0xb8] sm:$0xff] }
 0x517   : > { %3307 = vst [vmem:[%s7358_s28 + $0x28] sm:$0xff] %v3275_v32  ;;  %v3579_v44 = vpop.f32.mrb[8].mxu1  ;;  %v3708_v32 = vld [vmem:[%s3992_s27 + $0xa8] sm:$0xff] }
 0x518   : > { %v3184_v56 = vadd.f32 %v3579_v44, %v7348_v42  ;;  %v3175_v38 = vpop.f32.mrb[9].mxu1 }
 0x519   : > { %v3176_v2 = vadd.f32 %v7348_v42, %v3175_v38  ;;  %v3580_v11 = vpop.f32.mrb[10].mxu1 }
 0x51a   : > { %v3280_v23 = vadd.f32 %v3693_v7, %v3184_v56  ;;  %v3187_v18 = vadd.f32 %v3580_v11, %v7348_v42  ;;  %v3178_v28 = vpop.f32.mrb[11].mxu1 }
 0x51b   : > { %v3278_v62 = vadd.f32 %v3694_v25, %v3176_v2  ;;  %v3179_v26 = vadd.f32 %v7348_v42, %v3178_v28 }
 0x51c   : > { %3312 = vst [vmem:[%s7358_s28 + $0x50] sm:$0xff] %v3280_v23  ;;  %v3281_v3 = vadd.f32 %v3695_v0, %v3187_v18  ;;  %v3709_v23 = vld [vmem:[%s3992_s27 + $0xd0] sm:$0xff] }
 0x51d   : > { %3310 = vst [vmem:[%s7358_s28 + $0x40] sm:$0xff] %v3278_v62  ;;  %v3279_v1 = vadd.f32 %v3696_v45, %v3179_v26  ;;  %v3710_v62 = vld [vmem:[%s3992_s27 + $0xc0] sm:$0xff] }
 0x51e   : > { %3313 = vst [vmem:[%s7358_s28 + $0x58] sm:$0xff] %v3281_v3  ;;  %v3711_v3 = vld [vmem:[%s3992_s27 + $0xd8] sm:$0xff] }
 0x51f   : > { %3311 = vst [vmem:[%s7358_s28 + $0x48] sm:$0xff] %v3279_v1  ;;  %v3583_v5 = vpop.f32.mrb[12].mxu1  ;;  %v3712_v1 = vld [vmem:[%s3992_s27 + $0xc8] sm:$0xff] }
 0x520   : > { %v3200_v49 = vadd.f32 %v3583_v5, %v7348_v42  ;;  %v3191_v52 = vpop.f32.mrb[13].mxu1 }
 0x521   : > { %v3192_v24 = vadd.f32 %v7348_v42, %v3191_v52  ;;  %v3584_v8 = vpop.f32.mrb[14].mxu1 }
 0x522   : > { %v3284_v40 = vadd.f32 %v3697_v31, %v3200_v49  ;;  %v3203_v41 = vadd.f32 %v3584_v8, %v7348_v42  ;;  %v3194_v15 = vpop.f32.mrb[15].mxu1 }
 0x523   : > { %v3282_v20 = vadd.f32 %v3698_v9, %v3192_v24  ;;  %v3195_v13 = vadd.f32 %v7348_v42, %v3194_v15 }
 0x524   : > { %3316 = vst [vmem:[%s7358_s28 + $0x70] sm:$0xff] %v3284_v40  ;;  %v3285_v35 = vadd.f32 %v3699_v17, %v3203_v41  ;;  %v3713_v40 = vld [vmem:[%s3992_s27 + $0xf0] sm:$0xff] }
 0x525   : > { %3314 = vst [vmem:[%s7358_s28 + $0x60] sm:$0xff] %v3282_v20  ;;  %v3283_v33 = vadd.f32 %v3700_v51, %v3195_v13  ;;  %v3714_v20 = vld [vmem:[%s3992_s27 + $0xe0] sm:$0xff] }
 0x526   : > { %3317 = vst [vmem:[%s7358_s28 + $0x78] sm:$0xff] %v3285_v35  ;;  %v3715_v35 = vld [vmem:[%s3992_s27 + $0xf8] sm:$0xff] }
 0x527   : > { %3315 = vst [vmem:[%s7358_s28 + $0x68] sm:$0xff] %v3283_v33  ;;  %v3587_v53 = vpop.f32.mrb[16].mxu1  ;;  %v3716_v33 = vld [vmem:[%s3992_s27 + $0xe8] sm:$0xff] }
 0x528   : > { %v3216_v34 = vadd.f32 %v3587_v53, %v7348_v42  ;;  %v3207_v63 = vpop.f32.mrb[17].mxu1 }
 0x529   : > { %v3208_v16 = vadd.f32 %v7348_v42, %v3207_v63  ;;  %v3588_v27 = vpop.f32.mrb[18].mxu1 }
 0x52a   : > { %v3288_v6 = vadd.f32 %v3701_v22, %v3216_v34  ;;  %v3219_v21 = vadd.f32 %v3588_v27, %v7348_v42  ;;  %v3210_v12 = vpop.f32.mrb[19].mxu1 }
 0x52b   : > { %v3286_v60 = vadd.f32 %v3702_v36, %v3208_v16  ;;  %v3211_v50 = vadd.f32 %v7348_v42, %v3210_v12 }
 0x52c   : > { %3320 = vst [vmem:[%s7358_s28 + $0x90] sm:$0xff] %v3288_v6  ;;  %v3289_v4 = vadd.f32 %v3703_v58, %v3219_v21 }
 0x52d   : > { %3318 = vst [vmem:[%s7358_s28 + $0x80] sm:$0xff] %v3286_v60  ;;  %v3287_v39 = vadd.f32 %v3704_v19, %v3211_v50 }
 0x52e   : > { %3321 = vst [vmem:[%s7358_s28 + $0x98] sm:$0xff] %v3289_v4 }
 0x52f   : > { %3319 = vst [vmem:[%s7358_s28 + $0x88] sm:$0xff] %v3287_v39  ;;  %v3591_v55 = vpop.f32.mrb[20].mxu1 }
 0x530   : > { %v3232_v14 = vadd.f32 %v3591_v55, %v7348_v42  ;;  %v3223_v48 = vpop.f32.mrb[21].mxu1 }
 0x531   : > { %v3224_v57 = vadd.f32 %v7348_v42, %v3223_v48  ;;  %v3592_v10 = vpop.f32.mrb[22].mxu1 }
 0x532   : > { %v3292_v61 = vadd.f32 %v3705_v30, %v3232_v14  ;;  %v3235_v54 = vadd.f32 %v3592_v10, %v7348_v42  ;;  %v3226_v29 = vpop.f32.mrb[23].mxu1 }
 0x533   : > { %v3290_v59 = vadd.f32 %v3706_v37, %v3224_v57  ;;  %v3227_v43 = vadd.f32 %v7348_v42, %v3226_v29 }
 0x534   : > { %3324 = vst [vmem:[%s7358_s28 + $0xb0] sm:$0xff] %v3292_v61  ;;  %v3293_v46 = vadd.f32 %v3707_v47, %v3235_v54 }
 0x535   : > { %3322 = vst [vmem:[%s7358_s28 + $0xa0] sm:$0xff] %v3290_v59  ;;  %v3291_v44 = vadd.f32 %v3708_v32, %v3227_v43 }
 0x536   : > { %3325 = vst [vmem:[%s7358_s28 + $0xb8] sm:$0xff] %v3293_v46 }
 0x537   : > { %3323 = vst [vmem:[%s7358_s28 + $0xa8] sm:$0xff] %v3291_v44  ;;  %v3595_v56 = vpop.f32.mrb[24].mxu1 }
 0x538   : > { %v3248_v38 = vadd.f32 %v3595_v56, %v7348_v42  ;;  %v3239_v2 = vpop.f32.mrb[25].mxu1 }
 0x539   : > { %v3240_v11 = vadd.f32 %v7348_v42, %v3239_v2  ;;  %v3596_v7 = vpop.f32.mrb[26].mxu1 }
 0x53a   : > { %v3296_v18 = vadd.f32 %v3709_v23, %v3248_v38  ;;  %v3251_v28 = vadd.f32 %v3596_v7, %v7348_v42  ;;  %v3242_v25 = vpop.f32.mrb[27].mxu1 }
 0x53b   : > { %v3294_v26 = vadd.f32 %v3710_v62, %v3240_v11  ;;  %v3243_v0 = vadd.f32 %v7348_v42, %v3242_v25 }
 0x53c   : > { %3328 = vst [vmem:[%s7358_s28 + $0xd0] sm:$0xff] %v3296_v18  ;;  %v3297_v45 = vadd.f32 %v3711_v3, %v3251_v28 }
 0x53d   : > { %3326 = vst [vmem:[%s7358_s28 + $0xc0] sm:$0xff] %v3294_v26  ;;  %v3295_v5 = vadd.f32 %v3712_v1, %v3243_v0 }
 0x53e   : > { %3329 = vst [vmem:[%s7358_s28 + $0xd8] sm:$0xff] %v3297_v45 }
 0x53f   : > { %3327 = vst [vmem:[%s7358_s28 + $0xc8] sm:$0xff] %v3295_v5  ;;  %v3599_v49 = vpop.f32.mrb[28].mxu1 }
 0x540   : > { %v3264_v52 = vadd.f32 %v3599_v49, %v7348_v42  ;;  %v3255_v24 = vpop.f32.mrb[29].mxu1 }
 0x541   : > { %v3256_v8 = vadd.f32 %v7348_v42, %v3255_v24  ;;  %v3600_v31 = vpop.f32.mrb[30].mxu1 }
 0x542   : > { %v3300_v41 = vadd.f32 %v3713_v40, %v3264_v52  ;;  %v3267_v15 = vadd.f32 %v3600_v31, %v7348_v42  ;;  %v3258_v9 = vpop.f32.mrb[31].mxu1 }
 0x543   : > { %v3298_v13 = vadd.f32 %v3714_v20, %v3256_v8  ;;  %v3259_v17 = vadd.f32 %v7348_v42, %v3258_v9 }
 0x544   : > { %3332 = vst [vmem:[%s7358_s28 + $0xf0] sm:$0xff] %v3300_v41  ;;  %v3301_v51 = vadd.f32 %v3715_v35, %v3267_v15 }
 0x545   : > { %3330 = vst [vmem:[%s7358_s28 + $0xe0] sm:$0xff] %v3298_v13  ;;  %v3299_v53 = vadd.f32 %v3716_v33, %v3259_v17 }
 0x546   : > { %3333 = vst [vmem:[%s7358_s28 + $0xf8] sm:$0xff] %v3301_v51 }
 0x547   : > { %3331 = vst [vmem:[%s7358_s28 + $0xe8] sm:$0xff] %v3299_v53 }
 0x548   : > { %3760 = shalt.err (!%p3757_p2)
}
 0x549   : > { %s3761_s27 = scalar_lea.hbm %s7451_s21, 4096  ;;  %s3765_s13 = scalar_lea.hbm %s7512_s11, 8192 }
 0x54a   : > { %p3762_p4 = scmp.ne.s32.totalorder %s7451_s21, %s3761_s27  ;;  %p3766_p9 = scmp.lt.u32.totalorder %s7451_s21, %s7512_s11 }
 0x54b   : > { %p3767_p1 = scmp.lt.u32.totalorder %s3765_s13, %s3761_s27  ;;  %p3769_p6 = scmp.lt.u32.totalorder %s3761_s27, %s7451_s21 }
 0x54c   : > { %p3763_p5 = pnand %p3762_p4, %p8351_p11 }
 0x54d   : > { %p3768_p3 = por %p3767_p1, %p3766_p9 }
 0x54e   : > { %p3764_p7 = pneg %p3763_p5 }
 0x54f   : > { %p3770_p12 = por %p3769_p6, %p3768_p3 }
 0x551   : > { %p3771_p13 = pnand %p3770_p12, %p3764_p7 }
 0x553   : > { %3774 = shalt.err (!%p3771_p13)
}
 0x554   : > { %s3820_s24 = smov 128   ;;  %s3821_s16 = smov 8  }
 0x555   : > { %3603 = dma.vmem_to_hbm [thread:$0]  (%p8351_p11), %s7453_s14, 4096, %s7451_s21, %s3335_s26, %s3820_s24, %s3820_s24, %s3821_s16  }
 0x556 PF: > { %s3363_s15 = sand.u32 1, %s3801_s17   ;;  %p8352_p8 = scmp.ne.s32.totalorder %s7727_s30, 0 }
 0x557   : > { %p8353_p10 = scmp.ge.s32.totalorder %s3813_s20, 2  ;;  %s3364_s27 = scalar_lea.sflag [#allocation4], %s3363_s15 }
 0x559   : > { %p3610_p0 = pnand %p8353_p10, %p8352_p8 }
 0x55b   : > { %3796 = dma.done.wait (!%p3610_p0), %s3364_s27, 4096  }
 0x55c   : > { %3798 = vsyncadd (!%p3610_p0), %s3364_s27, 4294963200  ;;  %s8354_s28 = sld [smem:[#allocation8_spill]]  ;;  %s8355_s19 = sld [smem:[#allocation9_spill]] }
 0x55d   : > { %p24_p2 = scmp.ge.s32.totalorder %s3907_s23, 4   ;;  %s8356_s17 = smov %s3805_s18 }
 0x55e   : > { %s8358_s20 = smov %s3907_s23 }
 0x55f   :  { %26 = sbr.rel (!%p24_p2) target bundleno = 5 (0x5), region = 109 }
 0x562   : > { %s8357_s18 = smov %s8354_s28 }
 0x566   :  { %3369 = vsyncpa [#allocation3], 1 }
 0x567   :  { %3371 = vsyncpa [#allocation3 + $0x1], 1 }
 0x568   :  { %3372 = vsyncpa [#allocation4], 1 }
 0x569   :  { %3374 = vsyncpa [#allocation4 + $0x1], 1 }

</bundles_post_ra>
